<compile_context>
chip_gen: v7x
topology: tpu7x:2x2x1
jax: 0.10.0
libtpu: 0.0.40
codegen_flags: <defaults>
</compile_context>

<pallas_src>
import jax
import jax.numpy as jnp
from jax import lax
from jax.experimental import pallas as pl
from jax.experimental.pallas import tpu as pltpu

EPS = 1e-5
STYLE_DIM = 100


def _make_kernel(Bt, C, H, W):
    HW = H * W

    def kernel(x_ref, s_ref, wconv_ref, cb_ref, wfc_ref, bfc_ref, o_ref):
        # Packed constants (loaded once per grid step, reused across the batch block).
        wconv = wconv_ref[...]        # (18, Cout, Cin): taps 0..8 conv1, 9..17 conv2
        cb = cb_ref[...]              # (2C, 1):  conv1 bias | conv2 bias
        wfc = wfc_ref[...]            # (4C, 100): beta1 | gamma1 | beta2 | gamma2
        bfc = bfc_ref[...]            # (4C, 1)

        def reflect_pad1(a):          # (C, H, W) -> (C, H+2, W+2), ReflectionPad2d(1)
            a = jnp.concatenate([a[:, 1:2, :], a, a[:, H - 2:H - 1, :]], axis=1)
            a = jnp.concatenate([a[:, :, 1:2], a, a[:, :, W - 2:W - 1]], axis=2)
            return a

        def conv3x3(a2, tap0, bias):  # a2: (C, HW) -> (C, HW)
            p = reflect_pad1(a2.reshape(C, H, W))
            acc = jnp.zeros((C, HW), jnp.float32)
            for t in range(9):        # 9 MXU dots, accumulate in f32
                kh, kw = divmod(t, 3)
                patch = p[:, kh:kh + H, kw:kw + W].reshape(C, HW)   # (Cin, HW)
                acc = acc + jnp.dot(wconv[tap0 + t], patch,
                                    preferred_element_type=jnp.float32,
                                    precision=lax.Precision.HIGHEST)
            return acc + bias

        def instance_norm(a):         # (C, HW), biased variance, eps=1e-5
            mean = jnp.mean(a, axis=1, keepdims=True)
            c = a - mean              # centered tensor reused for var + normalize
            var = jnp.mean(c * c, axis=1, keepdims=True)
            return c * lax.rsqrt(var + EPS)

        for b in range(Bt):           # static unroll over the batch block
            x2 = x_ref[b]             # (C, HW)  lane-dense
            s = s_ref[b]              # (1, STYLE_DIM)

            # Fused style FC: one broadcast-multiply + one lane reduction for
            # all four Linear(100 -> C) layers.
            gb = jnp.sum(wfc * s, axis=1, keepdims=True) + bfc     # (4C, 1)
            beta1, gamma1 = gb[0:C], gb[C:2 * C]
            beta2, gamma2 = gb[2 * C:3 * C], gb[3 * C:4 * C]

            y = instance_norm(conv3x3(x2, 0, cb[0:C]))
            y = jnp.maximum(gamma1 * y + beta1, 0.0)
            y = instance_norm(conv3x3(y, 9, cb[C:2 * C]))
            y = gamma2 * y + beta2
            o_ref[b] = x2 + y         # lane-dense (C, HW) store

    return kernel


def _pick_batch_block(B, C, HW):
    """Largest divisor of B whose activation tile stays ~<=1 MiB, while keeping
    at least 2 grid steps when B allows (both v7x TensorCores get work)."""
    per_elem = C * HW * 4
    fitting = [d for d in range(1, B + 1)
               if B % d == 0 and d * per_elem <= (1 << 20)]
    if not fitting:
        fitting = [1]
    bt = fitting[-1]
    while bt > 1 and B // bt < 2:
        smaller = [d for d in fitting if d < bt]
        if not smaller:
            break
        bt = smaller[-1]
        fitting = smaller
    return bt


def residual_block_forward(x, style, params):
    """x: (B, C, H, W) f32, style: (B, 100) f32 -> (B, C, H, W) f32."""
    B, C, H, W = x.shape
    HW = H * W
    x2 = x.astype(jnp.float32).reshape(B, C, HW)                 # lane-dense activations
    style3 = style.astype(jnp.float32).reshape(B, 1, STYLE_DIM)

    # Conv weights (Cout, Cin, 3, 3) -> tap-major (9, Cout, Cin); both convs packed.
    def taps(w):
        return jnp.transpose(w, (2, 3, 0, 1)).reshape(9, C, C)

    wconv = jnp.concatenate([taps(params["conv1_w"]), taps(params["conv2_w"])],
                            axis=0).astype(jnp.float32)          # (18, C, C)
    cb = jnp.concatenate([params["conv1_b"], params["conv2_b"]]
                         ).astype(jnp.float32).reshape(2 * C, 1)  # (2C, 1)
    wfc = jnp.concatenate([params["fc_beta1_w"], params["fc_gamma1_w"],
                           params["fc_beta2_w"], params["fc_gamma2_w"]],
                          axis=0).astype(jnp.float32)            # (4C, 100)
    bfc = jnp.concatenate([params["fc_beta1_b"], params["fc_gamma1_b"],
                           params["fc_beta2_b"], params["fc_gamma2_b"]]
                          ).astype(jnp.float32).reshape(4 * C, 1)  # (4C, 1)

    Bt = _pick_batch_block(B, C, HW)
    grid = (B // Bt,)

    # Explicit VMEM budget: double-buffered in/out activation tiles, packed
    # constants, and headroom for in-kernel intermediates (padded buffer, tap
    # patches, norm temporaries).  Capped well under v7x's 64 MiB.
    tile_b = Bt * C * HW * 4
    const_b = 4 * (wconv.size + cb.size + wfc.size + bfc.size)
    vmem_limit = int(min(48 << 20,
                         max(16 << 20,
                             4 * tile_b + 2 * const_b + 24 * tile_b + (2 << 20))))

    full = lambda a: pl.BlockSpec(a.shape, lambda g: (0,) * a.ndim)

    out = pl.pallas_call(
        _make_kernel(Bt, C, H, W),
        out_shape=jax.ShapeDtypeStruct((B, C, HW), jnp.float32),
        grid=grid,
        in_specs=[
            pl.BlockSpec((Bt, C, HW), lambda g: (g, 0, 0)),        # x (lane-dense)
            pl.BlockSpec((Bt, 1, STYLE_DIM), lambda g: (g, 0, 0)), # style
            full(wconv), full(cb), full(wfc), full(bfc),           # packed constants
        ],
        out_specs=pl.BlockSpec((Bt, C, HW), lambda g: (g, 0, 0)),
        compiler_params=pltpu.CompilerParams(
            dimension_semantics=("parallel",),
            vmem_limit_bytes=vmem_limit),
    )(x2, style3, wconv, cb, wfc, bfc)
    return out.reshape(B, C, H, W)


def reference_forward(x, style, params):
    """Pure-JAX reference matching the PyTorch module."""

    def linear(s, w, b):
        return jnp.dot(s, w.T, precision=lax.Precision.HIGHEST) + b

    beta1 = linear(style, params["fc_beta1_w"], params["fc_beta1_b"])
    gamma1 = linear(style, params["fc_gamma1_w"], params["fc_gamma1_b"])
    beta2 = linear(style, params["fc_beta2_w"], params["fc_beta2_b"])
    gamma2 = linear(style, params["fc_gamma2_w"], params["fc_gamma2_b"])

    def conv(a, w, b):
        p = jnp.pad(a, ((0, 0), (0, 0), (1, 1), (1, 1)), mode="reflect")
        y = lax.conv_general_dilated(p, w, (1, 1), "VALID",
                                     dimension_numbers=("NCHW", "OIHW", "NCHW"),
                                     precision=lax.Precision.HIGHEST)
        return y + b[None, :, None, None]

    def inorm(a):
        m = a.mean(axis=(2, 3), keepdims=True)
        v = ((a - m) ** 2).mean(axis=(2, 3), keepdims=True)
        return (a - m) / jnp.sqrt(v + EPS)

    y = inorm(conv(x, params["conv1_w"], params["conv1_b"]))
    y = gamma1[:, :, None, None] * y + beta1[:, :, None, None]
    y = jnp.maximum(y, 0.0)
    y = inorm(conv(y, params["conv2_w"], params["conv2_b"]))
    y = gamma2[:, :, None, None] * y + beta2[:, :, None, None]
    return x + y


def init_params(key, channels):
    ks = jax.random.split(key, 12)
    C = channels
    p = {
        "conv1_w": 0.1 * jax.random.normal(ks[0], (C, C, 3, 3), jnp.float32),
        "conv1_b": 0.1 * jax.random.normal(ks[1], (C,), jnp.float32),
        "conv2_w": 0.1 * jax.random.normal(ks[2], (C, C, 3, 3), jnp.float32),
        "conv2_b": 0.1 * jax.random.normal(ks[3], (C,), jnp.float32),
    }
    for i, name in enumerate(("beta1", "gamma1", "beta2", "gamma2")):
        p[f"fc_{name}_w"] = 0.1 * jax.random.normal(
            ks[4 + 2 * i], (C, STYLE_DIM), jnp.float32)
        p[f"fc_{name}_b"] = 0.1 * jax.random.normal(
            ks[5 + 2 * i], (C,), jnp.float32)
    return p


if __name__ == "__main__":
    B, C, H, W = 2, 4, 16, 16
    key = jax.random.PRNGKey(0)
    k_x, k_s, k_p = jax.random.split(key, 3)
    x = jax.random.normal(k_x, (B, C, H, W), jnp.float32)
    style = jax.random.normal(k_s, (B, STYLE_DIM), jnp.float32)
    params = init_params(k_p, C)

    out = jax.block_until_ready(residual_block_forward(x, style, params))
    ref = jax.block_until_ready(reference_forward(x, style, params))

    assert out.shape == (B, C, H, W)
    max_err = float(jnp.max(jnp.abs(out - ref)))
    assert jnp.allclose(out, ref, atol=2e-4, rtol=2e-4), max_err
    print("KERNEL_OK")
</pallas_src>

<mosaic_0001>
module attributes {stable_mosaic.version = 11 : i64} {
  func.func @kernel(%arg0: i32, %arg1: memref<1x4x256xf32, #tpu.memory_space<vmem>>, %arg2: memref<1x1x100xf32, #tpu.memory_space<vmem>>, %arg3: memref<18x4x4xf32, #tpu.memory_space<vmem>>, %arg4: memref<8x1xf32, #tpu.memory_space<vmem>>, %arg5: memref<16x100xf32, #tpu.memory_space<vmem>>, %arg6: memref<16x1xf32, #tpu.memory_space<vmem>>, %arg7: memref<1x4x256xf32, #tpu.memory_space<vmem>>) attributes {dimension_semantics = [#tpu.dimension_semantics<parallel>], iteration_bounds = array<i64: 2>, scalar_prefetch = 0 : i64, scratch_operands = 0 : i64, tpu.core_type = #tpu.core_type<tc>, window_params = [{transform_indices = @transform_0, window_bounds = array<i64: 1, 4, 256>}, {transform_indices = @transform_1, window_bounds = array<i64: 1, 1, 100>}, {pipeline_mode = #tpu.pipeline_mode<synchronous>, transform_indices = @transform_2, window_bounds = array<i64: 18, 4, 4>}, {pipeline_mode = #tpu.pipeline_mode<synchronous>, transform_indices = @transform_3, window_bounds = array<i64: 8, 1>}, {pipeline_mode = #tpu.pipeline_mode<synchronous>, transform_indices = @transform_4, window_bounds = array<i64: 16, 100>}, {pipeline_mode = #tpu.pipeline_mode<synchronous>, transform_indices = @transform_5, window_bounds = array<i64: 16, 1>}, {transform_indices = @transform_6, window_bounds = array<i64: 1, 4, 256>}]} {
    %c0 = arith.constant 0 : index
    %c0_0 = arith.constant 0 : index
    %c0_1 = arith.constant 0 : index
    %0 = vector.load %arg3[%c0, %c0_0, %c0_1] : memref<18x4x4xf32, #tpu.memory_space<vmem>>, vector<18x4x4xf32>
    %c0_2 = arith.constant 0 : index
    %c0_3 = arith.constant 0 : index
    %1 = vector.load %arg4[%c0_2, %c0_3] : memref<8x1xf32, #tpu.memory_space<vmem>>, vector<8x1xf32>
    %c0_4 = arith.constant 0 : index
    %c0_5 = arith.constant 0 : index
    %2 = vector.load %arg5[%c0_4, %c0_5] : memref<16x100xf32, #tpu.memory_space<vmem>>, vector<16x100xf32>
    %c0_6 = arith.constant 0 : index
    %c0_7 = arith.constant 0 : index
    %3 = vector.load %arg6[%c0_6, %c0_7] : memref<16x1xf32, #tpu.memory_space<vmem>>, vector<16x1xf32>
    %c0_8 = arith.constant 0 : index
    %c0_9 = arith.constant 0 : index
    %c0_10 = arith.constant 0 : index
    %4 = vector.load %arg1[%c0_8, %c0_9, %c0_10] : memref<1x4x256xf32, #tpu.memory_space<vmem>>, vector<1x4x256xf32>
    %5 = vector.shape_cast %4 : vector<1x4x256xf32> to vector<4x256xf32>
    %c0_11 = arith.constant 0 : index
    %c0_12 = arith.constant 0 : index
    %c0_13 = arith.constant 0 : index
    %6 = vector.load %arg2[%c0_11, %c0_12, %c0_13] : memref<1x1x100xf32, #tpu.memory_space<vmem>>, vector<1x1x100xf32>
    %7 = vector.shape_cast %6 : vector<1x1x100xf32> to vector<1x100xf32>
    %8 = vector.broadcast %7 : vector<1x100xf32> to vector<16x100xf32>
    %9 = arith.mulf %2, %8 : vector<16x100xf32>
    %cst = arith.constant dense<0.000000e+00> : vector<16xf32>
    %10 = vector.multi_reduction <add>, %9, %cst [1] : vector<16x100xf32> to vector<16xf32>
    %11 = vector.shape_cast %10 : vector<16xf32> to vector<16x1xf32>
    %12 = arith.addf %11, %3 : vector<16x1xf32>
    %13 = vector.extract_strided_slice %12 {offsets = [0, 0], sizes = [4, 1], strides = [1, 1]} : vector<16x1xf32> to vector<4x1xf32>
    %14 = vector.extract_strided_slice %12 {offsets = [4, 0], sizes = [4, 1], strides = [1, 1]} : vector<16x1xf32> to vector<4x1xf32>
    %15 = vector.extract_strided_slice %12 {offsets = [8, 0], sizes = [4, 1], strides = [1, 1]} : vector<16x1xf32> to vector<4x1xf32>
    %16 = vector.extract_strided_slice %12 {offsets = [12, 0], sizes = [4, 1], strides = [1, 1]} : vector<16x1xf32> to vector<4x1xf32>
    %17 = vector.extract_strided_slice %1 {offsets = [0, 0], sizes = [4, 1], strides = [1, 1]} : vector<8x1xf32> to vector<4x1xf32>
    %18 = vector.shape_cast %5 : vector<4x256xf32> to vector<4x16x16xf32>
    %19 = vector.extract_strided_slice %18 {offsets = [0, 1, 0], sizes = [4, 1, 16], strides = [1, 1, 1]} : vector<4x16x16xf32> to vector<4x1x16xf32>
    %20 = vector.extract_strided_slice %18 {offsets = [0, 14, 0], sizes = [4, 1, 16], strides = [1, 1, 1]} : vector<4x16x16xf32> to vector<4x1x16xf32>
    %21 = tpu.concatenate %19, %18, %20 in 1 : vector<4x1x16xf32>, vector<4x16x16xf32>, vector<4x1x16xf32> -> vector<4x18x16xf32>
    %22 = vector.extract_strided_slice %21 {offsets = [0, 0, 1], sizes = [4, 18, 1], strides = [1, 1, 1]} : vector<4x18x16xf32> to vector<4x18x1xf32>
    %23 = vector.extract_strided_slice %21 {offsets = [0, 0, 14], sizes = [4, 18, 1], strides = [1, 1, 1]} : vector<4x18x16xf32> to vector<4x18x1xf32>
    %24 = tpu.concatenate %22, %21, %23 in 2 : vector<4x18x1xf32>, vector<4x18x16xf32>, vector<4x18x1xf32> -> vector<4x18x18xf32>
    %cst_14 = arith.constant 0.000000e+00 : f32
    %25 = vector.broadcast %cst_14 : f32 to vector<4x256xf32>
    %26 = vector.extract_strided_slice %24 {offsets = [0, 0, 0], sizes = [4, 16, 16], strides = [1, 1, 1]} : vector<4x18x18xf32> to vector<4x16x16xf32>
    %27 = vector.shape_cast %26 : vector<4x16x16xf32> to vector<4x256xf32>
    %28 = vector.extract_strided_slice %0 {offsets = [0, 0, 0], sizes = [1, 4, 4], strides = [1, 1, 1]} : vector<18x4x4xf32> to vector<1x4x4xf32>
    %29 = vector.shape_cast %28 : vector<1x4x4xf32> to vector<4x4xf32>
    %cst_15 = arith.constant dense<0.000000e+00> : vector<4x256xf32>
    %30 = tpu.matmul %29, %27, %cst_15 {dimension_numbers = #tpu.dot_dimension_numbers<[1], [0], [0], [1], [0, 0, 1, 1], [], []>, precision = #tpu.contract_precision<fp32>} : vector<4x4xf32>, vector<4x256xf32>, vector<4x256xf32> -> vector<4x256xf32>
    %31 = arith.addf %25, %30 : vector<4x256xf32>
    %32 = vector.extract_strided_slice %24 {offsets = [0, 0, 1], sizes = [4, 16, 16], strides = [1, 1, 1]} : vector<4x18x18xf32> to vector<4x16x16xf32>
    %33 = vector.shape_cast %32 : vector<4x16x16xf32> to vector<4x256xf32>
    %34 = vector.extract_strided_slice %0 {offsets = [1, 0, 0], sizes = [1, 4, 4], strides = [1, 1, 1]} : vector<18x4x4xf32> to vector<1x4x4xf32>
    %35 = vector.shape_cast %34 : vector<1x4x4xf32> to vector<4x4xf32>
    %cst_16 = arith.constant dense<0.000000e+00> : vector<4x256xf32>
    %36 = tpu.matmul %35, %33, %cst_16 {dimension_numbers = #tpu.dot_dimension_numbers<[1], [0], [0], [1], [0, 0, 1, 1], [], []>, precision = #tpu.contract_precision<fp32>} : vector<4x4xf32>, vector<4x256xf32>, vector<4x256xf32> -> vector<4x256xf32>
    %37 = arith.addf %31, %36 : vector<4x256xf32>
    %38 = vector.extract_strided_slice %24 {offsets = [0, 0, 2], sizes = [4, 16, 16], strides = [1, 1, 1]} : vector<4x18x18xf32> to vector<4x16x16xf32>
    %39 = vector.shape_cast %38 : vector<4x16x16xf32> to vector<4x256xf32>
    %40 = vector.extract_strided_slice %0 {offsets = [2, 0, 0], sizes = [1, 4, 4], strides = [1, 1, 1]} : vector<18x4x4xf32> to vector<1x4x4xf32>
    %41 = vector.shape_cast %40 : vector<1x4x4xf32> to vector<4x4xf32>
    %cst_17 = arith.constant dense<0.000000e+00> : vector<4x256xf32>
    %42 = tpu.matmul %41, %39, %cst_17 {dimension_numbers = #tpu.dot_dimension_numbers<[1], [0], [0], [1], [0, 0, 1, 1], [], []>, precision = #tpu.contract_precision<fp32>} : vector<4x4xf32>, vector<4x256xf32>, vector<4x256xf32> -> vector<4x256xf32>
    %43 = arith.addf %37, %42 : vector<4x256xf32>
    %44 = vector.extract_strided_slice %24 {offsets = [0, 1, 0], sizes = [4, 16, 16], strides = [1, 1, 1]} : vector<4x18x18xf32> to vector<4x16x16xf32>
    %45 = vector.shape_cast %44 : vector<4x16x16xf32> to vector<4x256xf32>
    %46 = vector.extract_strided_slice %0 {offsets = [3, 0, 0], sizes = [1, 4, 4], strides = [1, 1, 1]} : vector<18x4x4xf32> to vector<1x4x4xf32>
    %47 = vector.shape_cast %46 : vector<1x4x4xf32> to vector<4x4xf32>
    %cst_18 = arith.constant dense<0.000000e+00> : vector<4x256xf32>
    %48 = tpu.matmul %47, %45, %cst_18 {dimension_numbers = #tpu.dot_dimension_numbers<[1], [0], [0], [1], [0, 0, 1, 1], [], []>, precision = #tpu.contract_precision<fp32>} : vector<4x4xf32>, vector<4x256xf32>, vector<4x256xf32> -> vector<4x256xf32>
    %49 = arith.addf %43, %48 : vector<4x256xf32>
    %50 = vector.extract_strided_slice %24 {offsets = [0, 1, 1], sizes = [4, 16, 16], strides = [1, 1, 1]} : vector<4x18x18xf32> to vector<4x16x16xf32>
    %51 = vector.shape_cast %50 : vector<4x16x16xf32> to vector<4x256xf32>
    %52 = vector.extract_strided_slice %0 {offsets = [4, 0, 0], sizes = [1, 4, 4], strides = [1, 1, 1]} : vector<18x4x4xf32> to vector<1x4x4xf32>
    %53 = vector.shape_cast %52 : vector<1x4x4xf32> to vector<4x4xf32>
    %cst_19 = arith.constant dense<0.000000e+00> : vector<4x256xf32>
    %54 = tpu.matmul %53, %51, %cst_19 {dimension_numbers = #tpu.dot_dimension_numbers<[1], [0], [0], [1], [0, 0, 1, 1], [], []>, precision = #tpu.contract_precision<fp32>} : vector<4x4xf32>, vector<4x256xf32>, vector<4x256xf32> -> vector<4x256xf32>
    %55 = arith.addf %49, %54 : vector<4x256xf32>
    %56 = vector.extract_strided_slice %24 {offsets = [0, 1, 2], sizes = [4, 16, 16], strides = [1, 1, 1]} : vector<4x18x18xf32> to vector<4x16x16xf32>
    %57 = vector.shape_cast %56 : vector<4x16x16xf32> to vector<4x256xf32>
    %58 = vector.extract_strided_slice %0 {offsets = [5, 0, 0], sizes = [1, 4, 4], strides = [1, 1, 1]} : vector<18x4x4xf32> to vector<1x4x4xf32>
    %59 = vector.shape_cast %58 : vector<1x4x4xf32> to vector<4x4xf32>
    %cst_20 = arith.constant dense<0.000000e+00> : vector<4x256xf32>
    %60 = tpu.matmul %59, %57, %cst_20 {dimension_numbers = #tpu.dot_dimension_numbers<[1], [0], [0], [1], [0, 0, 1, 1], [], []>, precision = #tpu.contract_precision<fp32>} : vector<4x4xf32>, vector<4x256xf32>, vector<4x256xf32> -> vector<4x256xf32>
    %61 = arith.addf %55, %60 : vector<4x256xf32>
    %62 = vector.extract_strided_slice %24 {offsets = [0, 2, 0], sizes = [4, 16, 16], strides = [1, 1, 1]} : vector<4x18x18xf32> to vector<4x16x16xf32>
    %63 = vector.shape_cast %62 : vector<4x16x16xf32> to vector<4x256xf32>
    %64 = vector.extract_strided_slice %0 {offsets = [6, 0, 0], sizes = [1, 4, 4], strides = [1, 1, 1]} : vector<18x4x4xf32> to vector<1x4x4xf32>
    %65 = vector.shape_cast %64 : vector<1x4x4xf32> to vector<4x4xf32>
    %cst_21 = arith.constant dense<0.000000e+00> : vector<4x256xf32>
    %66 = tpu.matmul %65, %63, %cst_21 {dimension_numbers = #tpu.dot_dimension_numbers<[1], [0], [0], [1], [0, 0, 1, 1], [], []>, precision = #tpu.contract_precision<fp32>} : vector<4x4xf32>, vector<4x256xf32>, vector<4x256xf32> -> vector<4x256xf32>
    %67 = arith.addf %61, %66 : vector<4x256xf32>
    %68 = vector.extract_strided_slice %24 {offsets = [0, 2, 1], sizes = [4, 16, 16], strides = [1, 1, 1]} : vector<4x18x18xf32> to vector<4x16x16xf32>
    %69 = vector.shape_cast %68 : vector<4x16x16xf32> to vector<4x256xf32>
    %70 = vector.extract_strided_slice %0 {offsets = [7, 0, 0], sizes = [1, 4, 4], strides = [1, 1, 1]} : vector<18x4x4xf32> to vector<1x4x4xf32>
    %71 = vector.shape_cast %70 : vector<1x4x4xf32> to vector<4x4xf32>
    %cst_22 = arith.constant dense<0.000000e+00> : vector<4x256xf32>
    %72 = tpu.matmul %71, %69, %cst_22 {dimension_numbers = #tpu.dot_dimension_numbers<[1], [0], [0], [1], [0, 0, 1, 1], [], []>, precision = #tpu.contract_precision<fp32>} : vector<4x4xf32>, vector<4x256xf32>, vector<4x256xf32> -> vector<4x256xf32>
    %73 = arith.addf %67, %72 : vector<4x256xf32>
    %74 = vector.extract_strided_slice %24 {offsets = [0, 2, 2], sizes = [4, 16, 16], strides = [1, 1, 1]} : vector<4x18x18xf32> to vector<4x16x16xf32>
    %75 = vector.shape_cast %74 : vector<4x16x16xf32> to vector<4x256xf32>
    %76 = vector.extract_strided_slice %0 {offsets = [8, 0, 0], sizes = [1, 4, 4], strides = [1, 1, 1]} : vector<18x4x4xf32> to vector<1x4x4xf32>
    %77 = vector.shape_cast %76 : vector<1x4x4xf32> to vector<4x4xf32>
    %cst_23 = arith.constant dense<0.000000e+00> : vector<4x256xf32>
    %78 = tpu.matmul %77, %75, %cst_23 {dimension_numbers = #tpu.dot_dimension_numbers<[1], [0], [0], [1], [0, 0, 1, 1], [], []>, precision = #tpu.contract_precision<fp32>} : vector<4x4xf32>, vector<4x256xf32>, vector<4x256xf32> -> vector<4x256xf32>
    %79 = arith.addf %73, %78 : vector<4x256xf32>
    %80 = vector.broadcast %17 : vector<4x1xf32> to vector<4x256xf32>
    %81 = arith.addf %79, %80 : vector<4x256xf32>
    %cst_24 = arith.constant dense<0.000000e+00> : vector<4xf32>
    %82 = vector.multi_reduction <add>, %81, %cst_24 [1] : vector<4x256xf32> to vector<4xf32>
    %83 = vector.shape_cast %82 : vector<4xf32> to vector<4x1xf32>
    %cst_25 = arith.constant 2.560000e+02 : f32
    %84 = vector.broadcast %cst_25 : f32 to vector<4x1xf32>
    %85 = arith.divf %83, %84 : vector<4x1xf32>
    %86 = vector.broadcast %85 : vector<4x1xf32> to vector<4x256xf32>
    %87 = arith.subf %81, %86 : vector<4x256xf32>
    %88 = arith.mulf %87, %87 : vector<4x256xf32>
    %cst_26 = arith.constant dense<0.000000e+00> : vector<4xf32>
    %89 = vector.multi_reduction <add>, %88, %cst_26 [1] : vector<4x256xf32> to vector<4xf32>
    %90 = vector.shape_cast %89 : vector<4xf32> to vector<4x1xf32>
    %cst_27 = arith.constant 2.560000e+02 : f32
    %91 = vector.broadcast %cst_27 : f32 to vector<4x1xf32>
    %92 = arith.divf %90, %91 : vector<4x1xf32>
    %cst_28 = arith.constant 9.99999974E-6 : f32
    %93 = vector.broadcast %cst_28 : f32 to vector<4x1xf32>
    %94 = arith.addf %92, %93 : vector<4x1xf32>
    %95 = math.rsqrt %94 : vector<4x1xf32>
    %96 = vector.broadcast %95 : vector<4x1xf32> to vector<4x256xf32>
    %97 = arith.mulf %87, %96 : vector<4x256xf32>
    %98 = vector.broadcast %14 : vector<4x1xf32> to vector<4x256xf32>
    %99 = arith.mulf %98, %97 : vector<4x256xf32>
    %100 = vector.broadcast %13 : vector<4x1xf32> to vector<4x256xf32>
    %101 = arith.addf %99, %100 : vector<4x256xf32>
    %cst_29 = arith.constant 0.000000e+00 : f32
    %102 = vector.broadcast %cst_29 : f32 to vector<4x256xf32>
    %103 = arith.maximumf %101, %102 : vector<4x256xf32>
    %104 = vector.extract_strided_slice %1 {offsets = [4, 0], sizes = [4, 1], strides = [1, 1]} : vector<8x1xf32> to vector<4x1xf32>
    %105 = vector.shape_cast %103 : vector<4x256xf32> to vector<4x16x16xf32>
    %106 = vector.extract_strided_slice %105 {offsets = [0, 1, 0], sizes = [4, 1, 16], strides = [1, 1, 1]} : vector<4x16x16xf32> to vector<4x1x16xf32>
    %107 = vector.extract_strided_slice %105 {offsets = [0, 14, 0], sizes = [4, 1, 16], strides = [1, 1, 1]} : vector<4x16x16xf32> to vector<4x1x16xf32>
    %108 = tpu.concatenate %106, %105, %107 in 1 : vector<4x1x16xf32>, vector<4x16x16xf32>, vector<4x1x16xf32> -> vector<4x18x16xf32>
    %109 = vector.extract_strided_slice %108 {offsets = [0, 0, 1], sizes = [4, 18, 1], strides = [1, 1, 1]} : vector<4x18x16xf32> to vector<4x18x1xf32>
    %110 = vector.extract_strided_slice %108 {offsets = [0, 0, 14], sizes = [4, 18, 1], strides = [1, 1, 1]} : vector<4x18x16xf32> to vector<4x18x1xf32>
    %111 = tpu.concatenate %109, %108, %110 in 2 : vector<4x18x1xf32>, vector<4x18x16xf32>, vector<4x18x1xf32> -> vector<4x18x18xf32>
    %cst_30 = arith.constant 0.000000e+00 : f32
    %112 = vector.broadcast %cst_30 : f32 to vector<4x256xf32>
    %113 = vector.extract_strided_slice %111 {offsets = [0, 0, 0], sizes = [4, 16, 16], strides = [1, 1, 1]} : vector<4x18x18xf32> to vector<4x16x16xf32>
    %114 = vector.shape_cast %113 : vector<4x16x16xf32> to vector<4x256xf32>
    %115 = vector.extract_strided_slice %0 {offsets = [9, 0, 0], sizes = [1, 4, 4], strides = [1, 1, 1]} : vector<18x4x4xf32> to vector<1x4x4xf32>
    %116 = vector.shape_cast %115 : vector<1x4x4xf32> to vector<4x4xf32>
    %cst_31 = arith.constant dense<0.000000e+00> : vector<4x256xf32>
    %117 = tpu.matmul %116, %114, %cst_31 {dimension_numbers = #tpu.dot_dimension_numbers<[1], [0], [0], [1], [0, 0, 1, 1], [], []>, precision = #tpu.contract_precision<fp32>} : vector<4x4xf32>, vector<4x256xf32>, vector<4x256xf32> -> vector<4x256xf32>
    %118 = arith.addf %112, %117 : vector<4x256xf32>
    %119 = vector.extract_strided_slice %111 {offsets = [0, 0, 1], sizes = [4, 16, 16], strides = [1, 1, 1]} : vector<4x18x18xf32> to vector<4x16x16xf32>
    %120 = vector.shape_cast %119 : vector<4x16x16xf32> to vector<4x256xf32>
    %121 = vector.extract_strided_slice %0 {offsets = [10, 0, 0], sizes = [1, 4, 4], strides = [1, 1, 1]} : vector<18x4x4xf32> to vector<1x4x4xf32>
    %122 = vector.shape_cast %121 : vector<1x4x4xf32> to vector<4x4xf32>
    %cst_32 = arith.constant dense<0.000000e+00> : vector<4x256xf32>
    %123 = tpu.matmul %122, %120, %cst_32 {dimension_numbers = #tpu.dot_dimension_numbers<[1], [0], [0], [1], [0, 0, 1, 1], [], []>, precision = #tpu.contract_precision<fp32>} : vector<4x4xf32>, vector<4x256xf32>, vector<4x256xf32> -> vector<4x256xf32>
    %124 = arith.addf %118, %123 : vector<4x256xf32>
    %125 = vector.extract_strided_slice %111 {offsets = [0, 0, 2], sizes = [4, 16, 16], strides = [1, 1, 1]} : vector<4x18x18xf32> to vector<4x16x16xf32>
    %126 = vector.shape_cast %125 : vector<4x16x16xf32> to vector<4x256xf32>
    %127 = vector.extract_strided_slice %0 {offsets = [11, 0, 0], sizes = [1, 4, 4], strides = [1, 1, 1]} : vector<18x4x4xf32> to vector<1x4x4xf32>
    %128 = vector.shape_cast %127 : vector<1x4x4xf32> to vector<4x4xf32>
    %cst_33 = arith.constant dense<0.000000e+00> : vector<4x256xf32>
    %129 = tpu.matmul %128, %126, %cst_33 {dimension_numbers = #tpu.dot_dimension_numbers<[1], [0], [0], [1], [0, 0, 1, 1], [], []>, precision = #tpu.contract_precision<fp32>} : vector<4x4xf32>, vector<4x256xf32>, vector<4x256xf32> -> vector<4x256xf32>
    %130 = arith.addf %124, %129 : vector<4x256xf32>
    %131 = vector.extract_strided_slice %111 {offsets = [0, 1, 0], sizes = [4, 16, 16], strides = [1, 1, 1]} : vector<4x18x18xf32> to vector<4x16x16xf32>
    %132 = vector.shape_cast %131 : vector<4x16x16xf32> to vector<4x256xf32>
    %133 = vector.extract_strided_slice %0 {offsets = [12, 0, 0], sizes = [1, 4, 4], strides = [1, 1, 1]} : vector<18x4x4xf32> to vector<1x4x4xf32>
    %134 = vector.shape_cast %133 : vector<1x4x4xf32> to vector<4x4xf32>
    %cst_34 = arith.constant dense<0.000000e+00> : vector<4x256xf32>
    %135 = tpu.matmul %134, %132, %cst_34 {dimension_numbers = #tpu.dot_dimension_numbers<[1], [0], [0], [1], [0, 0, 1, 1], [], []>, precision = #tpu.contract_precision<fp32>} : vector<4x4xf32>, vector<4x256xf32>, vector<4x256xf32> -> vector<4x256xf32>
    %136 = arith.addf %130, %135 : vector<4x256xf32>
    %137 = vector.extract_strided_slice %111 {offsets = [0, 1, 1], sizes = [4, 16, 16], strides = [1, 1, 1]} : vector<4x18x18xf32> to vector<4x16x16xf32>
    %138 = vector.shape_cast %137 : vector<4x16x16xf32> to vector<4x256xf32>
    %139 = vector.extract_strided_slice %0 {offsets = [13, 0, 0], sizes = [1, 4, 4], strides = [1, 1, 1]} : vector<18x4x4xf32> to vector<1x4x4xf32>
    %140 = vector.shape_cast %139 : vector<1x4x4xf32> to vector<4x4xf32>
    %cst_35 = arith.constant dense<0.000000e+00> : vector<4x256xf32>
    %141 = tpu.matmul %140, %138, %cst_35 {dimension_numbers = #tpu.dot_dimension_numbers<[1], [0], [0], [1], [0, 0, 1, 1], [], []>, precision = #tpu.contract_precision<fp32>} : vector<4x4xf32>, vector<4x256xf32>, vector<4x256xf32> -> vector<4x256xf32>
    %142 = arith.addf %136, %141 : vector<4x256xf32>
    %143 = vector.extract_strided_slice %111 {offsets = [0, 1, 2], sizes = [4, 16, 16], strides = [1, 1, 1]} : vector<4x18x18xf32> to vector<4x16x16xf32>
    %144 = vector.shape_cast %143 : vector<4x16x16xf32> to vector<4x256xf32>
    %145 = vector.extract_strided_slice %0 {offsets = [14, 0, 0], sizes = [1, 4, 4], strides = [1, 1, 1]} : vector<18x4x4xf32> to vector<1x4x4xf32>
    %146 = vector.shape_cast %145 : vector<1x4x4xf32> to vector<4x4xf32>
    %cst_36 = arith.constant dense<0.000000e+00> : vector<4x256xf32>
    %147 = tpu.matmul %146, %144, %cst_36 {dimension_numbers = #tpu.dot_dimension_numbers<[1], [0], [0], [1], [0, 0, 1, 1], [], []>, precision = #tpu.contract_precision<fp32>} : vector<4x4xf32>, vector<4x256xf32>, vector<4x256xf32> -> vector<4x256xf32>
    %148 = arith.addf %142, %147 : vector<4x256xf32>
    %149 = vector.extract_strided_slice %111 {offsets = [0, 2, 0], sizes = [4, 16, 16], strides = [1, 1, 1]} : vector<4x18x18xf32> to vector<4x16x16xf32>
    %150 = vector.shape_cast %149 : vector<4x16x16xf32> to vector<4x256xf32>
    %151 = vector.extract_strided_slice %0 {offsets = [15, 0, 0], sizes = [1, 4, 4], strides = [1, 1, 1]} : vector<18x4x4xf32> to vector<1x4x4xf32>
    %152 = vector.shape_cast %151 : vector<1x4x4xf32> to vector<4x4xf32>
    %cst_37 = arith.constant dense<0.000000e+00> : vector<4x256xf32>
    %153 = tpu.matmul %152, %150, %cst_37 {dimension_numbers = #tpu.dot_dimension_numbers<[1], [0], [0], [1], [0, 0, 1, 1], [], []>, precision = #tpu.contract_precision<fp32>} : vector<4x4xf32>, vector<4x256xf32>, vector<4x256xf32> -> vector<4x256xf32>
    %154 = arith.addf %148, %153 : vector<4x256xf32>
    %155 = vector.extract_strided_slice %111 {offsets = [0, 2, 1], sizes = [4, 16, 16], strides = [1, 1, 1]} : vector<4x18x18xf32> to vector<4x16x16xf32>
    %156 = vector.shape_cast %155 : vector<4x16x16xf32> to vector<4x256xf32>
    %157 = vector.extract_strided_slice %0 {offsets = [16, 0, 0], sizes = [1, 4, 4], strides = [1, 1, 1]} : vector<18x4x4xf32> to vector<1x4x4xf32>
    %158 = vector.shape_cast %157 : vector<1x4x4xf32> to vector<4x4xf32>
    %cst_38 = arith.constant dense<0.000000e+00> : vector<4x256xf32>
    %159 = tpu.matmul %158, %156, %cst_38 {dimension_numbers = #tpu.dot_dimension_numbers<[1], [0], [0], [1], [0, 0, 1, 1], [], []>, precision = #tpu.contract_precision<fp32>} : vector<4x4xf32>, vector<4x256xf32>, vector<4x256xf32> -> vector<4x256xf32>
    %160 = arith.addf %154, %159 : vector<4x256xf32>
    %161 = vector.extract_strided_slice %111 {offsets = [0, 2, 2], sizes = [4, 16, 16], strides = [1, 1, 1]} : vector<4x18x18xf32> to vector<4x16x16xf32>
    %162 = vector.shape_cast %161 : vector<4x16x16xf32> to vector<4x256xf32>
    %163 = vector.extract_strided_slice %0 {offsets = [17, 0, 0], sizes = [1, 4, 4], strides = [1, 1, 1]} : vector<18x4x4xf32> to vector<1x4x4xf32>
    %164 = vector.shape_cast %163 : vector<1x4x4xf32> to vector<4x4xf32>
    %cst_39 = arith.constant dense<0.000000e+00> : vector<4x256xf32>
    %165 = tpu.matmul %164, %162, %cst_39 {dimension_numbers = #tpu.dot_dimension_numbers<[1], [0], [0], [1], [0, 0, 1, 1], [], []>, precision = #tpu.contract_precision<fp32>} : vector<4x4xf32>, vector<4x256xf32>, vector<4x256xf32> -> vector<4x256xf32>
    %166 = arith.addf %160, %165 : vector<4x256xf32>
    %167 = vector.broadcast %104 : vector<4x1xf32> to vector<4x256xf32>
    %168 = arith.addf %166, %167 : vector<4x256xf32>
    %cst_40 = arith.constant dense<0.000000e+00> : vector<4xf32>
    %169 = vector.multi_reduction <add>, %168, %cst_40 [1] : vector<4x256xf32> to vector<4xf32>
    %170 = vector.shape_cast %169 : vector<4xf32> to vector<4x1xf32>
    %cst_41 = arith.constant 2.560000e+02 : f32
    %171 = vector.broadcast %cst_41 : f32 to vector<4x1xf32>
    %172 = arith.divf %170, %171 : vector<4x1xf32>
    %173 = vector.broadcast %172 : vector<4x1xf32> to vector<4x256xf32>
    %174 = arith.subf %168, %173 : vector<4x256xf32>
    %175 = arith.mulf %174, %174 : vector<4x256xf32>
    %cst_42 = arith.constant dense<0.000000e+00> : vector<4xf32>
    %176 = vector.multi_reduction <add>, %175, %cst_42 [1] : vector<4x256xf32> to vector<4xf32>
    %177 = vector.shape_cast %176 : vector<4xf32> to vector<4x1xf32>
    %cst_43 = arith.constant 2.560000e+02 : f32
    %178 = vector.broadcast %cst_43 : f32 to vector<4x1xf32>
    %179 = arith.divf %177, %178 : vector<4x1xf32>
    %cst_44 = arith.constant 9.99999974E-6 : f32
    %180 = vector.broadcast %cst_44 : f32 to vector<4x1xf32>
    %181 = arith.addf %179, %180 : vector<4x1xf32>
    %182 = math.rsqrt %181 : vector<4x1xf32>
    %183 = vector.broadcast %182 : vector<4x1xf32> to vector<4x256xf32>
    %184 = arith.mulf %174, %183 : vector<4x256xf32>
    %185 = vector.broadcast %16 : vector<4x1xf32> to vector<4x256xf32>
    %186 = arith.mulf %185, %184 : vector<4x256xf32>
    %187 = vector.broadcast %15 : vector<4x1xf32> to vector<4x256xf32>
    %188 = arith.addf %186, %187 : vector<4x256xf32>
    %189 = arith.addf %5, %188 : vector<4x256xf32>
    %c0_45 = arith.constant 0 : index
    %c0_46 = arith.constant 0 : index
    %c0_47 = arith.constant 0 : index
    %190 = vector.load %arg7[%c0_45, %c0_46, %c0_47] : memref<1x4x256xf32, #tpu.memory_space<vmem>>, vector<1x4x256xf32>
    %191 = vector.shape_cast %190 : vector<1x4x256xf32> to vector<4x256xf32>
    %192 = vector.shape_cast %189 : vector<4x256xf32> to vector<1x4x256xf32>
    tpu.vector_store %arg7[%c0_45, %c0_46, %c0_47], %192 {strides = array<i32>} : memref<1x4x256xf32, #tpu.memory_space<vmem>>, vector<1x4x256xf32>,
    return
  }
  func.func @transform_0(%arg0: i32) -> (i32, i32, i32) {
    %c0_i32 = arith.constant 0 : i32
    %c0_i32_0 = arith.constant 0 : i32
    %c0_i32_1 = arith.constant 0 : i32
    return %arg0, %c0_i32, %c0_i32_0 : i32, i32, i32
  }
  func.func @transform_1(%arg0: i32) -> (i32, i32, i32) {
    %c0_i32 = arith.constant 0 : i32
    %c0_i32_0 = arith.constant 0 : i32
    %c0_i32_1 = arith.constant 0 : i32
    return %arg0, %c0_i32, %c0_i32_0 : i32, i32, i32
  }
  func.func @transform_2(%arg0: i32) -> (i32, i32, i32) {
    %c0_i32 = arith.constant 0 : i32
    %c0_i32_0 = arith.constant 0 : i32
    %c0_i32_1 = arith.constant 0 : i32
    %c0_i32_2 = arith.constant 0 : i32
    return %c0_i32, %c0_i32_0, %c0_i32_1 : i32, i32, i32
  }
  func.func @transform_3(%arg0: i32) -> (i32, i32) {
    %c0_i32 = arith.constant 0 : i32
    %c0_i32_0 = arith.constant 0 : i32
    %c0_i32_1 = arith.constant 0 : i32
    return %c0_i32, %c0_i32_0 : i32, i32
  }
  func.func @transform_4(%arg0: i32) -> (i32, i32) {
    %c0_i32 = arith.constant 0 : i32
    %c0_i32_0 = arith.constant 0 : i32
    %c0_i32_1 = arith.constant 0 : i32
    return %c0_i32, %c0_i32_0 : i32, i32
  }
  func.func @transform_5(%arg0: i32) -> (i32, i32) {
    %c0_i32 = arith.constant 0 : i32
    %c0_i32_0 = arith.constant 0 : i32
    %c0_i32_1 = arith.constant 0 : i32
    return %c0_i32, %c0_i32_0 : i32, i32
  }
  func.func @transform_6(%arg0: i32) -> (i32, i32, i32) {
    %c0_i32 = arith.constant 0 : i32
    %c0_i32_0 = arith.constant 0 : i32
    %c0_i32_1 = arith.constant 0 : i32
    return %arg0, %c0_i32, %c0_i32_0 : i32, i32, i32
  }
}

</mosaic_0001>

<bundles_post_ra>
// kernel: tpu_custom_call.1
= control target key start
LH: loop header
LB: loop body
LE: loop exit
PB: predicated region body
PF: predicated region fallthrough
CT: control target
= control target key end

     0   :  { %11 = vsyncpa [#allocation3], 0  ;;  %s17382_s0 = inlined_call_operand.vmem [shape: f32[2,4,256], index: 0, kind: input, shape index: {}]   ;;  %s17383_s1 = inlined_call_operand.vmem [shape: f32[2,1,100], index: 1, kind: input, shape index: {}]   ;;  %s17384_s2 = inlined_call_operand.vmem [shape: f32[18,4,4], index: 2, kind: input, shape index: {}]   ;;  %s17385_s3 = inlined_call_operand.vmem [shape: f32[8,1], index: 3, kind: input, shape index: {}]   ;;  %s17386_s4 = inlined_call_operand.vmem [shape: f32[16,100], index: 4, kind: input, shape index: {}]   ;;  %s17387_s5 = inlined_call_operand.vmem [shape: f32[16,1], index: 5, kind: input, shape index: {}]   ;;  %s17388_s6 = inlined_call_operand.hbm [shape: f32[2,4,256], index: 6, kind: output, shape index: {}]  }
   0x1   :  { %13 = vsyncpa [#allocation3 + $0x1], 0  ;;  %s14393_s21 = smov 0   ;;  %s14395_s22 = smov 0  }
   0x2   :  { %s14397_s23 = smov 0   ;;  %s14399_s24 = smov 0  }
   0x3 LB: > { %s14414_s25 = sadd.s32 4294967295, %s14340_s24   ;;  %s13985_s26 = sadd.s32 4294967294, %s14340_s24   ;;  %s14340_s24 = sphi %s14399_s24, %s17458_s24   ;;  %s14336_s23 = sphi %s14397_s23, %s17457_s23   ;;  %s14332_s22 = sphi %s14395_s22, %s17456_s22   ;;  %s14328_s21 = sphi %s14393_s21, %s17455_s21  }
   0x4   : > { %s14418_s27 = sadd.s32 1, %s14340_s24   ;;  %s162_s28 = sadd.s32 1, %s14336_s23 }
   0x5   : > { %s159_s29 = ssub.s32 %s14340_s24, %s14418_s27  ;;  %p172_p0 = scmp.ne.s32.totalorder %s14336_s23, %s14332_s22 }
   0x6   : > { %p160_p1 = scmp.eq.s32.totalorder %s159_s29, 0  ;;  %p173_p2 = scmp.eq.s32.totalorder %s14414_s25, 1 }
   0x7   : > { %p178_p3 = scmp.ne.s32.totalorder %s14332_s22, %s14328_s21  ;;  %p179_p4 = scmp.eq.s32.totalorder %s13985_s26, 1 }
   0x8   : > { %s14429_s30 = scalar_select %p160_p1, %s14336_s23, %s162_s28  }
   0x9   : > { %p14431_p5 = por %p173_p2, %p172_p0  ;;  %p14435_p6 = por %p179_p4, %p178_p3 }
   0xa   : > { %p13988_p7 = scmp.ge.s32.totalorder %s14340_s24, 1  ;;  %p223_p8 = scmp.lt.s32.totalorder %s14340_s24, 3 }
   0xc   : > { %p224_p9 = pnand %p13988_p7, %p223_p8 }
   0xd   : > { %p256_p10 = scmp.lt.s32.totalorder (!%p224_p9), %s14414_s25, 1  ;;  %s14342_s14 = smov (!%p224_p9), 80   ;;  %v14344_v1 = vmov (!%p224_p9), 0.0   ;;  %v14350_v2 = vmov (!%p224_p9), 1983009808   ;;  %v348_v4 = vlaneseq (!%p224_p9)  ;;  %vm524_vm0 = vcmask (!%p224_p9), 1040384  }
   0xe   : > { %227 = sbr.rel (%p224_p9) target bundleno = 3532 (0xdcc), region = 44  ;;  %s14343_s15 = smov (!%p224_p9), 112   ;;  %1243 = vmatprep.mubr.f32.mxu0 (!%p224_p9), %v14344_v1  ;;  %8028 = vmatprep.mubr.f32.mxu1 (!%p224_p9), %v14344_v1  ;;  %v346_v3 = vunpack.c.l.s4 (!%p224_p9), %v14350_v2  ;;  %v14351_v9 = vmov (!%p224_p9), 1934713408   ;;  %vm689_vm1 = vcmask (!%p224_p9), 7168   ;;  %vm702_vm2 = vcmask (!%p224_p9), 138240  }
   0xf   : > { %s14345_s16 = smov (!%p224_p9), 64   ;;  %s14346_s17 = smov (!%p224_p9), 96   ;;  %v349_v7 = vshrl.u32 (!%p224_p9), %v348_v4, 7  ;;  %v363_v10 = vunpack.c.l.s4 (!%p224_p9), %v14351_v9  ;;  %vm2826_vm3 = vcmask (!%p224_p9), 1046528   ;;  %vm4949_vm4 = vcmask (!%p224_p9), 1045504  }
  0x10   : > { %s14347_s18 = smov (!%p224_p9), 32   ;;  %s14348_s19 = smov (!%p224_p9), 48   ;;  %v347_v6 = vunpack.c.0.s8 (!%p224_p9), %v346_v3  ;;  %vm1166_vm5 = vcmask (!%p224_p9), 31744   ;;  %vm907_vm6 = vcmask (!%p224_p9), 130048   ;;  %vm909_vm7 = vcmask (!%p224_p9), 261120  }
  0x11   : > { %s14349_s20 = smov (!%p224_p9), 16   ;;  %v364_v20 = vunpack.c.0.s8 (!%p224_p9), %v363_v10  ;;  %v486_v45 = vsub.s32 (!%p224_p9), 1, %v349_v7  ;;  %v547_v59 = vsub.s32 (!%p224_p9), 2, %v349_v7  ;;  %s14352_s26 = smov (!%p224_p9), 127   ;;  %vm911_vm8 = vcmask (!%p224_p9), 392192  }
  0x12   : > { %v14461_v11 = vsub.s32 (!%p224_p9), %v347_v6, %v349_v7  ;;  %s17401_s28 = smov (!%p224_p9), 1   ;;  %s17399_s29 = smov (!%p224_p9), 3   ;;  %vm913_vm9 = vcmask (!%p224_p9), 523264   ;;  %vm915_vm10 = vcmask (!%p224_p9), 654336   ;;  %vm917_vm11 = vcmask (!%p224_p9), 785408  }
  0x13   : > { %v14465_v29 = vsub.s32 (!%p224_p9), %v364_v20, %v349_v7  ;;  %vm919_vm12 = vcmask (!%p224_p9), 916480   ;;  %vm1170_vm13 = vcmask (!%p224_p9), 1043456   ;;  %vm297_vm14 = vcmask (!%p224_p9), 818176   ;;  %s17432_s11 = smov (!%p224_p9), 1   ;;  %s17433_s12 = smov (!%p224_p9), 3  }
  0x15   : > { %s14443_s9 = scalar_select %p256_p10, %s14414_s25, 1 }
  0x17   : > { %s14002_s10 = sshll.u32 %s14443_s9, 3 }
  0x18   : > { %s14449_s13 = scalar_lea.vmem %s17382_s0, %s14002_s10  ;;  %s17397_s10 = smov 126  }
  0x19   : > { %v287_v0 = vld [vmem:[%s14449_s13] sm:$0xff] }
  0x1a   : > { %317 = vrot.lane.b32.xlu1 %v287_v0, %s14342_s14  ;;  %309 = vrot.lane.b32.xlu0 %v287_v0, %s14343_s15  ;;  %v307_v15 = vrot.slane %v287_v0, 4 }
  0x1e   : > { %321 = vrot.lane.b32.xlu1 %v287_v0, %s14345_s16  ;;  %313 = vrot.lane.b32.xlu0 %v287_v0, %s14346_s17 }
  0x22   : > { %329 = vrot.lane.b32.xlu1 %v287_v0, %s14347_s18  ;;  %325 = vrot.lane.b32.xlu0 %v287_v0, %s14348_s19 }
  0x26   : > { %333 = vrot.lane.b32.xlu0 %v287_v0, %s14349_s20 }
  0x8c   : > { %v318_v5 = vpop.permute.xlu1 %317  ;;  %v310_v8 = vpop.permute.xlu0 %309 }
  0x8d   : > { %v352_v12 = vcombine.low %v310_v8, %v318_v5  ;;  %v319_v18 = vrot.slane %v318_v5, 4  ;;  %v311_v19 = vrot.slane %v310_v8, 4 }
  0x8f   : > { %v359_v22 = vrot.slane %v352_v12, %v14461_v11  ;;  %v420_v28 = vcombine.low %v311_v19, %v319_v18 }
  0x90   : > { %v322_v13 = vpop.permute.xlu1 %321  ;;  %v314_v14 = vpop.permute.xlu0 %313 }
  0x91   : > { %v315_v16 = vrot.slane %v314_v14, 4  ;;  %v344_v17 = vcombine.low %v287_v0, %v314_v14  ;;  %v323_v26 = vrot.slane %v322_v13, 4  ;;  %v427_v38 = vrot.slane %v420_v28, %v14461_v11 }
  0x93   : > { %v351_v21 = vrot.slane %v344_v17, %v14461_v11  ;;  %v412_v23 = vcombine.low %v307_v15, %v315_v16 }
  0x94   : > { %v330_v24 = vpop.permute.xlu1 %329  ;;  %v326_v25 = vpop.permute.xlu0 %325 }
  0x95   : > { %v331_v27 = vrot.slane %v330_v24, 4  ;;  %v360_v30 = vcombine.low %v351_v21, %v359_v22  ;;  %v378_v31 = vcombine.low %v322_v13, %v330_v24  ;;  %v419_v32 = vrot.slane %v412_v23, %v14461_v11 }
  0x96   : > { %v327_v35 = vrot.slane %v326_v25, 4  ;;  %v361_v39 = vcombine.high %v351_v21, %v359_v22 }
  0x97   : > { %v446_v34 = vcombine.low %v323_v26, %v331_v27  ;;  %v368_v40 = vrot.slane %v360_v30, %v14465_v29  ;;  %v385_v41 = vrot.slane %v378_v31, %v14461_v11  ;;  %v428_v44 = vcombine.low %v419_v32, %v427_v38 }
  0x98   : > { %v334_v33 = vpop.permute.xlu0 %333  ;;  %v375_v50 = vrot.slane %v361_v39, %v14465_v29  ;;  %v429_v51 = vcombine.high %v419_v32, %v427_v38 }
  0x99   : > { %v335_v36 = vrot.slane %v334_v33, 4  ;;  %v386_v37 = vcombine.low %v326_v25, %v334_v33  ;;  %v453_v46 = vrot.slane %v446_v34, %v14461_v11  ;;  %v376_v52 = vcombine.high %v368_v40, %v14344_v1 }
  0x9a   : > { %v487_v57 = vrot.slane %v368_v40, %v486_v45  ;;  %v436_v58 = vrot.slane %v428_v44, %v14465_v29  ;;  %v377_v0 = vcombine.high %v375_v50, %v14344_v1  ;;  %v443_v4 = vrot.slane %v429_v51, %v14465_v29 }
  0x9b   : > { %v393_v42 = vrot.slane %v386_v37, %v14461_v11  ;;  %v454_v43 = vcombine.low %v327_v35, %v335_v36  ;;  %v491_v5 = vrot.slane %v376_v52, %v486_v45  ;;  %v495_v20 = vrot.slane %v375_v50, %v486_v45 }
  0x9c   : > { %v499_v18 = vrot.slane %v377_v0, %v486_v45 }
  0x9d   : > { %v394_v47 = vcombine.low %v385_v41, %v393_v42  ;;  %v395_v48 = vcombine.high %v385_v41, %v393_v42  ;;  %v461_v49 = vrot.slane %v454_v43, %v14461_v11 }
  0x9f   : > { %v462_v53 = vcombine.low %v453_v46, %v461_v49  ;;  %v463_v54 = vcombine.high %v453_v46, %v461_v49  ;;  %v402_v55 = vrot.slane %v394_v47, %v14465_v29  ;;  %v409_v56 = vrot.slane %v395_v48, %v14465_v29 }
  0xa1   : > { %v470_v60 = vrot.slane %v462_v53, %v14465_v29  ;;  %v477_v61 = vrot.slane %v463_v54, %v14465_v29  ;;  %v13993_v62 = vcombine.high %v368_v40, %v402_v55  ;;  %v516_v63 = vcombine.low %v368_v40, %v402_v55 }
  0xa2   : > { %v13995_v2 = vcombine.high %v375_v50, %v409_v56  ;;  %v520_v3 = vcombine.low %v375_v50, %v409_v56 }
  0xa3   : > { %v528_v6 = vrot.slane %v13993_v62, 7  ;;  %v525_v8 = vrot.slane %v516_v63, 7  ;;  %v517_v9 = vcombine.low %v436_v58, %v470_v60  ;;  %v13994_v13 = vcombine.high %v436_v58, %v470_v60 }
  0xa4   : > { %v534_v10 = vrot.slane %v13995_v2, 7  ;;  %v531_v12 = vrot.slane %v520_v3, 7  ;;  %v521_v7 = vcombine.low %v443_v4, %v477_v61  ;;  %v13996_v17 = vcombine.high %v443_v4, %v477_v61 }
  0xa5   : > { %v566_v14 = vsel %vm524_vm0, %v491_v5, %v528_v6  ;;  %v565_v15 = vsel %vm524_vm0, %v487_v57, %v525_v8  ;;  %v526_v16 = vrot.slane %v517_v9, 7  ;;  %v548_v21 = vrot.slane %v470_v60, %v547_v59 }
  0xa6   : > { %587 = vrot.lane.b32.xlu0 %v566_v14, %s14352_s26  ;;  %581 = vrot.lane.b32.xlu1 %v565_v15, %s14352_s26  ;;  %v532_v19 = vrot.slane %v521_v7, 7  ;;  %v568_v22 = vsel %vm524_vm0, %v499_v18, %v534_v10  ;;  %v529_v23 = vrot.slane %v13994_v13, 7  ;;  %v556_v24 = vrot.slane %v477_v61, %v547_v59 }
  0xa7   : > { %v478_v25 = vcombine.high %v470_v60, %v14344_v1  ;;  %v567_v26 = vsel %vm524_vm0, %v495_v20, %v531_v12  ;;  %v535_v27 = vrot.slane %v13996_v17, 7  ;;  %v14491_v28 = vsel %vm524_vm0, %v526_v16, %v548_v21 }
  0xa8   : > { %v479_v30 = vcombine.high %v477_v61, %v14344_v1  ;;  %v14497_v31 = vsel %vm524_vm0, %v532_v19, %v556_v24  ;;  %v530_v36 = vsel %vm524_vm0, %v528_v6, %v529_v23  ;;  %v527_v37 = vsel %vm524_vm0, %v525_v8, %v526_v16 }
  0xa9   : > { %v552_v32 = vrot.slane %v478_v25, %v547_v59  ;;  %v536_v38 = vsel %vm524_vm0, %v534_v10, %v535_v27  ;;  %v533_v39 = vsel %vm524_vm0, %v531_v12, %v532_v19 }
  0xaa   : > { %599 = vrot.lane.b32.xlu0 %v568_v22, %s14352_s26  ;;  %593 = vrot.lane.b32.xlu1 %v567_v26, %s14352_s26  ;;  %v560_v33 = vrot.slane %v479_v30, %v547_v59 }
  0xab   : > { %v14500_v34 = vsel %vm524_vm0, %v529_v23, %v552_v32 }
  0xac   : > { %v14503_v35 = vsel %vm524_vm0, %v535_v27, %v560_v33 }
  0xae   : > { %623 = vrot.lane.b32.xlu0 %v566_v14, %s17401_s28  ;;  %617 = vrot.lane.b32.xlu1 %v565_v15, %s17401_s28 }
  0xb2   : > { %635 = vrot.lane.b32.xlu0 %v568_v22, %s17401_s28  ;;  %629 = vrot.lane.b32.xlu1 %v567_v26, %s17401_s28 }
  0xb6   : > { %659 = vrot.lane.b32.xlu0 %v566_v14, %s17399_s29  ;;  %653 = vrot.lane.b32.xlu1 %v565_v15, %s17399_s29 }
  0xba   : > { %589 = vrot.lane.b32.xlu0 %v530_v36, %s14352_s26  ;;  %583 = vrot.lane.b32.xlu1 %v527_v37, %s14352_s26 }
  0xbe   : > { %601 = vrot.lane.b32.xlu0 %v536_v38, %s14352_s26  ;;  %595 = vrot.lane.b32.xlu1 %v533_v39, %s14352_s26 }
  0xc2   : > { %625 = vrot.lane.b32.xlu0 %v530_v36, %s17401_s28  ;;  %619 = vrot.lane.b32.xlu1 %v527_v37, %s17401_s28 }
  0xc6   : > { %637 = vrot.lane.b32.xlu0 %v536_v38, %s17401_s28  ;;  %631 = vrot.lane.b32.xlu1 %v533_v39, %s17401_s28 }
  0xca   : > { %661 = vrot.lane.b32.xlu0 %v530_v36, %s17399_s29  ;;  %655 = vrot.lane.b32.xlu1 %v527_v37, %s17399_s29 }
  0xce   : > { %673 = vrot.lane.b32.xlu0 %v536_v38, %s17399_s29  ;;  %667 = vrot.lane.b32.xlu1 %v533_v39, %s17399_s29 }
  0xd2   : > { %671 = vrot.lane.b32.xlu0 %v568_v22, %s17399_s29  ;;  %665 = vrot.lane.b32.xlu1 %v567_v26, %s17399_s29 }
 0x118   : > { %v588_v40 = vpop.permute.xlu0 %587  ;;  %v582_v41 = vpop.permute.xlu1 %581 }
 0x11c   : > { %v600_v42 = vpop.permute.xlu0 %599  ;;  %v594_v43 = vpop.permute.xlu1 %593 }
 0x120   : > { %v624_v44 = vpop.permute.xlu0 %623  ;;  %v618_v45 = vpop.permute.xlu1 %617 }
 0x121   : > { %v693_v48 = vsel %vm689_vm1, %v588_v40, %v624_v44  ;;  %v690_v49 = vsel %vm689_vm1, %v582_v41, %v618_v45 }
 0x124   : > { %v636_v46 = vpop.permute.xlu0 %635  ;;  %v630_v47 = vpop.permute.xlu1 %629 }
 0x125   : > { %v699_v27 = vsel %vm689_vm1, %v600_v42, %v636_v46  ;;  %v696_v32 = vsel %vm689_vm1, %v594_v43, %v630_v47 }
 0x128   : > { %v660_v50 = vpop.permute.xlu0 %659  ;;  %v654_v51 = vpop.permute.xlu1 %653 }
 0x129   : > { %v14532_v52 = vsel %vm702_vm2, %v693_v48, %v660_v50  ;;  %v14535_v53 = vsel %vm702_vm2, %v690_v49, %v654_v51 }
 0x12a   : > { %940 = vrot.lane.b32.xlu0 %v14532_v52, %s14352_s26  ;;  %936 = vrot.lane.b32.xlu1 %v14535_v53, %s14352_s26  ;;  %v2827_v3 = vrot.slane %v14535_v53, 1  ;;  %v2832_v4 = vrot.slane %v14532_v52, 1  ;;  %v4950_v8 = vrot.slane %v14535_v53, 2  ;;  %v4955_v9 = vrot.slane %v14532_v52, 2 }
 0x12c   : > { %v590_v54 = vpop.permute.xlu0 %589  ;;  %v584_v55 = vpop.permute.xlu1 %583 }
 0x130   : > { %v602_v56 = vpop.permute.xlu0 %601  ;;  %v596_v57 = vpop.permute.xlu1 %595 }
 0x134   : > { %v626_v58 = vpop.permute.xlu0 %625  ;;  %v620_v59 = vpop.permute.xlu1 %619 }
 0x135   : > { %v694_v62 = vsel %vm689_vm1, %v590_v54, %v626_v58  ;;  %v691_v63 = vsel %vm689_vm1, %v584_v55, %v620_v59 }
 0x138   : > { %v638_v60 = vpop.permute.xlu0 %637  ;;  %v632_v61 = vpop.permute.xlu1 %631 }
 0x139   : > { %v700_v14 = vsel %vm689_vm1, %v602_v56, %v638_v60  ;;  %v697_v15 = vsel %vm689_vm1, %v596_v57, %v632_v61 }
 0x13c   : > { %v662_v0 = vpop.permute.xlu0 %661  ;;  %v656_v2 = vpop.permute.xlu1 %655 }
 0x13d   : > { %v14546_v5 = vsel %vm702_vm2, %v694_v62, %v662_v0  ;;  %v14549_v6 = vsel %vm702_vm2, %v691_v63, %v656_v2 }
 0x13e   : > { %942 = vrot.lane.b32.xlu0 %v14546_v5, %s14352_s26  ;;  %938 = vrot.lane.b32.xlu1 %v14549_v6, %s14352_s26  ;;  %v17396_v10 = vrot.slane %v14549_v6, 1  ;;  %v17394_v12 = vrot.slane %v14546_v5, 1  ;;  %v17395_v13 = vrot.slane %v14549_v6, 2  ;;  %v17393_v7 = vrot.slane %v14546_v5, 2 }
 0x140   : > { %v674_v16 = vpop.permute.xlu0 %673  ;;  %v668_v17 = vpop.permute.xlu1 %667  ;;  %v14566_v18 = vsel %vm2826_vm3, %v2827_v3, %v17396_v10  ;;  %v14571_v19 = vsel %vm2826_vm3, %v2832_v4, %v17394_v12  ;;  %v14576_v20 = vsel %vm4949_vm4, %v4950_v8, %v17395_v13  ;;  %v14581_v21 = vsel %vm4949_vm4, %v4955_v9, %v17393_v7 }
 0x141   : > { %v14584_v22 = vsel %vm702_vm2, %v700_v14, %v674_v16  ;;  %v14587_v23 = vsel %vm702_vm2, %v697_v15, %v668_v17 }
 0x142   : > { %v799_v24 = vcombine.low %v14546_v5, %v14584_v22  ;;  %v783_v25 = vcombine.low %v14549_v6, %v14587_v23  ;;  %950 = vrot.lane.b32.xlu0 %v14584_v22, %s14352_s26  ;;  %946 = vrot.lane.b32.xlu1 %v14587_v23, %s14352_s26  ;;  %v784_v26 = vcombine.high %v14549_v6, %v14587_v23  ;;  %v17392_v60 = vrot.slane %v14587_v23, 1 }
 0x143   : > { %v800_v30 = vcombine.high %v14546_v5, %v14584_v22  ;;  %v17391_v3 = vrot.slane %v14587_v23, 2 }
 0x144   : > { %v672_v33 = vpop.permute.xlu0 %671  ;;  %v666_v36 = vpop.permute.xlu1 %665  ;;  %v14604_v37 = vrot.slane %v783_v25, %v14461_v11  ;;  %v14607_v38 = vrot.slane %v799_v24, %v14461_v11  ;;  %v14610_v39 = vrot.slane %v784_v26, %v14461_v11  ;;  %v17389_v26 = vrot.slane %v14584_v22, 2 }
 0x145   : > { %v14613_v40 = vsel %vm702_vm2, %v699_v27, %v672_v33  ;;  %v14616_v41 = vsel %vm702_vm2, %v696_v32, %v666_v36  ;;  %v14619_v42 = vrot.slane %v800_v30, %v14461_v11 }
 0x146   : > { %v731_v43 = vcombine.low %v14532_v52, %v14613_v40  ;;  %v715_v44 = vcombine.low %v14535_v53, %v14616_v41  ;;  %948 = vrot.lane.b32.xlu0 %v14613_v40, %s14352_s26  ;;  %944 = vrot.lane.b32.xlu1 %v14616_v41, %s14352_s26  ;;  %v815_v45 = vcombine.low %v14604_v37, %v14607_v38  ;;  %v2837_v55 = vrot.slane %v14616_v41, 1 }
 0x147   : > { %v816_v46 = vcombine.high %v14604_v37, %v14607_v38  ;;  %v831_v47 = vcombine.low %v14610_v39, %v14619_v42  ;;  %v716_v48 = vcombine.high %v14535_v53, %v14616_v41  ;;  %v732_v49 = vcombine.high %v14532_v52, %v14613_v40 }
 0x148   : > { %v14640_v50 = vrot.slane %v715_v44, %v14461_v11  ;;  %v14643_v51 = vrot.slane %v731_v43, %v14461_v11  ;;  %v2842_v62 = vrot.slane %v14613_v40, 1  ;;  %v4960_v4 = vrot.slane %v14616_v41, 2 }
 0x149   : > { %v14649_v56 = vrot.slane %v716_v48, %v14461_v11  ;;  %v14652_v57 = vrot.slane %v732_v49, %v14461_v11  ;;  %v4965_v27 = vrot.slane %v14613_v40, 2  ;;  %v839_v37 = vrot.slane %v831_v47, %v14465_v29 }
 0x14a   : > { %2120 = vrot.lane.b32.xlu0 %v14532_v52, %s17397_s10  ;;  %2116 = vrot.lane.b32.xlu1 %v14535_v53, %s17397_s10  ;;  %v747_v58 = vcombine.low %v14640_v50, %v14643_v51  ;;  %v748_v59 = vcombine.high %v14640_v50, %v14643_v51  ;;  %v14671_v52 = vsel %vm2826_vm3, %v2837_v55, %v17392_v60  ;;  %v17390_v53 = vrot.slane %v14584_v22, 1 }
 0x14b   : > { %v2855_v0 = vcombine.low %v14566_v18, %v14671_v52  ;;  %v2856_v2 = vcombine.high %v14566_v18, %v14671_v52  ;;  %v14702_v17 = vsel %vm4949_vm4, %v4960_v4, %v17391_v3  ;;  %v14723_v33 = vsel %vm4949_vm4, %v4965_v27, %v17389_v26 }
 0x14c   : > { %v14690_v9 = vsel %vm2826_vm3, %v2842_v62, %v17390_v53  ;;  %v4978_v24 = vcombine.low %v14576_v20, %v14702_v17  ;;  %v4979_v25 = vcombine.high %v14576_v20, %v14702_v17  ;;  %v4994_v62 = vcombine.low %v14581_v21, %v14723_v33 }
 0x14d   : > { %v14685_v8 = vrot.slane %v2855_v0, %v14461_v11  ;;  %v14693_v14 = vrot.slane %v2856_v2, %v14461_v11  ;;  %v2871_v15 = vcombine.low %v14571_v19, %v14690_v9  ;;  %v2872_v16 = vcombine.high %v14571_v19, %v14690_v9 }
 0x14e   : > { %2122 = vrot.lane.b32.xlu0 %v14546_v5, %s17397_s10  ;;  %2118 = vrot.lane.b32.xlu1 %v14549_v6, %s17397_s10  ;;  %v14734_v49 = vrot.slane %v4978_v24, %v14461_v11  ;;  %v14737_v55 = vrot.slane %v4979_v25, %v14461_v11  ;;  %v4995_v0 = vcombine.high %v14581_v21, %v14723_v33 }
 0x14f   : > { %v14715_v30 = vrot.slane %v2871_v15, %v14461_v11  ;;  %v14718_v32 = vrot.slane %v2872_v16, %v14461_v11  ;;  %v14744_v2 = vrot.slane %v4994_v62, %v14461_v11  ;;  %v17413_v38 = vcombine.low %v14649_v56, %v14652_v57 }
 0x150   : > { %v14747_v4 = vrot.slane %v4995_v0, %v14461_v11  ;;  %v849_v50 = vcombine.high %v839_v37, %v14344_v1  ;;  %v17414_v47 = vcombine.high %v14610_v39, %v14619_v42 }
 0x152   : > { %2130 = vrot.lane.b32.xlu0 %v14584_v22, %s17397_s10  ;;  %2126 = vrot.lane.b32.xlu1 %v14587_v23, %s17397_s10 }
 0x19c   : > { %v941_v27 = vpop.permute.xlu0 %940  ;;  %v937_v48 = vpop.permute.xlu1 %936 }
 0x1b0   : > { %v943_v44 = vpop.permute.xlu0 %942  ;;  %v939_v62 = vpop.permute.xlu1 %938 }
 0x1b4   : > { %v951_v43 = vpop.permute.xlu0 %950  ;;  %v947_v36 = vpop.permute.xlu1 %946 }
 0x1b5   : > { %v1044_v0 = vcombine.low %v943_v44, %v951_v43  ;;  %v1045_v26 = vcombine.high %v943_v44, %v951_v43  ;;  %v1028_v53 = vcombine.low %v939_v62, %v947_v36  ;;  %v1029_v3 = vcombine.high %v939_v62, %v947_v36 }
 0x1b7   : > { %v1052_v15 = vrot.slane %v1044_v0, %v14461_v11  ;;  %v1036_v16 = vrot.slane %v1028_v53, %v14461_v11  ;;  %v1059_v60 = vrot.slane %v1045_v26, %v14461_v11  ;;  %v1043_v24 = vrot.slane %v1029_v3, %v14461_v11 }
 0x1b8   : > { %v949_v7 = vpop.permute.xlu0 %948  ;;  %v945_v25 = vpop.permute.xlu1 %944 }
 0x1b9   : > { %v976_v12 = vcombine.low %v941_v27, %v949_v7  ;;  %v977_v13 = vcombine.high %v941_v27, %v949_v7  ;;  %v960_v10 = vcombine.low %v937_v48, %v945_v25  ;;  %v961_v63 = vcombine.high %v937_v48, %v945_v25 }
 0x1ba   : > { %v1061_v54 = vcombine.high %v1036_v16, %v1052_v15  ;;  %v1076_v26 = vcombine.low %v1043_v24, %v1059_v60  ;;  %v1060_v27 = vcombine.low %v1036_v16, %v1052_v15  ;;  %v1077_v25 = vcombine.high %v1043_v24, %v1059_v60 }
 0x1bb   : > { %v984_v61 = vrot.slane %v976_v12, %v14461_v11  ;;  %v991_v43 = vrot.slane %v977_v13, %v14461_v11  ;;  %v968_v36 = vrot.slane %v960_v10, %v14461_v11  ;;  %v975_v44 = vrot.slane %v961_v63, %v14461_v11 }
 0x1bc   : > { %v1075_v53 = vrot.slane %v1061_v54, %v14465_v29  ;;  %v1084_v48 = vrot.slane %v1076_v26, %v14465_v29  ;;  %v1091_v54 = vrot.slane %v1077_v25, %v14465_v29  ;;  %v14774_v63 = vrot.slane %v1060_v27, %v14465_v29 }
 0x1bd   : > { %v993_v62 = vcombine.high %v968_v36, %v984_v61  ;;  %v1008_v7 = vcombine.low %v975_v44, %v991_v43  ;;  %v992_v10 = vcombine.low %v968_v36, %v984_v61  ;;  %v1009_v13 = vcombine.high %v975_v44, %v991_v43 }
 0x1be   : > { %1129 = vrot.lane.b32.xlu1 %v1075_v53, %s14347_s18  ;;  %v1092_v61 = vcombine.high %v14774_v63, %v14344_v1  ;;  %v1093_v24 = vcombine.high %v1075_v53, %v14344_v1  ;;  %v1094_v43 = vcombine.high %v1084_v48, %v14344_v1  ;;  %v1095_v44 = vcombine.high %v1091_v54, %v14344_v1 }
 0x1bf   : > { %v1007_v3 = vrot.slane %v993_v62, %v14465_v29  ;;  %v1016_v12 = vrot.slane %v1008_v7, %v14465_v29  ;;  %v1023_v15 = vrot.slane %v1009_v13, %v14465_v29  ;;  %v14780_v60 = vrot.slane %v992_v10, %v14465_v29  ;;  %v14861_v10 = vpop.permute.xlu0 %2120 }
 0x1c0   : > { %v14804_v26 = vrot.slane %v815_v45, %v14465_v29  ;;  %v14813_v62 = vrot.slane %v747_v58, %v14465_v29  ;;  %v762_v58 = vrot.slane %v748_v59, %v14465_v29  ;;  %v846_v59 = vrot.slane %v17414_v47, %v14465_v29 }
 0x1c1   : > { %1101 = vrot.lane.b32.xlu0 %v1007_v3, %s14347_s18  ;;  %v1024_v16 = vcombine.high %v14780_v60, %v14344_v1  ;;  %v1025_v0 = vcombine.high %v1007_v3, %v14344_v1  ;;  %v1026_v36 = vcombine.high %v1016_v12, %v14344_v1  ;;  %v1027_v53 = vcombine.high %v1023_v15, %v14344_v1 }
 0x1c2   : > { %1137 = vrot.lane.b32.xlu1 %v1084_v48, %s14345_s16  ;;  %v847_v3 = vcombine.high %v14804_v26, %v14344_v1  ;;  %v779_v45 = vcombine.high %v14813_v62, %v14344_v1  ;;  %v780_v7 = vcombine.high %v762_v58, %v14344_v1  ;;  %v17415_v27 = vcombine.high %v14649_v56, %v14652_v57 }
 0x1c3   : > { %v850_v25 = vcombine.high %v846_v59, %v14344_v1  ;;  %v2123_v42 = vpop.permute.xlu0 %2122 }
 0x1c4   : > { %v778_v48 = vrot.slane %v17415_v27, %v14465_v29 }
 0x1c5   : > { %1109 = vrot.lane.b32.xlu0 %v1016_v12, %s14345_s16  ;;  %v14863_v12 = vpop.permute.xlu1 %2116 }
 0x1c6   : > { %1145 = vrot.lane.b32.xlu1 %v1091_v54, %s14346_s17  ;;  %v782_v39 = vcombine.high %v778_v48, %v14344_v1 }
 0x1c7   : > { %v2131_v57 = vpop.permute.xlu0 %2130 }
 0x1c8   : > { %v2224_v54 = vcombine.low %v2123_v42, %v2131_v57 }
 0x1c9   : > { %1117 = vrot.lane.b32.xlu0 %v1023_v15, %s14346_s17  ;;  %v2119_v56 = vpop.permute.xlu1 %2118 }
 0x1ca   : > { %1125 = vrot.lane.b32.xlu1 %v1092_v61, %s14349_s20  ;;  %v2225_v61 = vcombine.high %v2123_v42, %v2131_v57 }
 0x1cd   : > { %1097 = vrot.lane.b32.xlu0 %v1024_v16, %s14349_s20  ;;  %v2127_v13 = vpop.permute.xlu1 %2126  ;;  %v2232_v16 = vrot.slane %v2224_v54, %v14461_v11 }
 0x1ce   : > { %1133 = vrot.lane.b32.xlu1 %v1093_v24, %s14348_s19  ;;  %v2208_v15 = vcombine.low %v2119_v56, %v2127_v13  ;;  %v2209_v24 = vcombine.high %v2119_v56, %v2127_v13 }
 0x1d1   : > { %1105 = vrot.lane.b32.xlu0 %v1025_v0, %s14348_s19  ;;  %v2216_v0 = vrot.slane %v2208_v15, %v14461_v11 }
 0x1d2   : > { %1141 = vrot.lane.b32.xlu1 %v1094_v43, %s14342_s14  ;;  %v2239_v43 = vrot.slane %v2225_v61, %v14461_v11 }
 0x1d5   : > { %1113 = vrot.lane.b32.xlu0 %v1026_v36, %s14342_s14  ;;  %v2223_v36 = vrot.slane %v2209_v24, %v14461_v11 }
 0x1d6   : > { %1149 = vrot.lane.b32.xlu1 %v1095_v44, %s14343_s15  ;;  %v2241_v44 = vcombine.high %v2216_v0, %v2232_v16 }
 0x1d9   : > { %1121 = vrot.lane.b32.xlu0 %v1027_v53, %s14343_s15  ;;  %v2255_v53 = vrot.slane %v2241_v44, %v14465_v29 }
 0x1da   : > { %2124 = vrot.lane.b32.xlu1 %v14616_v41, %s17397_s10  ;;  %v830_v41 = vrot.slane %v816_v46, %v14465_v29  ;;  %v771_v46 = vrot.slane %v17413_v38, %v14465_v29 }
 0x1dc   : > { %v781_v51 = vcombine.high %v771_v46, %v14344_v1 }
 0x1dd   : > { %2128 = vrot.lane.b32.xlu0 %v14613_v40, %s17397_s10  ;;  %v848_v40 = vcombine.high %v830_v41, %v14344_v1 }
 0x1de   : > { %880 = vrot.lane.b32.xlu1 %v847_v3, %s14349_s20  ;;  %v2256_v3 = vcombine.low %v2223_v36, %v2239_v43 }
 0x1e1   : > { %852 = vrot.lane.b32.xlu0 %v779_v45, %s14349_s20  ;;  %v2264_v45 = vrot.slane %v2256_v3, %v14465_v29 }
 0x1e2   : > { %884 = vrot.lane.b32.xlu1 %v830_v41, %s14347_s18  ;;  %v2257_v41 = vcombine.high %v2223_v36, %v2239_v43 }
 0x1e5   : > { %856 = vrot.lane.b32.xlu0 %v762_v58, %s14347_s18  ;;  %v2271_v58 = vrot.slane %v2257_v41, %v14465_v29 }
 0x1e6   : > { %888 = vrot.lane.b32.xlu1 %v848_v40, %s14348_s19  ;;  %v2274_v40 = vcombine.high %v2264_v45, %v14344_v1 }
 0x1e9   : > { %860 = vrot.lane.b32.xlu0 %v780_v7, %s14348_s19  ;;  %v2275_v7 = vcombine.high %v2271_v58, %v14344_v1 }
 0x1ea   : > { %892 = vrot.lane.b32.xlu1 %v839_v37, %s14345_s16 }
 0x1ed   : > { %864 = vrot.lane.b32.xlu0 %v771_v46, %s14345_s16 }
 0x1ee   : > { %896 = vrot.lane.b32.xlu1 %v849_v50, %s14342_s14 }
 0x1f1   : > { %868 = vrot.lane.b32.xlu0 %v781_v51, %s14342_s14  ;;  %v265_v51 = vld [vmem:[%s17384_s2 + $0x4] sm:$0xf] }
 0x1f2   : > { %900 = vrot.lane.b32.xlu1 %v846_v59, %s14346_s17  ;;  %v1168_v59 = vsel %vm1166_vm5, %v265_v51, 0 }
 0x1f5   : > { %872 = vrot.lane.b32.xlu0 %v778_v48, %s14346_s17 }
 0x1f6   : > { %904 = vrot.lane.b32.xlu1 %v850_v25, %s14343_s15 }
 0x1f9   : > { %876 = vrot.lane.b32.xlu0 %v782_v39, %s14343_s15  ;;  %v14921_v39 = vand.u32 4294901760, %v1168_v59 }
 0x1fa   : > { %585 = vrot.lane.b32.xlu1 %v14491_v28, %s14352_s26 }
 0x1fb   : > { %v14928_v15 = vsub.f32 %v1168_v59, %v14921_v39 }
 0x1fd   : > { %591 = vrot.lane.b32.xlu0 %v14500_v34, %s14352_s26  ;;  %v1246_v43 = vand.u32 4294901760, %v14928_v15 }
 0x1fe   : > { %597 = vrot.lane.b32.xlu1 %v14497_v31, %s14352_s26 }
 0x1ff   : > { %v1247_v41 = vsub.f32 %v14928_v15, %v1246_v43 }
 0x201   : > { %603 = vrot.lane.b32.xlu0 %v14503_v35, %s14352_s26 }
 0x202   : > { %621 = vrot.lane.b32.xlu1 %v14491_v28, %s17401_s28 }
 0x205   : > { %627 = vrot.lane.b32.xlu0 %v14500_v34, %s17401_s28 }
 0x206   : > { %633 = vrot.lane.b32.xlu1 %v14497_v31, %s17401_s28 }
 0x209   : > { %639 = vrot.lane.b32.xlu0 %v14503_v35, %s17401_s28 }
 0x20a   : > { %657 = vrot.lane.b32.xlu1 %v14491_v28, %s17399_s29  ;;  %v2240_v28 = vcombine.low %v2216_v0, %v2232_v16 }
 0x20d   : > { %663 = vrot.lane.b32.xlu0 %v14500_v34, %s17399_s29  ;;  %v14903_v34 = vrot.slane %v2240_v28, %v14465_v29 }
 0x20e   : > { %669 = vrot.lane.b32.xlu1 %v14497_v31, %s17399_s29 }
 0x20f   : > { %v2272_v31 = vcombine.high %v14903_v34, %v14344_v1 }
 0x211   : > { %675 = vrot.lane.b32.xlu0 %v14503_v35, %s17399_s29  ;;  %v2273_v35 = vcombine.high %v2255_v53, %v14344_v1  ;;  %s15884_s29 = scalar_lea.vmem %s17383_s1, %s14443_s9 }
 0x212   : > { %2309 = vrot.lane.b32.xlu1 %v2255_v53, %s14347_s18 }
 0x216   : > { %2317 = vrot.lane.b32.xlu1 %v2264_v45, %s14345_s16 }
 0x21a   : > { %2325 = vrot.lane.b32.xlu1 %v2271_v58, %s14346_s17 }
 0x21e   : > { %2305 = vrot.lane.b32.xlu1 %v2272_v31, %s14349_s20 }
 0x222   : > { %2313 = vrot.lane.b32.xlu1 %v2273_v35, %s14348_s19 }
 0x226   : > { %2321 = vrot.lane.b32.xlu1 %v2274_v40, %s14342_s14 }
 0x22a   : > { %2329 = vrot.lane.b32.xlu1 %v2275_v7, %s14343_s15 }
 0x230   : > { %v1130_v37 = vpop.permute.xlu1 %1129 }
 0x233   : > { %v1102_v38 = vpop.permute.xlu0 %1101 }
 0x234   : > { %v1138_v46 = vpop.permute.xlu1 %1137 }
 0x237   : > { %v1110_v50 = vpop.permute.xlu0 %1109 }
 0x238   : > { %v1146_v47 = vpop.permute.xlu1 %1145 }
 0x23b   : > { %v1118_v27 = vpop.permute.xlu0 %1117 }
 0x23c   : > { %v1126_v48 = vpop.permute.xlu1 %1125 }
 0x23d   : > { %v1159_v25 = vsel %vm907_vm6, %v14774_v63, %v1126_v48 }
 0x23e   : > { %v1160_v57 = vsel %vm909_vm7, %v1159_v25, %v1130_v37 }
 0x23f   : > { %v1098_v42 = vpop.permute.xlu0 %1097 }
 0x240   : > { %v1152_v56 = vsel %vm907_vm6, %v14780_v60, %v1098_v42  ;;  %v1134_v13 = vpop.permute.xlu1 %1133 }
 0x241   : > { %v1161_v54 = vsel %vm911_vm8, %v1160_v57, %v1134_v13  ;;  %v1153_v63 = vsel %vm909_vm7, %v1152_v56, %v1102_v38 }
 0x242   : > { %v1162_v24 = vsel %vm913_vm9, %v1161_v54, %v1138_v46 }
 0x243   : > { %v1106_v61 = vpop.permute.xlu0 %1105 }
 0x244   : > { %v1154_v16 = vsel %vm911_vm8, %v1153_v63, %v1106_v61  ;;  %v1142_v0 = vpop.permute.xlu1 %1141 }
 0x245   : > { %v1163_v60 = vsel %vm915_vm10, %v1162_v24, %v1142_v0  ;;  %v1155_v36 = vsel %vm913_vm9, %v1154_v16, %v1110_v50  ;;  %v1248_v50 = vand.u32 4294901760, %v1247_v41 }
 0x246   : > { %v1164_v3 = vsel %vm917_vm11, %v1163_v60, %v1146_v47 }
 0x247   : > { %v1114_v44 = vpop.permute.xlu0 %1113 }
 0x248   : > { %v1156_v53 = vsel %vm915_vm10, %v1155_v36, %v1114_v44  ;;  %v1150_v28 = vpop.permute.xlu1 %1149 }
 0x249   : > { %v1165_v45 = vsel %vm919_vm12, %v1164_v3, %v1150_v28  ;;  %v1157_v35 = vsel %vm917_vm11, %v1156_v53, %v1118_v27 }
 0x24a   : > { %v1175_v58 = vsel %vm1170_vm13, %v1165_v45, 0 }
 0x24b   : > { %v14943_v31 = vand.u32 4294901760, %v1175_v58  ;;  %v1122_v40 = vpop.permute.xlu0 %1121 }
 0x24c   : > { %v1158_v7 = vsel %vm919_vm12, %v1157_v35, %v1122_v40  ;;  %v2125_v37 = vpop.permute.xlu1 %2124 }
 0x24d   : > { %v1256_v38 = vsub.f32 %v1175_v58, %v14943_v31  ;;  %v1172_v46 = vsel %vm1170_vm13, %v1158_v7, 0  ;;  %1178 = vmatprep.subr.mxu0 %v14943_v31  ;;  %v2140_v47 = vcombine.low %v14863_v12, %v2125_v37  ;;  %v2141_v41 = vcombine.high %v14863_v12, %v2125_v37 }
 0x24e   : > { %v14950_v51 = vand.u32 4294901760, %v1172_v46 }
 0x24f   : > { %v2129_v59 = vpop.permute.xlu0 %2128  ;;  %v1257_v48 = vand.u32 4294901760, %v1256_v38  ;;  %v2148_v13 = vrot.slane %v2140_v47, %v14461_v11  ;;  %v2155_v7 = vrot.slane %v2141_v41, %v14461_v11 }
 0x250   : > { %v14954_v25 = vsub.f32 %v1172_v46, %v14950_v51  ;;  %v2156_v27 = vcombine.low %v14861_v10, %v2129_v59  ;;  %v881_v42 = vpop.permute.xlu1 %880  ;;  %1180 = vmatpush1.msra.mxu0 %v14950_v51  ;;  %v2157_v53 = vcombine.high %v14861_v10, %v2129_v59 }
 0x251   : > { %1249 = vmatmul.mubr.f32.vlgmr.msra.gmra.mrb[0].mxu0 %v1248_v50  ;;  %v1258_v56 = vsub.f32 %v1256_v38, %v1257_v48  ;;  %v921_v50 = vsel %vm907_vm6, %v14804_v26, %v881_v42 }
 0x252   : > { %v1263_v57 = vand.u32 4294901760, %v14954_v25  ;;  %v2164_v54 = vrot.slane %v2156_v27, %v14461_v11  ;;  %1329 = vmatprep.mubr.f32.mxu0 %v14344_v1  ;;  %v2171_v10 = vrot.slane %v2157_v53, %v14461_v11 }
 0x253   : > { %v853_v63 = vpop.permute.xlu0 %852  ;;  %v1259_v61 = vand.u32 4294901760, %v1258_v56 }
 0x254   : > { %v2172_v16 = vcombine.low %v2148_v13, %v2164_v54  ;;  %v885_v24 = vpop.permute.xlu1 %884  ;;  %v1264_v0 = vsub.f32 %v14954_v25, %v1263_v57  ;;  %v2173_v45 = vcombine.high %v2148_v13, %v2164_v54  ;;  %v2188_v46 = vcombine.low %v2155_v7, %v2171_v10 }
 0x255   : > { %1260 = vmatprep.subr.mxu0 %v1259_v61  ;;  %v922_v59 = vsel %vm909_vm7, %v921_v50, %v885_v24  ;;  %v908_v54 = vsel %vm907_vm6, %v14813_v62, %v853_v63  ;;  %v2189_v24 = vcombine.high %v2155_v7, %v2171_v10 }
 0x256   : > { %v1265_v60 = vand.u32 4294901760, %v1264_v0  ;;  %v14966_v36 = vrot.slane %v2172_v16, %v14465_v29  ;;  %v2187_v40 = vrot.slane %v2173_v45, %v14465_v29  ;;  %v2196_v56 = vrot.slane %v2188_v46, %v14465_v29  ;;  %v264_v16 = vld [vmem:[%s17384_s2] sm:$0xf] }
 0x257   : > { %v857_v44 = vpop.permute.xlu0 %856  ;;  %v1643_v45 = vsel %vm1166_vm5, %v264_v16, 0 }
 0x258   : > { %v889_v3 = vpop.permute.xlu1 %888  ;;  %1266 = vmatpush1.msra.mxu0 %v1265_v60  ;;  %v2204_v28 = vcombine.high %v14966_v36, %v14344_v1  ;;  %v2205_v37 = vcombine.high %v2187_v40, %v14344_v1  ;;  %v910_v26 = vsel %vm909_vm7, %v908_v54, %v857_v44  ;;  %v2206_v62 = vcombine.high %v2196_v56, %v14344_v1 }
 0x259   : > { %1331 = vmatmul.mubr.f32.vlgmr.msra.gmra.mrb[0].mxu0 %v14921_v39  ;;  %1339 = vmatprep.subr.mxu0 %v1256_v38  ;;  %v923_v13 = vsel %vm911_vm8, %v922_v59, %v889_v3 }
 0x25a   : > { %1342 = vmatpush1.msra.mxu0 %v14954_v25  ;;  %2277 = vrot.lane.b32.xlu0 %v2204_v28, %s14349_s20 }
 0x25b   : > { %v861_v58 = vpop.permute.xlu0 %860  ;;  %1415 = vmatprep.subr.mxu0 %v14943_v31  ;;  %1405 = vmatprep.mubr.f32.mxu0 %v14344_v1 }
 0x25c   : > { %v893_v35 = vpop.permute.xlu1 %892  ;;  %v912_v0 = vsel %vm911_vm8, %v910_v26, %v861_v58 }
 0x25d   : > { %v924_v61 = vsel %vm913_vm9, %v923_v13, %v893_v35  ;;  %v2203_v35 = vrot.slane %v2189_v24, %v14465_v29 }
 0x25e   : > { %2281 = vrot.lane.b32.xlu0 %v2187_v40, %s14347_s18  ;;  %v15024_v40 = vand.u32 4294901760, %v1643_v45 }
 0x25f   : > { %v865_v38 = vpop.permute.xlu0 %864 }
 0x260   : > { %v897_v12 = vpop.permute.xlu1 %896  ;;  %v914_v63 = vsel %vm913_vm9, %v912_v0, %v865_v38  ;;  %v15033_v46 = vsub.f32 %v1643_v45, %v15024_v40 }
 0x261   : > { %1408 = vmatmul.mubr.f32.vlgmr.msra.gmra.mrb[0].mxu0 %v14928_v15 }
 0x262   : > { %1417 = vmatpush1.msra.mxu0 %v14950_v51  ;;  %2285 = vrot.lane.b32.xlu0 %v2205_v37, %s14348_s19 }
 0x263   : > { %1493 = vmatprep.subr.mxu0 %v1257_v48  ;;  %v869_v47 = vpop.permute.xlu0 %868  ;;  %1480 = vmatprep.mubr.f32.mxu0 %v14344_v1  ;;  %v925_v48 = vsel %vm915_vm10, %v924_v61, %v897_v12  ;;  %v2207_v12 = vcombine.high %v2203_v35, %v14344_v1 }
 0x264   : > { %v901_v27 = vpop.permute.xlu1 %900  ;;  %v916_v44 = vsel %vm915_vm10, %v914_v63, %v869_v47 }
 0x265   : > { %v926_v60 = vsel %vm917_vm11, %v925_v48, %v901_v27 }
 0x266   : > { %2289 = vrot.lane.b32.xlu0 %v2196_v56, %s14345_s16  ;;  %v1720_v56 = vand.u32 4294901760, %v15033_v46 }
 0x267   : > { %v873_v42 = vpop.permute.xlu0 %872 }
 0x268   : > { %v905_v53 = vpop.permute.xlu1 %904  ;;  %v918_v41 = vsel %vm917_vm11, %v916_v44, %v873_v42  ;;  %v1721_v26 = vsub.f32 %v15033_v46, %v1720_v56 }
 0x269   : > { %v927_v3 = vsel %vm919_vm12, %v926_v60, %v905_v53  ;;  %1484 = vmatmul.mubr.f32.vlgmr.msra.gmra.mrb[0].mxu0 %v1246_v43 }
 0x26a   : > { %v1649_v28 = vsel %vm1170_vm13, %v927_v3, 0  ;;  %1497 = vmatpush1.msra.mxu0 %v1263_v57  ;;  %2293 = vrot.lane.b32.xlu0 %v2206_v62, %s14342_s14  ;;  %v1722_v0 = vand.u32 4294901760, %v1721_v26 }
 0x26b   : > { %v15014_v58 = vand.u32 4294901760, %v1649_v28  ;;  %1569 = vmatprep.subr.mxu0 %v14943_v31  ;;  %v877_v10 = vpop.permute.xlu0 %876  ;;  %1560 = vmatprep.mubr.f32.mxu0 %v14344_v1 }
 0x26c   : > { %v920_v15 = vsel %vm919_vm12, %v918_v41, %v877_v10  ;;  %v586_v43 = vpop.permute.xlu1 %585  ;;  %v17416_v41 = vrot.slane %v14549_v6, 1 }
 0x26d   : > { %v15021_v25 = vsub.f32 %v1649_v28, %v15014_v58  ;;  %v1646_v57 = vsel %vm1170_vm13, %v920_v15, 0  ;;  %v17417_v15 = vrot.slane %v14549_v6, 2 }
 0x26e   : > { %2297 = vrot.lane.b32.xlu0 %v2203_v35, %s14346_s17  ;;  %v15027_v7 = vand.u32 4294901760, %v1646_v57 }
 0x26f   : > { %v592_v31 = vpop.permute.xlu0 %591  ;;  %v1731_v37 = vand.u32 4294901760, %v15021_v25 }
 0x270   : > { %v598_v38 = vpop.permute.xlu1 %597  ;;  %v15038_v50 = vsub.f32 %v1646_v57, %v15027_v7 }
 0x271   : > { %1562 = vmatmul.mubr.f32.vlgmr.msra.gmra.mrb[0].mxu0 %v14921_v39  ;;  %v1732_v27 = vsub.f32 %v15021_v25, %v1731_v37 }
 0x272   : > { %1571 = vmatpush1.msra.mxu0 %v14950_v51  ;;  %2301 = vrot.lane.b32.xlu0 %v2207_v12, %s14343_s15  ;;  %v1737_v13 = vand.u32 4294901760, %v15038_v50 }
 0x273   : > { %1652 = vmatprep.subr.mxu0 %v15014_v58  ;;  %v604_v47 = vpop.permute.xlu0 %603  ;;  %1634 = vmatprep.mubr.f32.mxu0 %v14344_v1  ;;  %v1733_v61 = vand.u32 4294901760, %v1732_v27  ;;  %v17418_v27 = vrot.slane %v14546_v5, 1 }
 0x274   : > { %v622_v59 = vpop.permute.xlu1 %621  ;;  %v1738_v42 = vsub.f32 %v15038_v50, %v1737_v13 }
 0x275   : > { %v692_v16 = vsel %vm689_vm1, %v586_v43, %v622_v59 }
 0x276   : > { %v1739_v3 = vand.u32 4294901760, %v1738_v42 }
 0x277   : > { %v628_v51 = vpop.permute.xlu0 %627 }
 0x278   : > { %v634_v54 = vpop.permute.xlu1 %633  ;;  %v695_v62 = vsel %vm689_vm1, %v592_v31, %v628_v51 }
 0x279   : > { %1636 = vmatmul.mubr.f32.vlgmr.msra.gmra.mrb[0].mxu0 %v14921_v39  ;;  %v698_v44 = vsel %vm689_vm1, %v598_v38, %v634_v54  ;;  %v17419_v54 = vrot.slane %v14546_v5, 2 }
 0x27a   : > { %1654 = vmatpush1.msra.mxu0 %v15027_v7  ;;  %1717 = vmatprep.mubr.f32.mxu0 %v14344_v1 }
 0x27b   : > { %1734 = vmatprep.subr.mxu0 %v1733_v61  ;;  %v640_v48 = vpop.permute.xlu0 %639 }
 0x27c   : > { %v658_v24 = vpop.permute.xlu1 %657  ;;  %v701_v59 = vsel %vm689_vm1, %v604_v47, %v640_v48  ;;  %v17420_v47 = vrot.slane %v14587_v23, 1 }
 0x27d   : > { %v705_v39 = vsel %vm702_vm2, %v692_v16, %v658_v24  ;;  %v17421_v16 = vrot.slane %v14587_v23, 2 }
 0x27e   : > { %v2830_v60 = vrot.slane %v705_v39, 1  ;;  %v4953_v53 = vrot.slane %v705_v39, 2 }
 0x27f   : > { %v664_v63 = vpop.permute.xlu0 %663 }
 0x280   : > { %v708_v28 = vsel %vm702_vm2, %v695_v62, %v664_v63  ;;  %v670_v45 = vpop.permute.xlu1 %669  ;;  %v15064_v10 = vsel %vm2826_vm3, %v17416_v41, %v2830_v60  ;;  %v15069_v43 = vsel %vm4949_vm4, %v17417_v15, %v4953_v53  ;;  %v17422_v62 = vrot.slane %v14584_v22, 1 }
 0x281   : > { %v2835_v35 = vrot.slane %v708_v28, 1  ;;  %v4958_v57 = vrot.slane %v708_v28, 2  ;;  %v711_v31 = vsel %vm702_vm2, %v698_v44, %v670_v45  ;;  %3539 = vrot.lane.b32.xlu1 %v15064_v10, %s14352_s26  ;;  %1723 = vmatmul.mubr.f32.vlgmr.msra.gmra.mrb[0].mxu0 %v1722_v0 }
 0x282   : > { %v2840_v38 = vrot.slane %v711_v31, 1  ;;  %v4963_v12 = vrot.slane %v711_v31, 2  ;;  %1740 = vmatpush1.msra.mxu0 %v1739_v3  ;;  %1803 = vmatprep.mubr.f32.mxu0 %v14344_v1  ;;  %v17423_v3 = vrot.slane %v14584_v22, 2 }
 0x283   : > { %1813 = vmatprep.subr.mxu0 %v15021_v25  ;;  %v676_v6 = vpop.permute.xlu0 %675  ;;  %v15080_v51 = vsel %vm2826_vm3, %v17418_v27, %v2835_v35  ;;  %v15085_v61 = vsel %vm4949_vm4, %v17419_v54, %v4958_v57 }
 0x284   : > { %v714_v26 = vsel %vm702_vm2, %v701_v59, %v676_v6  ;;  %v2310_v42 = vpop.permute.xlu1 %2309  ;;  %3543 = vrot.lane.b32.xlu0 %v15080_v51, %s14352_s26  ;;  %v15093_v48 = vsel %vm2826_vm3, %v17420_v47, %v2840_v38  ;;  %v15098_v24 = vsel %vm4949_vm4, %v17421_v16, %v4963_v12 }
 0x285   : > { %v2845_v5 = vrot.slane %v714_v26, 1  ;;  %v4968_v39 = vrot.slane %v714_v26, 2  ;;  %3547 = vrot.lane.b32.xlu1 %v15093_v48, %s14352_s26  ;;  %v2923_v0 = vcombine.low %v15064_v10, %v15093_v48  ;;  %v2924_v60 = vcombine.high %v15064_v10, %v15093_v48 }
 0x286   : > { %v5046_v53 = vcombine.low %v15069_v43, %v15098_v24  ;;  %v5047_v23 = vcombine.high %v15069_v43, %v15098_v24 }
 0x287   : > { %v15113_v63 = vsel %vm2826_vm3, %v17422_v62, %v2845_v5  ;;  %v15118_v44 = vsel %vm4949_vm4, %v17423_v3, %v4968_v39  ;;  %v2931_v15 = vrot.slane %v2923_v0, %v14461_v11  ;;  %v15135_v57 = vrot.slane %v2924_v60, %v14461_v11 }
 0x288   : > { %v2318_v28 = vpop.permute.xlu1 %2317  ;;  %v2939_v45 = vcombine.low %v15080_v51, %v15113_v63  ;;  %v2940_v41 = vcombine.high %v15080_v51, %v15113_v63  ;;  %3551 = vrot.lane.b32.xlu0 %v15113_v63, %s14352_s26  ;;  %v5062_v22 = vcombine.low %v15085_v61, %v15118_v44  ;;  %v5063_v35 = vcombine.high %v15085_v61, %v15118_v44 }
 0x289   : > { %3537 = vrot.lane.b32.xlu1 %v14566_v18, %s14352_s26  ;;  %1805 = vmatmul.mubr.f32.vlgmr.msra.gmra.mrb[0].mxu0 %v15024_v40  ;;  %v15145_v12 = vrot.slane %v5046_v53, %v14461_v11  ;;  %v15148_v59 = vrot.slane %v5047_v23, %v14461_v11  ;;  %v17424_v62 = vcombine.low %v14685_v8, %v14715_v30 }
 0x28a   : > { %v2947_v31 = vrot.slane %v2939_v45, %v14461_v11  ;;  %v15139_v38 = vrot.slane %v2940_v41, %v14461_v11  ;;  %1816 = vmatpush1.msra.mxu0 %v15038_v50  ;;  %1879 = vmatprep.mubr.f32.mxu0 %v14344_v1  ;;  %v15151_v6 = vrot.slane %v5062_v22, %v14461_v11 }
 0x28b   : > { %1889 = vmatprep.subr.mxu0 %v15014_v58  ;;  %v15154_v27 = vrot.slane %v5063_v35, %v14461_v11  ;;  %v15179_v3 = vrot.slane %v17424_v62, %v14465_v29 }
 0x28c   : > { %v2326_v54 = vpop.permute.xlu1 %2325  ;;  %3541 = vrot.lane.b32.xlu0 %v14571_v19, %s14352_s26  ;;  %v2955_v26 = vcombine.low %v2931_v15, %v2947_v31  ;;  %v2956_v47 = vcombine.high %v2931_v15, %v2947_v31  ;;  %v2971_v16 = vcombine.low %v15135_v57, %v15139_v38  ;;  %v2972_v5 = vcombine.high %v15135_v57, %v15139_v38 }
 0x28d   : > { %3545 = vrot.lane.b32.xlu1 %v14671_v52, %s14352_s26  ;;  %v5078_v39 = vcombine.low %v15145_v12, %v15151_v6  ;;  %v5079_v0 = vcombine.high %v15145_v12, %v15151_v6  ;;  %v5094_v60 = vcombine.low %v15148_v59, %v15154_v27  ;;  %v5095_v53 = vcombine.high %v15148_v59, %v15154_v27 }
 0x28e   : > { %v15173_v23 = vrot.slane %v2955_v26, %v14465_v29  ;;  %v2919_v22 = vcombine.high %v15179_v3, %v14344_v1  ;;  %v17425_v38 = vcombine.high %v14685_v8, %v14715_v30 }
 0x28f   : > { %v5102_v6 = vrot.slane %v5094_v60, %v14465_v29  ;;  %v5109_v60 = vrot.slane %v5095_v53, %v14465_v29 }
 0x290   : > { %v2306_v45 = vpop.permute.xlu1 %2305  ;;  %3549 = vrot.lane.b32.xlu0 %v14690_v9, %s14352_s26  ;;  %v2987_v41 = vcombine.high %v15173_v23, %v14344_v1  ;;  %v2902_v26 = vrot.slane %v17425_v38, %v14465_v29 }
 0x291   : > { %v2339_v15 = vsel %vm907_vm6, %v14903_v34, %v2306_v45  ;;  %1882 = vmatmul.mubr.f32.vlgmr.msra.gmra.mrb[0].mxu0 %v15033_v46  ;;  %v2970_v34 = vrot.slane %v2956_v47, %v14465_v29  ;;  %v2979_v47 = vrot.slane %v2971_v16, %v14465_v29  ;;  %v2986_v45 = vrot.slane %v2972_v5, %v14465_v29 }
 0x292   : > { %1891 = vmatpush1.msra.mxu0 %v15027_v7  ;;  %3020 = vrot.lane.b32.xlu1 %v2987_v41, %s14349_s20  ;;  %v2340_v35 = vsel %vm909_vm7, %v2339_v15, %v2310_v42  ;;  %v2920_v8 = vcombine.high %v2902_v26, %v14344_v1  ;;  %v17427_v41 = vcombine.high %v14693_v14, %v14718_v32 }
 0x293   : > { %1967 = vmatprep.subr.mxu0 %v1731_v37  ;;  %1954 = vmatprep.mubr.f32.mxu0 %v14344_v1  ;;  %v2988_v42 = vcombine.high %v2970_v34, %v14344_v1 }
 0x294   : > { %v2314_v57 = vpop.permute.xlu1 %2313  ;;  %2992 = vrot.lane.b32.xlu0 %v2919_v22, %s14349_s20  ;;  %v2918_v15 = vrot.slane %v17427_v41, %v14465_v29 }
 0x295   : > { %v2341_v31 = vsel %vm911_vm8, %v2340_v35, %v2314_v57 }
 0x296   : > { %3024 = vrot.lane.b32.xlu1 %v2970_v34, %s14347_s18  ;;  %v2342_v25 = vsel %vm913_vm9, %v2341_v31, %v2318_v28  ;;  %v2922_v22 = vcombine.high %v2918_v15, %v14344_v1 }
 0x298   : > { %v2322_v37 = vpop.permute.xlu1 %2321  ;;  %2996 = vrot.lane.b32.xlu0 %v2902_v26, %s14347_s18 }
 0x299   : > { %v2343_v62 = vsel %vm915_vm10, %v2342_v25, %v2322_v37  ;;  %1958 = vmatmul.mubr.f32.vlgmr.msra.gmra.mrb[0].mxu0 %v1720_v56  ;;  %v17426_v56 = vcombine.low %v14693_v14, %v14718_v32 }
 0x29a   : > { %1971 = vmatpush1.msra.mxu0 %v1737_v13  ;;  %3028 = vrot.lane.b32.xlu1 %v2988_v42, %s14348_s19  ;;  %v2344_v30 = vsel %vm917_vm11, %v2343_v62, %v2326_v54  ;;  %v2989_v13 = vcombine.high %v2979_v47, %v14344_v1 }
 0x29b   : > { %2043 = vmatprep.subr.mxu0 %v15014_v58  ;;  %2034 = vmatprep.mubr.f32.mxu0 %v14344_v1  ;;  %v2911_v58 = vrot.slane %v17426_v56, %v14465_v29 }
 0x29c   : > { %v2330_v28 = vpop.permute.xlu1 %2329  ;;  %3000 = vrot.lane.b32.xlu0 %v2920_v8, %s14348_s19 }
 0x29d   : > { %v2345_v46 = vsel %vm919_vm12, %v2344_v30, %v2330_v28  ;;  %v2921_v16 = vcombine.high %v2911_v58, %v14344_v1 }
 0x29e   : > { %v2353_v50 = vsel %vm1170_vm13, %v2345_v46, 0  ;;  %3032 = vrot.lane.b32.xlu1 %v2979_v47, %s14345_s16 }
 0x29f   : > { %v15228_v54 = vand.u32 4294901760, %v2353_v50 }
 0x2a0   : > { %3004 = vrot.lane.b32.xlu0 %v2911_v58, %s14345_s16 }
 0x2a1   : > { %2036 = vmatmul.mubr.f32.vlgmr.msra.gmra.mrb[0].mxu0 %v15024_v40 }
 0x2a2   : > { %2045 = vmatpush1.msra.mxu0 %v15027_v7  ;;  %3036 = vrot.lane.b32.xlu1 %v2989_v13, %s14342_s14  ;;  %v2990_v7 = vcombine.high %v2986_v45, %v14344_v1 }
 0x2a3   : > { %2356 = vmatprep.subr.mxu0 %v15228_v54  ;;  %2108 = vmatprep.mubr.f32.mxu0 %v14344_v1 }
 0x2a4   : > { %3008 = vrot.lane.b32.xlu0 %v2921_v16, %s14342_s14 }
 0x2a6   : > { %3040 = vrot.lane.b32.xlu1 %v2986_v45, %s14346_s17 }
 0x2a8   : > { %3012 = vrot.lane.b32.xlu0 %v2918_v15, %s14346_s17 }
 0x2a9   : > { %2110 = vmatmul.mubr.f32.vlgmr.msra.gmra.mrb[0].mxu0 %v15024_v40  ;;  %v266_v40 = vld [vmem:[%s17384_s2 + $0x8] sm:$0xf] }
 0x2aa   : > { %3044 = vrot.lane.b32.xlu1 %v2990_v7, %s14343_s15  ;;  %2421 = vmatprep.mubr.f32.mxu0 %v14344_v1 }
 0x2ac   : > { %3016 = vrot.lane.b32.xlu0 %v2922_v22, %s14343_s15 }
 0x2ae   : > { %4245 = vrot.lane.b32.xlu1 %v15064_v10, %s17397_s10  ;;  %v2347_v10 = vsel %vm1166_vm5, %v266_v40, 0 }
 0x2b0   : > { %4249 = vrot.lane.b32.xlu0 %v15080_v51, %s17397_s10 }
 0x2b2   : > { %4253 = vrot.lane.b32.xlu1 %v15093_v48, %s17397_s10  ;;  %v15270_v48 = vand.u32 4294901760, %v2347_v10 }
 0x2b4   : > { %4257 = vrot.lane.b32.xlu0 %v15113_v63, %s17397_s10  ;;  %v2434_v63 = vsub.f32 %v2353_v50, %v15228_v54 }
 0x2b6   : > { %4243 = vrot.lane.b32.xlu1 %v14566_v18, %s17397_s10  ;;  %v2435_v34 = vand.u32 4294901760, %v2434_v63 }
 0x2b8   : > { %4247 = vrot.lane.b32.xlu0 %v14571_v19, %s17397_s10  ;;  %v2423_v19 = vsub.f32 %v2347_v10, %v15270_v48  ;;  %v2436_v62 = vsub.f32 %v2434_v63, %v2435_v34 }
 0x2ba   : > { %4251 = vrot.lane.b32.xlu1 %v14671_v52, %s17397_s10  ;;  %v2424_v5 = vand.u32 4294901760, %v2423_v19  ;;  %v2437_v47 = vand.u32 4294901760, %v2436_v62 }
 0x2bc   : > { %4255 = vrot.lane.b32.xlu0 %v14690_v9, %s17397_s10  ;;  %v2425_v26 = vsub.f32 %v2423_v19, %v2424_v5 }
 0x2cc   : > { %v2278_v14 = vpop.permute.xlu0 %2277 }
 0x2cd   : > { %v2332_v9 = vsel %vm907_vm6, %v14966_v36, %v2278_v14  ;;  %v2426_v36 = vand.u32 4294901760, %v2425_v26 }
 0x2d0   : > { %v2282_v32 = vpop.permute.xlu0 %2281 }
 0x2d1   : > { %v2333_v35 = vsel %vm909_vm7, %v2332_v9, %v2282_v32 }
 0x2d4   : > { %v2286_v51 = vpop.permute.xlu0 %2285 }
 0x2d5   : > { %v2334_v31 = vsel %vm911_vm8, %v2333_v35, %v2286_v51 }
 0x2d8   : > { %v2290_v18 = vpop.permute.xlu0 %2289 }
 0x2d9   : > { %v2335_v38 = vsel %vm913_vm9, %v2334_v31, %v2290_v18 }
 0x2dc   : > { %v2294_v52 = vpop.permute.xlu0 %2293 }
 0x2dd   : > { %v2336_v25 = vsel %vm915_vm10, %v2335_v38, %v2294_v52 }
 0x2e0   : > { %v2298_v57 = vpop.permute.xlu0 %2297 }
 0x2e1   : > { %v2337_v37 = vsel %vm917_vm11, %v2336_v25, %v2298_v57 }
 0x2e4   : > { %v2302_v42 = vpop.permute.xlu0 %2301 }
 0x2e5   : > { %v2338_v8 = vsel %vm919_vm12, %v2337_v37, %v2302_v42 }
 0x2e6   : > { %v2350_v30 = vsel %vm1170_vm13, %v2338_v8, 0 }
 0x2e7   : > { %v15283_v28 = vand.u32 4294901760, %v2350_v30 }
 0x2e9   : > { %v2440_v46 = vsub.f32 %v2350_v30, %v15283_v28  ;;  %2358 = vmatpush1.msra.mxu0 %v15283_v28 }
 0x2ea   : > { %2427 = vmatmul.mubr.f32.vlgmr.msra.gmra.mrb[0].mxu0 %v2426_v36  ;;  %2438 = vmatprep.subr.mxu0 %v2437_v47 }
 0x2eb   : > { %v2441_v50 = vand.u32 4294901760, %v2440_v46  ;;  %2507 = vmatprep.mubr.f32.mxu0 %v14344_v1 }
 0x2ed   : > { %v2442_v56 = vsub.f32 %v2440_v46, %v2441_v50 }
 0x2ef   : > { %v2443_v58 = vand.u32 4294901760, %v2442_v56 }
 0x2f1   : > { %2444 = vmatpush1.msra.mxu0 %v2443_v58 }
 0x2f2   : > { %2509 = vmatmul.mubr.f32.vlgmr.msra.gmra.mrb[0].mxu0 %v15270_v48  ;;  %2517 = vmatprep.subr.mxu0 %v2434_v63 }
 0x2f3   : > { %v3540_v13 = vpop.permute.xlu1 %3539  ;;  %2520 = vmatpush1.msra.mxu0 %v2440_v46  ;;  %2583 = vmatprep.mubr.f32.mxu0 %v14344_v1 }
 0x2f4   : > { %2593 = vmatprep.subr.mxu0 %v15228_v54 }
 0x2f6   : > { %v3544_v16 = vpop.permute.xlu0 %3543 }
 0x2f7   : > { %v3548_v45 = vpop.permute.xlu1 %3547 }
 0x2f8   : > { %v3629_v41 = vcombine.low %v3540_v13, %v3548_v45  ;;  %v3630_v7 = vcombine.high %v3540_v13, %v3548_v45  ;;  %v267_v45 = vld [vmem:[%s17384_s2 + $0xc] sm:$0xf] }
 0x2fa   : > { %v3552_v15 = vpop.permute.xlu0 %3551  ;;  %2586 = vmatmul.mubr.f32.vlgmr.msra.gmra.mrb[0].mxu0 %v2423_v19  ;;  %v3637_v40 = vrot.slane %v3629_v41, %v14461_v11  ;;  %v3644_v63 = vrot.slane %v3630_v7, %v14461_v11  ;;  %v3062_v7 = vsel %vm1166_vm5, %v267_v45, 0 }
 0x2fb   : > { %v3645_v22 = vcombine.low %v3544_v16, %v3552_v15  ;;  %v3646_v14 = vcombine.high %v3544_v16, %v3552_v15  ;;  %2595 = vmatpush1.msra.mxu0 %v15283_v28  ;;  %v3538_v32 = vpop.permute.xlu1 %3537  ;;  %2658 = vmatprep.mubr.f32.mxu0 %v14344_v1 }
 0x2fc   : > { %2671 = vmatprep.subr.mxu0 %v2435_v34 }
 0x2fd   : > { %v3653_v10 = vrot.slane %v3645_v22, %v14461_v11  ;;  %v3660_v51 = vrot.slane %v3646_v14, %v14461_v11 }
 0x2fe   : > { %v3542_v18 = vpop.permute.xlu0 %3541 }
 0x2ff   : > { %v3662_v52 = vcombine.high %v3637_v40, %v3653_v10  ;;  %v3546_v19 = vpop.permute.xlu1 %3545  ;;  %v3677_v9 = vcombine.low %v3644_v63, %v3660_v51  ;;  %v3661_v34 = vcombine.low %v3637_v40, %v3653_v10  ;;  %v3678_v42 = vcombine.high %v3644_v63, %v3660_v51 }
 0x300   : > { %v3561_v35 = vcombine.low %v3538_v32, %v3546_v19  ;;  %v3562_v25 = vcombine.high %v3538_v32, %v3546_v19  ;;  %v15326_v10 = vand.u32 4294901760, %v3062_v7 }
 0x301   : > { %v3676_v57 = vrot.slane %v3662_v52, %v14465_v29  ;;  %v3685_v30 = vrot.slane %v3677_v9, %v14465_v29  ;;  %v15310_v58 = vrot.slane %v3661_v34, %v14465_v29 }
 0x302   : > { %v3550_v31 = vpop.permute.xlu0 %3549  ;;  %2662 = vmatmul.mubr.f32.vlgmr.msra.gmra.mrb[0].mxu0 %v2424_v5  ;;  %v3569_v62 = vrot.slane %v3561_v35, %v14461_v11  ;;  %v3576_v46 = vrot.slane %v3562_v25, %v14461_v11  ;;  %v15338_v9 = vsub.f32 %v3062_v7, %v15326_v10 }
 0x303   : > { %v3577_v38 = vcombine.low %v3542_v18, %v3550_v31  ;;  %v3578_v26 = vcombine.high %v3542_v18, %v3550_v31  ;;  %2675 = vmatpush1.msra.mxu0 %v2441_v50  ;;  %3730 = vrot.lane.b32.xlu1 %v3676_v57, %s14347_s18  ;;  %v3693_v15 = vcombine.high %v15310_v58, %v14344_v1 }
 0x304   : > { %2747 = vmatprep.subr.mxu0 %v15228_v54  ;;  %v3021_v37 = vpop.permute.xlu1 %3020  ;;  %2738 = vmatprep.mubr.f32.mxu0 %v14344_v1  ;;  %v3692_v54 = vrot.slane %v3678_v42, %v14465_v29  ;;  %v3694_v51 = vcombine.high %v3676_v57, %v14344_v1  ;;  %v3695_v35 = vcombine.high %v3685_v30, %v14344_v1  ;;  %v3139_v34 = vand.u32 4294901760, %v15338_v9 }
 0x305   : > { %v3585_v8 = vrot.slane %v3577_v38, %v14461_v11  ;;  %v3592_v5 = vrot.slane %v3578_v26, %v14461_v11  ;;  %v3054_v38 = vsel %vm907_vm6, %v15173_v23, %v3021_v37 }
 0x306   : > { %v2993_v36 = vpop.permute.xlu0 %2992 }
 0x307   : > { %v3594_v47 = vcombine.high %v3569_v62, %v3585_v8  ;;  %3738 = vrot.lane.b32.xlu1 %v3685_v30, %s14345_s16  ;;  %v3609_v13 = vcombine.low %v3576_v46, %v3592_v5  ;;  %v3593_v22 = vcombine.low %v3569_v62, %v3585_v8  ;;  %v3610_v14 = vcombine.high %v3576_v46, %v3592_v5 }
 0x308   : > { %v3025_v50 = vpop.permute.xlu1 %3024  ;;  %v3047_v25 = vsel %vm907_vm6, %v15179_v3, %v2993_v36  ;;  %v3696_v62 = vcombine.high %v3692_v54, %v14344_v1 }
 0x309   : > { %v3608_v56 = vrot.slane %v3594_v47, %v14465_v29  ;;  %v3617_v40 = vrot.slane %v3609_v13, %v14465_v29  ;;  %v3624_v63 = vrot.slane %v3610_v14, %v14465_v29  ;;  %v15331_v52 = vrot.slane %v3593_v22, %v14465_v29 }
 0x30a   : > { %v2997_v16 = vpop.permute.xlu0 %2996  ;;  %2740 = vmatmul.mubr.f32.vlgmr.msra.gmra.mrb[0].mxu0 %v15270_v48 }
 0x30b   : > { %2749 = vmatpush1.msra.mxu0 %v15283_v28  ;;  %3746 = vrot.lane.b32.xlu1 %v3692_v54, %s14346_s17  ;;  %v3625_v31 = vcombine.high %v15331_v52, %v14344_v1  ;;  %v3048_v8 = vsel %vm909_vm7, %v3047_v25, %v2997_v16  ;;  %v3626_v30 = vcombine.high %v3608_v56, %v14344_v1 }
 0x30c   : > { %3702 = vrot.lane.b32.xlu0 %v3608_v56, %s14347_s18  ;;  %v3029_v41 = vpop.permute.xlu1 %3028  ;;  %2812 = vmatprep.mubr.f32.mxu0 %v14344_v1 }
 0x30e   : > { %v3001_v32 = vpop.permute.xlu0 %3000 }
 0x30f   : > { %3726 = vrot.lane.b32.xlu1 %v3693_v15, %s14349_s20  ;;  %v3049_v5 = vsel %vm911_vm8, %v3048_v8, %v3001_v32 }
 0x310   : > { %3710 = vrot.lane.b32.xlu0 %v3617_v40, %s14345_s16  ;;  %v3033_v28 = vpop.permute.xlu1 %3032 }
 0x312   : > { %v3005_v18 = vpop.permute.xlu0 %3004  ;;  %2814 = vmatmul.mubr.f32.vlgmr.msra.gmra.mrb[0].mxu0 %v15270_v48  ;;  %v3055_v48 = vsel %vm909_vm7, %v3054_v38, %v3025_v50  ;;  %v3140_v50 = vsub.f32 %v15338_v9, %v3139_v34 }
 0x313   : > { %3734 = vrot.lane.b32.xlu1 %v3694_v51, %s14348_s19  ;;  %3136 = vmatprep.mubr.f32.mxu0 %v14344_v1  ;;  %v3056_v42 = vsel %vm911_vm8, %v3055_v48, %v3029_v41  ;;  %v3050_v46 = vsel %vm913_vm9, %v3049_v5, %v3005_v18  ;;  %v3627_v41 = vcombine.high %v3617_v40, %v14344_v1 }
 0x314   : > { %3718 = vrot.lane.b32.xlu0 %v3624_v63, %s14346_s17  ;;  %v3037_v19 = vpop.permute.xlu1 %3036  ;;  %v3057_v23 = vsel %vm913_vm9, %v3056_v42, %v3033_v28  ;;  %v3141_v32 = vand.u32 4294901760, %v3140_v50 }
 0x315   : > { %v3058_v47 = vsel %vm915_vm10, %v3057_v23, %v3037_v19  ;;  %v3628_v19 = vcombine.high %v3624_v63, %v14344_v1 }
 0x316   : > { %v3009_v57 = vpop.permute.xlu0 %3008 }
 0x317   : > { %3742 = vrot.lane.b32.xlu1 %v3695_v35, %s14342_s14  ;;  %v3051_v54 = vsel %vm915_vm10, %v3050_v46, %v3009_v57 }
 0x318   : > { %3698 = vrot.lane.b32.xlu0 %v3625_v31, %s14349_s20  ;;  %v3041_v26 = vpop.permute.xlu1 %3040 }
 0x319   : > { %v3059_v3 = vsel %vm917_vm11, %v3058_v47, %v3041_v26 }
 0x31a   : > { %v3013_v37 = vpop.permute.xlu0 %3012 }
 0x31b   : > { %3750 = vrot.lane.b32.xlu1 %v3696_v62, %s14343_s15  ;;  %v3052_v13 = vsel %vm917_vm11, %v3051_v54, %v3013_v37 }
 0x31c   : > { %3706 = vrot.lane.b32.xlu0 %v3626_v30, %s14348_s19  ;;  %v3045_v36 = vpop.permute.xlu1 %3044 }
 0x31d   : > { %v3060_v56 = vsel %vm919_vm12, %v3059_v3, %v3045_v36 }
 0x31e   : > { %v3068_v16 = vsel %vm1170_vm13, %v3060_v56, 0  ;;  %v3017_v45 = vpop.permute.xlu0 %3016 }
 0x31f   : > { %v15370_v15 = vand.u32 4294901760, %v3068_v16  ;;  %v3053_v7 = vsel %vm919_vm12, %v3052_v13, %v3017_v45 }
 0x320   : > { %v3065_v22 = vsel %vm1170_vm13, %v3053_v7, 0  ;;  %3714 = vrot.lane.b32.xlu0 %v3627_v41, %s14342_s14  ;;  %v4246_v14 = vpop.permute.xlu1 %4245 }
 0x321   : > { %v3149_v28 = vsub.f32 %v3068_v16, %v15370_v15  ;;  %v15376_v51 = vand.u32 4294901760, %v3065_v22  ;;  %3071 = vmatprep.subr.mxu0 %v15370_v15 }
 0x322   : > { %v4250_v18 = vpop.permute.xlu0 %4249 }
 0x323   : > { %v15381_v40 = vsub.f32 %v3065_v22, %v15376_v51  ;;  %3073 = vmatpush1.msra.mxu0 %v15376_v51  ;;  %v3150_v35 = vand.u32 4294901760, %v3149_v28 }
 0x324   : > { %3722 = vrot.lane.b32.xlu0 %v3628_v19, %s14343_s15  ;;  %3142 = vmatmul.mubr.f32.vlgmr.msra.gmra.mrb[0].mxu0 %v3141_v32  ;;  %v4254_v57 = vpop.permute.xlu1 %4253 }
 0x325   : > { %v3156_v31 = vand.u32 4294901760, %v15381_v40  ;;  %v4335_v38 = vcombine.low %v4246_v14, %v4254_v57  ;;  %v3151_v48 = vsub.f32 %v3149_v28, %v3150_v35  ;;  %3222 = vmatprep.mubr.f32.mxu0 %v14344_v1  ;;  %v4336_v63 = vcombine.high %v4246_v14, %v4254_v57 }
 0x326   : > { %v4258_v26 = vpop.permute.xlu0 %4257 }
 0x327   : > { %v4351_v25 = vcombine.low %v4250_v18, %v4258_v26  ;;  %v4352_v42 = vcombine.high %v4250_v18, %v4258_v26  ;;  %v3152_v8 = vand.u32 4294901760, %v3151_v48  ;;  %v3157_v23 = vsub.f32 %v15381_v40, %v3156_v31 }
 0x328   : > { %v4244_v62 = vpop.permute.xlu1 %4243  ;;  %v4343_v37 = vrot.slane %v4335_v38, %v14461_v11  ;;  %v4350_v36 = vrot.slane %v4336_v63, %v14461_v11 }
 0x329   : > { %v4359_v30 = vrot.slane %v4351_v25, %v14461_v11  ;;  %v4366_v5 = vrot.slane %v4352_v42, %v14461_v11  ;;  %3153 = vmatprep.subr.mxu0 %v3152_v8  ;;  %v3158_v46 = vand.u32 4294901760, %v3157_v23 }
 0x32a   : > { %v4248_v47 = vpop.permute.xlu0 %4247 }
 0x32b   : > { %v4368_v3 = vcombine.high %v4343_v37, %v4359_v30  ;;  %3159 = vmatpush1.msra.mxu0 %v3158_v46  ;;  %v4383_v13 = vcombine.low %v4350_v36, %v4366_v5  ;;  %v4384_v18 = vcombine.high %v4350_v36, %v4366_v5  ;;  %v5093_v46 = vrot.slane %v5079_v0, %v14465_v29 }
 0x32c   : > { %v4252_v50 = vpop.permute.xlu1 %4251  ;;  %3224 = vmatmul.mubr.f32.vlgmr.msra.gmra.mrb[0].mxu0 %v15326_v10  ;;  %3232 = vmatprep.subr.mxu0 %v3149_v28  ;;  %v4367_v28 = vcombine.low %v4343_v37, %v4359_v30 }
 0x32d   : > { %v4267_v54 = vcombine.low %v4244_v62, %v4252_v50  ;;  %v4382_v56 = vrot.slane %v4368_v3, %v14465_v29  ;;  %3235 = vmatpush1.msra.mxu0 %v15381_v40  ;;  %3298 = vmatprep.mubr.f32.mxu0 %v14344_v1  ;;  %v4268_v45 = vcombine.high %v4244_v62, %v4252_v50 }
 0x32e   : > { %v4256_v16 = vpop.permute.xlu0 %4255  ;;  %3308 = vmatprep.subr.mxu0 %v15370_v15  ;;  %v4391_v19 = vrot.slane %v4383_v13, %v14465_v29  ;;  %v4398_v26 = vrot.slane %v4384_v18, %v14465_v29  ;;  %v15410_v25 = vrot.slane %v4367_v28, %v14465_v29  ;;  %v5111_v36 = vcombine.high %v5093_v46, %v14344_v1 }
 0x32f   : > { %v4283_v41 = vcombine.low %v4248_v47, %v4256_v16  ;;  %v4284_v7 = vcombine.high %v4248_v47, %v4256_v16  ;;  %4436 = vrot.lane.b32.xlu1 %v4382_v56, %s14347_s18  ;;  %v4275_v22 = vrot.slane %v4267_v54, %v14461_v11  ;;  %v4282_v40 = vrot.slane %v4268_v45, %v14461_v11 }
 0x330   : > { %v4399_v8 = vcombine.high %v15410_v25, %v14344_v1  ;;  %v4400_v37 = vcombine.high %v4382_v56, %v14344_v1  ;;  %v17428_v47 = vcombine.low %v14734_v49, %v14744_v2  ;;  %v17429_v50 = vcombine.high %v14734_v49, %v14744_v2 }
 0x331   : > { %v4291_v14 = vrot.slane %v4283_v41, %v14461_v11  ;;  %v4298_v32 = vrot.slane %v4284_v7, %v14461_v11  ;;  %v5112_v54 = vcombine.high %v5102_v6, %v14344_v1  ;;  %v17430_v49 = vcombine.low %v14737_v55, %v14747_v4 }
 0x332   : > { %v5025_v12 = vrot.slane %v17429_v50, %v14465_v29  ;;  %v5113_v13 = vcombine.high %v5109_v60, %v14344_v1  ;;  %v17431_v45 = vcombine.high %v14737_v55, %v14747_v4 }
 0x333   : > { %v4300_v57 = vcombine.high %v4275_v22, %v4291_v14  ;;  %4444 = vrot.lane.b32.xlu1 %v4391_v19, %s14345_s16  ;;  %v4315_v38 = vcombine.low %v4282_v40, %v4298_v32  ;;  %v4299_v42 = vcombine.low %v4275_v22, %v4291_v14  ;;  %v4316_v63 = vcombine.high %v4282_v40, %v4298_v32  ;;  %v268_v22 = vld [vmem:[%s17384_s2 + $0x10] sm:$0xf] }
 0x334   : > { %3301 = vmatmul.mubr.f32.vlgmr.msra.gmra.mrb[0].mxu0 %v15338_v9  ;;  %v5043_v0 = vcombine.high %v5025_v12, %v14344_v1  ;;  %v5034_v2 = vrot.slane %v17430_v49, %v14465_v29  ;;  %v5041_v41 = vrot.slane %v17431_v45, %v14465_v29 }
 0x335   : > { %v4314_v48 = vrot.slane %v4300_v57, %v14465_v29  ;;  %3310 = vmatpush1.msra.mxu0 %v15376_v51  ;;  %3373 = vmatprep.mubr.f32.mxu0 %v14344_v1  ;;  %v4323_v62 = vrot.slane %v4315_v38, %v14465_v29  ;;  %v15423_v23 = vrot.slane %v4299_v42, %v14465_v29 }
 0x336   : > { %3386 = vmatprep.subr.mxu0 %v3150_v35  ;;  %v4330_v35 = vrot.slane %v4316_v63, %v14465_v29  ;;  %v5044_v56 = vcombine.high %v5034_v2, %v14344_v1  ;;  %v5045_v27 = vcombine.high %v5041_v41, %v14344_v1 }
 0x337   : > { %4408 = vrot.lane.b32.xlu0 %v4314_v48, %s14347_s18  ;;  %4452 = vrot.lane.b32.xlu1 %v4398_v26, %s14346_s17  ;;  %v4331_v9 = vcombine.high %v15423_v23, %v14344_v1  ;;  %v4333_v30 = vcombine.high %v4323_v62, %v14344_v1 }
 0x338   : > { %v4334_v5 = vcombine.high %v4330_v35, %v14344_v1 }
 0x33b   : > { %4416 = vrot.lane.b32.xlu0 %v4323_v62, %s14345_s16  ;;  %4432 = vrot.lane.b32.xlu1 %v4399_v8, %s14349_s20 }
 0x33c   : > { %3377 = vmatmul.mubr.f32.vlgmr.msra.gmra.mrb[0].mxu0 %v3139_v34  ;;  %v4401_v34 = vcombine.high %v4391_v19, %v14344_v1 }
 0x33d   : > { %3390 = vmatpush1.msra.mxu0 %v3156_v31  ;;  %3453 = vmatprep.mubr.f32.mxu0 %v14344_v1  ;;  %v4332_v31 = vcombine.high %v4314_v48, %v14344_v1 }
 0x33e   : > { %3462 = vmatprep.subr.mxu0 %v15370_v15  ;;  %v4402_v15 = vcombine.high %v4398_v26, %v14344_v1 }
 0x33f   : > { %4424 = vrot.lane.b32.xlu0 %v4330_v35, %s14346_s17  ;;  %4440 = vrot.lane.b32.xlu1 %v4400_v37, %s14348_s19 }
 0x343   : > { %4404 = vrot.lane.b32.xlu0 %v4331_v9, %s14349_s20  ;;  %4448 = vrot.lane.b32.xlu1 %v4401_v34, %s14342_s14 }
 0x344   : > { %3455 = vmatmul.mubr.f32.vlgmr.msra.gmra.mrb[0].mxu0 %v15326_v10 }
 0x345   : > { %3464 = vmatpush1.msra.mxu0 %v15376_v51  ;;  %3527 = vmatprep.mubr.f32.mxu0 %v14344_v1  ;;  %v15460_v51 = vrot.slane %v5078_v39, %v14465_v29  ;;  %v15475_v39 = vrot.slane %v17428_v47, %v14465_v29 }
 0x347   : > { %4412 = vrot.lane.b32.xlu0 %v4332_v31, %s14348_s19  ;;  %4456 = vrot.lane.b32.xlu1 %v4402_v15, %s14343_s15  ;;  %v5042_v3 = vcombine.high %v15475_v39, %v14344_v1 }
 0x34b   : > { %4420 = vrot.lane.b32.xlu0 %v4333_v30, %s14342_s14  ;;  %5662 = vrot.lane.b32.xlu1 %v15069_v43, %s14352_s26 }
 0x34c   : > { %3529 = vmatmul.mubr.f32.vlgmr.msra.gmra.mrb[0].mxu0 %v15326_v10  ;;  %v5110_v10 = vcombine.high %v15460_v51, %v14344_v1 }
 0x34d   : > { %3842 = vmatprep.mubr.f32.mxu0 %v14344_v1 }
 0x34f   : > { %4428 = vrot.lane.b32.xlu0 %v4334_v5, %s14343_s15  ;;  %5670 = vrot.lane.b32.xlu1 %v15098_v24, %s14352_s26 }
 0x353   : > { %5666 = vrot.lane.b32.xlu0 %v15085_v61, %s14352_s26  ;;  %5660 = vrot.lane.b32.xlu1 %v14576_v20, %s14352_s26 }
 0x357   : > { %5674 = vrot.lane.b32.xlu0 %v15118_v44, %s14352_s26  ;;  %5668 = vrot.lane.b32.xlu1 %v14702_v17, %s14352_s26 }
 0x35b   : > { %5664 = vrot.lane.b32.xlu0 %v14581_v21, %s14352_s26  ;;  %5143 = vrot.lane.b32.xlu1 %v5110_v10, %s14349_s20 }
 0x35f   : > { %5672 = vrot.lane.b32.xlu0 %v14723_v33, %s14352_s26  ;;  %5147 = vrot.lane.b32.xlu1 %v5093_v46, %s14347_s18 }
 0x363   : > { %5115 = vrot.lane.b32.xlu0 %v5042_v3, %s14349_s20  ;;  %5151 = vrot.lane.b32.xlu1 %v5111_v36, %s14348_s19 }
 0x367   : > { %5119 = vrot.lane.b32.xlu0 %v5025_v12, %s14347_s18  ;;  %5155 = vrot.lane.b32.xlu1 %v5102_v6, %s14345_s16 }
 0x36b   : > { %5123 = vrot.lane.b32.xlu0 %v5043_v0, %s14348_s19  ;;  %5159 = vrot.lane.b32.xlu1 %v5112_v54, %s14342_s14 }
 0x36f   : > { %5127 = vrot.lane.b32.xlu0 %v5034_v2, %s14345_s16  ;;  %5163 = vrot.lane.b32.xlu1 %v5109_v60, %s14346_s17 }
 0x373   : > { %5131 = vrot.lane.b32.xlu0 %v5044_v56, %s14342_s14  ;;  %5167 = vrot.lane.b32.xlu1 %v5113_v13, %s14343_s15 }
 0x375   : > { %v3731_v16 = vpop.permute.xlu1 %3730 }
 0x377   : > { %5135 = vrot.lane.b32.xlu0 %v5041_v41, %s14346_s17  ;;  %6368 = vrot.lane.b32.xlu1 %v15069_v43, %s17397_s10 }
 0x379   : > { %v3739_v59 = vpop.permute.xlu1 %3738 }
 0x37b   : > { %5139 = vrot.lane.b32.xlu0 %v5045_v27, %s14343_s15  ;;  %6376 = vrot.lane.b32.xlu1 %v15098_v24, %s17397_s10 }
 0x37d   : > { %v3747_v53 = vpop.permute.xlu1 %3746 }
 0x37e   : > { %v3703_v7 = vpop.permute.xlu0 %3702 }
 0x37f   : > { %6372 = vrot.lane.b32.xlu0 %v15085_v61, %s17397_s10  ;;  %6366 = vrot.lane.b32.xlu1 %v14576_v20, %s17397_s10  ;;  %v3768_v20 = vsel %vm1166_vm5, %v268_v22, 0 }
 0x381   : > { %v3727_v55 = vpop.permute.xlu1 %3726 }
 0x382   : > { %v3711_v4 = vpop.permute.xlu0 %3710  ;;  %v3760_v43 = vsel %vm907_vm6, %v15310_v58, %v3727_v55  ;;  %v15546_v58 = vand.u32 4294901760, %v3768_v20 }
 0x383   : > { %6380 = vrot.lane.b32.xlu0 %v15118_v44, %s17397_s10  ;;  %6374 = vrot.lane.b32.xlu1 %v14702_v17, %s17397_s10  ;;  %v3761_v61 = vsel %vm909_vm7, %v3760_v43, %v3731_v16 }
 0x384   : > { %v3844_v40 = vsub.f32 %v3768_v20, %v15546_v58 }
 0x385   : > { %v3735_v24 = vpop.permute.xlu1 %3734 }
 0x386   : > { %v3719_v14 = vpop.permute.xlu0 %3718  ;;  %v3762_v32 = vsel %vm911_vm8, %v3761_v61, %v3735_v24  ;;  %v3845_v8 = vand.u32 4294901760, %v3844_v40 }
 0x387   : > { %6370 = vrot.lane.b32.xlu0 %v14581_v21, %s17397_s10  ;;  %v3763_v28 = vsel %vm913_vm9, %v3762_v32, %v3739_v59  ;;  %v269_v59 = vld [vmem:[%s17384_s2 + $0x14] sm:$0xf] }
 0x388   : > { %v3846_v9 = vsub.f32 %v3844_v40, %v3845_v8 }
 0x389   : > { %v3743_v18 = vpop.permute.xlu1 %3742 }
 0x38a   : > { %v3699_v44 = vpop.permute.xlu0 %3698  ;;  %v3764_v19 = vsel %vm915_vm10, %v3763_v28, %v3743_v18  ;;  %v3847_v47 = vand.u32 4294901760, %v3846_v9 }
 0x38b   : > { %v3753_v17 = vsel %vm907_vm6, %v15331_v52, %v3699_v44  ;;  %6378 = vrot.lane.b32.xlu0 %v14723_v33, %s17397_s10  ;;  %v3765_v57 = vsel %vm917_vm11, %v3764_v19, %v3747_v53  ;;  %s17434_s10 = smov 126  }
 0x38c   : > { %v3754_v21 = vsel %vm909_vm7, %v3753_v17, %v3703_v7  ;;  %v4474_v7 = vsel %vm1166_vm5, %v269_v59, 0 }
 0x38d   : > { %v3751_v38 = vpop.permute.xlu1 %3750  ;;  %v15582_v22 = vand.u32 4294901760, %v4474_v7 }
 0x38e   : > { %v3707_v48 = vpop.permute.xlu0 %3706  ;;  %v3766_v26 = vsel %vm919_vm12, %v3765_v57, %v3751_v38 }
 0x38f   : > { %v3755_v42 = vsel %vm911_vm8, %v3754_v21, %v3707_v48  ;;  %v3774_v63 = vsel %vm1170_vm13, %v3766_v26, 0 }
 0x390   : > { %v3776_v62 = vand.u32 4294901760, %v3774_v63  ;;  %v3756_v35 = vsel %vm913_vm9, %v3755_v42, %v3711_v4 }
 0x392   : > { %v3855_v52 = vsub.f32 %v3774_v63, %v3776_v62  ;;  %v3715_v33 = vpop.permute.xlu0 %3714  ;;  %3777 = vmatprep.subr.mxu0 %v3776_v62 }
 0x393   : > { %v3757_v37 = vsel %vm915_vm10, %v3756_v35, %v3715_v33 }
 0x394   : > { %v3856_v34 = vand.u32 4294901760, %v3855_v52  ;;  %v3758_v31 = vsel %vm917_vm11, %v3757_v37, %v3719_v14 }
 0x396   : > { %v3723_v15 = vpop.permute.xlu0 %3722  ;;  %v3857_v30 = vsub.f32 %v3855_v52, %v3856_v34 }
 0x397   : > { %v3759_v5 = vsel %vm919_vm12, %v3758_v31, %v3723_v15 }
 0x398   : > { %v3771_v10 = vsel %vm1170_vm13, %v3759_v5, 0  ;;  %v3858_v46 = vand.u32 4294901760, %v3857_v30 }
 0x399   : > { %v3778_v3 = vand.u32 4294901760, %v3771_v10 }
 0x39b   : > { %v3861_v36 = vsub.f32 %v3771_v10, %v3778_v3  ;;  %3779 = vmatpush1.msra.mxu0 %v3778_v3 }
 0x39c   : > { %3848 = vmatmul.mubr.f32.vlgmr.msra.gmra.mrb[0].mxu0 %v3847_v47  ;;  %3859 = vmatprep.subr.mxu0 %v3858_v46 }
 0x39d   : > { %v3862_v50 = vand.u32 4294901760, %v3861_v36  ;;  %3928 = vmatprep.mubr.f32.mxu0 %v14344_v1 }
 0x39f   : > { %v3863_v12 = vsub.f32 %v3861_v36, %v3862_v50 }
 0x3a1   : > { %v3864_v6 = vand.u32 4294901760, %v3863_v12  ;;  %v4437_v0 = vpop.permute.xlu1 %4436 }
 0x3a3   : > { %3865 = vmatpush1.msra.mxu0 %v3864_v6 }
 0x3a4   : > { %3930 = vmatmul.mubr.f32.vlgmr.msra.gmra.mrb[0].mxu0 %v15546_v58  ;;  %3938 = vmatprep.subr.mxu0 %v3855_v52 }
 0x3a5   : > { %3941 = vmatpush1.msra.mxu0 %v3861_v36  ;;  %4004 = vmatprep.mubr.f32.mxu0 %v14344_v1  ;;  %v4445_v54 = vpop.permute.xlu1 %4444 }
 0x3a6   : > { %4014 = vmatprep.subr.mxu0 %v3776_v62 }
 0x3a9   : > { %v4409_v49 = vpop.permute.xlu0 %4408  ;;  %v4453_v2 = vpop.permute.xlu1 %4452 }
 0x3ac   : > { %4007 = vmatmul.mubr.f32.vlgmr.msra.gmra.mrb[0].mxu0 %v3844_v40 }
 0x3ad   : > { %4016 = vmatpush1.msra.mxu0 %v3778_v3  ;;  %v4417_v60 = vpop.permute.xlu0 %4416  ;;  %4079 = vmatprep.mubr.f32.mxu0 %v14344_v1  ;;  %v4433_v56 = vpop.permute.xlu1 %4432 }
 0x3ae   : > { %4092 = vmatprep.subr.mxu0 %v3856_v34  ;;  %v4466_v13 = vsel %vm907_vm6, %v15410_v25, %v4433_v56 }
 0x3af   : > { %v4467_v45 = vsel %vm909_vm7, %v4466_v13, %v4437_v0 }
 0x3b1   : > { %v4425_v16 = vpop.permute.xlu0 %4424  ;;  %v4441_v41 = vpop.permute.xlu1 %4440 }
 0x3b2   : > { %v4468_v27 = vsel %vm911_vm8, %v4467_v45, %v4441_v41 }
 0x3b3   : > { %v4469_v55 = vsel %vm913_vm9, %v4468_v27, %v4445_v54 }
 0x3b4   : > { %4083 = vmatmul.mubr.f32.vlgmr.msra.gmra.mrb[0].mxu0 %v3845_v8 }
 0x3b5   : > { %4096 = vmatpush1.msra.mxu0 %v3862_v50  ;;  %v4405_v53 = vpop.permute.xlu0 %4404  ;;  %4159 = vmatprep.mubr.f32.mxu0 %v14344_v1  ;;  %v4449_v4 = vpop.permute.xlu1 %4448 }
 0x3b6   : > { %4168 = vmatprep.subr.mxu0 %v3776_v62  ;;  %v4459_v25 = vsel %vm907_vm6, %v15423_v23, %v4405_v53  ;;  %v4470_v43 = vsel %vm915_vm10, %v4469_v55, %v4449_v4  ;;  %v15591_v23 = vsub.f32 %v4474_v7, %v15582_v22 }
 0x3b7   : > { %v4460_v61 = vsel %vm909_vm7, %v4459_v25, %v4409_v49  ;;  %v4471_v14 = vsel %vm917_vm11, %v4470_v43, %v4453_v2 }
 0x3b8   : > { %v4551_v21 = vand.u32 4294901760, %v15591_v23 }
 0x3b9   : > { %v4413_v24 = vpop.permute.xlu0 %4412  ;;  %v4457_v32 = vpop.permute.xlu1 %4456 }
 0x3ba   : > { %v4461_v20 = vsel %vm911_vm8, %v4460_v61, %v4413_v24  ;;  %v4472_v28 = vsel %vm919_vm12, %v4471_v14, %v4457_v32  ;;  %v4552_v33 = vsub.f32 %v15591_v23, %v4551_v21 }
 0x3bb   : > { %v4480_v18 = vsel %vm1170_vm13, %v4472_v28, 0  ;;  %v4462_v19 = vsel %vm913_vm9, %v4461_v20, %v4417_v60 }
 0x3bc   : > { %4161 = vmatmul.mubr.f32.vlgmr.msra.gmra.mrb[0].mxu0 %v15546_v58  ;;  %v15593_v44 = vand.u32 4294901760, %v4480_v18 }
 0x3bd   : > { %4170 = vmatpush1.msra.mxu0 %v3778_v3  ;;  %v4421_v17 = vpop.permute.xlu0 %4420  ;;  %4233 = vmatprep.mubr.f32.mxu0 %v14344_v1  ;;  %v5663_v57 = vpop.permute.xlu1 %5662 }
 0x3be   : > { %v4463_v40 = vsel %vm915_vm10, %v4462_v19, %v4421_v17  ;;  %v15599_v38 = vsub.f32 %v4480_v18, %v15593_v44  ;;  %4483 = vmatprep.subr.mxu0 %v15593_v44 }
 0x3bf   : > { %v4464_v48 = vsel %vm917_vm11, %v4463_v40, %v4425_v16 }
 0x3c0   : > { %v4562_v42 = vand.u32 4294901760, %v15599_v38 }
 0x3c1   : > { %v4429_v26 = vpop.permute.xlu0 %4428  ;;  %v5671_v62 = vpop.permute.xlu1 %5670 }
 0x3c2   : > { %v4465_v63 = vsel %vm919_vm12, %v4464_v48, %v4429_v26  ;;  %v4563_v52 = vsub.f32 %v15599_v38, %v4562_v42  ;;  %v5752_v30 = vcombine.low %v5663_v57, %v5671_v62  ;;  %v5753_v41 = vcombine.high %v5663_v57, %v5671_v62 }
 0x3c3   : > { %v4477_v8 = vsel %vm1170_vm13, %v4465_v63, 0 }
 0x3c4   : > { %v15610_v35 = vand.u32 4294901760, %v4477_v8  ;;  %4235 = vmatmul.mubr.f32.vlgmr.msra.gmra.mrb[0].mxu0 %v15546_v58  ;;  %v4564_v9 = vand.u32 4294901760, %v4563_v52  ;;  %v4553_v58 = vand.u32 4294901760, %v4552_v33  ;;  %v5760_v3 = vrot.slane %v5752_v30, %v14461_v11  ;;  %v270_v30 = vld [vmem:[%s17384_s2 + $0x18] sm:$0xf] }
 0x3c5   : > { %v5667_v37 = vpop.permute.xlu0 %5666  ;;  %4548 = vmatprep.mubr.f32.mxu0 %v14344_v1  ;;  %v15620_v31 = vpop.permute.xlu1 %5660  ;;  %v5767_v43 = vrot.slane %v5753_v41, %v14461_v11 }
 0x3c6   : > { %v15618_v34 = vsub.f32 %v4477_v8, %v15610_v35  ;;  %4485 = vmatpush1.msra.mxu0 %v15610_v35 }
 0x3c7   : > { %4565 = vmatprep.subr.mxu0 %v4564_v9 }
 0x3c8   : > { %v4568_v15 = vand.u32 4294901760, %v15618_v34 }
 0x3c9   : > { %v5675_v5 = vpop.permute.xlu0 %5674  ;;  %v5669_v47 = vpop.permute.xlu1 %5668 }
 0x3ca   : > { %v5768_v10 = vcombine.low %v5667_v37, %v5675_v5  ;;  %v4569_v46 = vsub.f32 %v15618_v34, %v4568_v15  ;;  %v5684_v49 = vcombine.low %v15620_v31, %v5669_v47  ;;  %v5769_v60 = vcombine.high %v5667_v37, %v5675_v5 }
 0x3cb   : > { %v5685_v17 = vcombine.high %v15620_v31, %v5669_v47 }
 0x3cc   : > { %v5776_v36 = vrot.slane %v5768_v10, %v14461_v11  ;;  %4554 = vmatmul.mubr.f32.vlgmr.msra.gmra.mrb[0].mxu0 %v4553_v58  ;;  %v4570_v50 = vand.u32 4294901760, %v4569_v46  ;;  %v5692_v59 = vrot.slane %v5684_v49, %v14461_v11  ;;  %v5783_v53 = vrot.slane %v5769_v60, %v14461_v11 }
 0x3cd   : > { %v5665_v12 = vpop.permute.xlu0 %5664  ;;  %4634 = vmatprep.mubr.f32.mxu0 %v14344_v1  ;;  %v5144_v54 = vpop.permute.xlu1 %5143  ;;  %v5699_v62 = vrot.slane %v5685_v17, %v14461_v11  ;;  %v5185_v46 = vsel %vm1166_vm5, %v270_v30, 0 }
 0x3ce   : > { %v5784_v6 = vcombine.low %v5760_v3, %v5776_v36  ;;  %v5785_v0 = vcombine.high %v5760_v3, %v5776_v36  ;;  %4571 = vmatpush1.msra.mxu0 %v4570_v50  ;;  %v5800_v24 = vcombine.low %v5767_v43, %v5783_v53  ;;  %v5801_v8 = vcombine.high %v5767_v43, %v5783_v53 }
 0x3cf   : > { %4644 = vmatprep.subr.mxu0 %v15599_v38  ;;  %v5177_v52 = vsel %vm907_vm6, %v15460_v51, %v5144_v54  ;;  %v15697_v50 = vand.u32 4294901760, %v5185_v46 }
 0x3d0   : > { %v5799_v2 = vrot.slane %v5785_v0, %v14465_v29  ;;  %v15634_v13 = vrot.slane %v5784_v6, %v14465_v29  ;;  %v5808_v57 = vrot.slane %v5800_v24, %v14465_v29  ;;  %v5815_v47 = vrot.slane %v5801_v8, %v14465_v29 }
 0x3d1   : > { %v5673_v56 = vpop.permute.xlu0 %5672  ;;  %v5148_v45 = vpop.permute.xlu1 %5147 }
 0x3d2   : > { %v5700_v16 = vcombine.low %v5665_v12, %v5673_v56  ;;  %5853 = vrot.lane.b32.xlu1 %v5799_v2, %s14347_s18  ;;  %v5816_v25 = vcombine.high %v15634_v13, %v14344_v1  ;;  %v5817_v14 = vcombine.high %v5799_v2, %v14344_v1  ;;  %v5701_v32 = vcombine.high %v5665_v12, %v5673_v56 }
 0x3d3   : > { %v5818_v37 = vcombine.high %v5808_v57, %v14344_v1  ;;  %v5178_v38 = vsel %vm909_vm7, %v5177_v52, %v5148_v45  ;;  %v5819_v0 = vcombine.high %v5815_v47, %v14344_v1  ;;  %v15716_v45 = vsub.f32 %v5185_v46, %v15697_v50 }
 0x3d4   : > { %v5708_v27 = vrot.slane %v5700_v16, %v14461_v11  ;;  %4636 = vmatmul.mubr.f32.vlgmr.msra.gmra.mrb[0].mxu0 %v15582_v22  ;;  %v5715_v48 = vrot.slane %v5701_v32, %v14461_v11 }
 0x3d5   : > { %4647 = vmatpush1.msra.mxu0 %v15618_v34  ;;  %v5116_v7 = vpop.permute.xlu0 %5115  ;;  %4710 = vmatprep.mubr.f32.mxu0 %v14344_v1  ;;  %v5152_v4 = vpop.permute.xlu1 %5151  ;;  %v5262_v43 = vand.u32 4294901760, %v15716_v45 }
 0x3d6   : > { %v5716_v55 = vcombine.low %v5692_v59, %v5708_v27  ;;  %4720 = vmatprep.subr.mxu0 %v15593_v44  ;;  %5849 = vrot.lane.b32.xlu1 %v5816_v25, %s14349_s20  ;;  %v5717_v28 = vcombine.high %v5692_v59, %v5708_v27  ;;  %v5732_v9 = vcombine.low %v5699_v62, %v5715_v48 }
 0x3d7   : > { %v5179_v58 = vsel %vm911_vm8, %v5178_v38, %v5152_v4  ;;  %v5170_v34 = vsel %vm907_vm6, %v15475_v39, %v5116_v7  ;;  %v5733_v54 = vcombine.high %v5699_v62, %v5715_v48  ;;  %v5263_v17 = vsub.f32 %v15716_v45, %v5262_v43 }
 0x3d8   : > { %v15649_v61 = vrot.slane %v5716_v55, %v14465_v29  ;;  %v5731_v63 = vrot.slane %v5717_v28, %v14465_v29 }
 0x3d9   : > { %v5120_v20 = vpop.permute.xlu0 %5119  ;;  %v5156_v18 = vpop.permute.xlu1 %5155  ;;  %v5747_v25 = vrot.slane %v5733_v54, %v14465_v29 }
 0x3da   : > { %v5748_v19 = vcombine.high %v15649_v61, %v14344_v1  ;;  %5857 = vrot.lane.b32.xlu1 %v5817_v14, %s14348_s19  ;;  %v5749_v31 = vcombine.high %v5731_v63, %v14344_v1  ;;  %v5180_v5 = vsel %vm913_vm9, %v5179_v58, %v5156_v18  ;;  %v5171_v12 = vsel %vm909_vm7, %v5170_v34, %v5120_v20 }
 0x3db   : > { %v5751_v14 = vcombine.high %v5747_v25, %v14344_v1 }
 0x3dc   : > { %4713 = vmatmul.mubr.f32.vlgmr.msra.gmra.mrb[0].mxu0 %v15591_v23  ;;  %5821 = vrot.lane.b32.xlu0 %v5748_v19, %s14349_s20 }
 0x3dd   : > { %4722 = vmatpush1.msra.mxu0 %v15610_v35  ;;  %v5124_v40 = vpop.permute.xlu0 %5123  ;;  %4785 = vmatprep.mubr.f32.mxu0 %v14344_v1  ;;  %v5160_v26 = vpop.permute.xlu1 %5159 }
 0x3de   : > { %4798 = vmatprep.subr.mxu0 %v4562_v42  ;;  %5861 = vrot.lane.b32.xlu1 %v5808_v57, %s14345_s16  ;;  %v5181_v51 = vsel %vm915_vm10, %v5180_v5, %v5160_v26  ;;  %v5172_v49 = vsel %vm911_vm8, %v5171_v12, %v5124_v40 }
 0x3e0   : > { %5825 = vrot.lane.b32.xlu0 %v5731_v63, %s14347_s18  ;;  %v5264_v63 = vand.u32 4294901760, %v5263_v17 }
 0x3e1   : > { %v5128_v33 = vpop.permute.xlu0 %5127  ;;  %v5164_v42 = vpop.permute.xlu1 %5163 }
 0x3e2   : > { %5865 = vrot.lane.b32.xlu1 %v5818_v37, %s14342_s14  ;;  %v5182_v3 = vsel %vm917_vm11, %v5181_v51, %v5164_v42  ;;  %v5173_v60 = vsel %vm913_vm9, %v5172_v49, %v5128_v33 }
 0x3e4   : > { %4789 = vmatmul.mubr.f32.vlgmr.msra.gmra.mrb[0].mxu0 %v4551_v21  ;;  %5829 = vrot.lane.b32.xlu0 %v5749_v31, %s14348_s19  ;;  %v5740_v21 = vrot.slane %v5732_v9, %v14465_v29 }
 0x3e5   : > { %4802 = vmatpush1.msra.mxu0 %v4568_v15  ;;  %v5132_v10 = vpop.permute.xlu0 %5131  ;;  %4865 = vmatprep.mubr.f32.mxu0 %v14344_v1  ;;  %v5168_v23 = vpop.permute.xlu1 %5167 }
 0x3e6   : > { %4874 = vmatprep.subr.mxu0 %v15593_v44  ;;  %v5183_v36 = vsel %vm919_vm12, %v5182_v3, %v5168_v23  ;;  %5869 = vrot.lane.b32.xlu1 %v5815_v47, %s14346_s17  ;;  %v5750_v39 = vcombine.high %v5740_v21, %v14344_v1  ;;  %v5174_v16 = vsel %vm915_vm10, %v5173_v60, %v5132_v10 }
 0x3e7   : > { %v5191_v15 = vsel %vm1170_vm13, %v5183_v36, 0 }
 0x3e8   : > { %5833 = vrot.lane.b32.xlu0 %v5740_v21, %s14345_s16  ;;  %v15700_v6 = vand.u32 4294901760, %v5191_v15 }
 0x3e9   : > { %v5136_v44 = vpop.permute.xlu0 %5135  ;;  %v15704_v2 = vpop.permute.xlu1 %6368 }
 0x3ea   : > { %v15709_v56 = vsub.f32 %v5191_v15, %v15700_v6  ;;  %5873 = vrot.lane.b32.xlu1 %v5819_v0, %s14343_s15  ;;  %v5175_v41 = vsel %vm917_vm11, %v5174_v16, %v5136_v44 }
 0x3ec   : > { %4867 = vmatmul.mubr.f32.vlgmr.msra.gmra.mrb[0].mxu0 %v15582_v22  ;;  %5837 = vrot.lane.b32.xlu0 %v5750_v39, %s14342_s14  ;;  %v5273_v27 = vand.u32 4294901760, %v15709_v56 }
 0x3ed   : > { %4876 = vmatpush1.msra.mxu0 %v15610_v35  ;;  %v5140_v59 = vpop.permute.xlu0 %5139  ;;  %4939 = vmatprep.mubr.f32.mxu0 %v14344_v1  ;;  %v6377_v7 = vpop.permute.xlu1 %6376 }
 0x3ee   : > { %5194 = vmatprep.subr.mxu0 %v15700_v6  ;;  %v5176_v53 = vsel %vm919_vm12, %v5175_v41, %v5140_v59  ;;  %v5274_v35 = vsub.f32 %v15709_v56, %v5273_v27  ;;  %v6458_v18 = vcombine.low %v15704_v2, %v6377_v7  ;;  %v6459_v5 = vcombine.high %v15704_v2, %v6377_v7 }
 0x3ef   : > { %v5188_v55 = vsel %vm1170_vm13, %v5176_v53, 0 }
 0x3f0   : > { %v15726_v4 = vand.u32 4294901760, %v5188_v55  ;;  %5841 = vrot.lane.b32.xlu0 %v5747_v25, %s14346_s17  ;;  %v5275_v19 = vand.u32 4294901760, %v5274_v35  ;;  %v6473_v23 = vrot.slane %v6459_v5, %v14461_v11  ;;  %v282_v35 = vld [vmem:[%s17385_s3] sm:$0xff] }
 0x3f1   : > { %v6373_v24 = vpop.permute.xlu0 %6372  ;;  %v6367_v32 = vpop.permute.xlu1 %6366 }
 0x3f2   : > { %v15734_v20 = vsub.f32 %v5188_v55, %v15726_v4 }
 0x3f4   : > { %v5279_v28 = vand.u32 4294901760, %v15734_v20  ;;  %4941 = vmatmul.mubr.f32.vlgmr.msra.gmra.mrb[0].mxu0 %v15582_v22  ;;  %5845 = vrot.lane.b32.xlu0 %v5751_v14, %s14343_s15  ;;  %v6466_v22 = vrot.slane %v6458_v18, %v14461_v11 }
 0x3f5   : > { %5196 = vmatpush1.msra.mxu0 %v15726_v4  ;;  %v6381_v40 = vpop.permute.xlu0 %6380  ;;  %5259 = vmatprep.mubr.f32.mxu0 %v14344_v1  ;;  %v6375_v62 = vpop.permute.xlu1 %6374 }
 0x3f6   : > { %5276 = vmatprep.subr.mxu0 %v5275_v19  ;;  %v6474_v57 = vcombine.low %v6373_v24, %v6381_v40  ;;  %v5280_v48 = vsub.f32 %v15734_v20, %v5279_v28  ;;  %v6390_v37 = vcombine.low %v6367_v32, %v6375_v62  ;;  %v6475_v42 = vcombine.high %v6373_v24, %v6381_v40 }
 0x3f7   : > { %v6391_v0 = vcombine.high %v6367_v32, %v6375_v62 }
 0x3f8   : > { %v6482_v26 = vrot.slane %v6474_v57, %v14461_v11  ;;  %v5281_v52 = vand.u32 4294901760, %v5280_v48  ;;  %v6398_v51 = vrot.slane %v6390_v37, %v14461_v11  ;;  %v6489_v47 = vrot.slane %v6475_v42, %v14461_v11 }
 0x3f9   : > { %v6371_v8 = vpop.permute.xlu0 %6370  ;;  %v6405_v39 = vrot.slane %v6391_v0, %v14461_v11 }
 0x3fa   : > { %v6490_v33 = vcombine.low %v6466_v22, %v6482_v26  ;;  %v6491_v31 = vcombine.high %v6466_v22, %v6482_v26  ;;  %v6506_v36 = vcombine.low %v6473_v23, %v6489_v47  ;;  %v6507_v60 = vcombine.high %v6473_v23, %v6489_v47 }
 0x3fc   : > { %5265 = vmatmul.mubr.f32.vlgmr.msra.gmra.mrb[0].mxu0 %v5264_v63  ;;  %v15752_v9 = vrot.slane %v6490_v33, %v14465_v29  ;;  %v6505_v3 = vrot.slane %v6491_v31, %v14465_v29  ;;  %v6514_v54 = vrot.slane %v6506_v36, %v14465_v29  ;;  %v6521_v53 = vrot.slane %v6507_v60, %v14465_v29 }
 0x3fd   : > { %5282 = vmatpush1.msra.mxu0 %v5281_v52  ;;  %v6379_v38 = vpop.permute.xlu0 %6378  ;;  %5345 = vmatprep.mubr.f32.mxu0 %v14344_v1 }
 0x3fe   : > { %5355 = vmatprep.subr.mxu0 %v15709_v56  ;;  %v6406_v30 = vcombine.low %v6371_v8, %v6379_v38  ;;  %v6522_v58 = vcombine.high %v15752_v9, %v14344_v1  ;;  %v6523_v34 = vcombine.high %v6505_v3, %v14344_v1  ;;  %v6407_v12 = vcombine.high %v6371_v8, %v6379_v38 }
 0x3ff   : > { %v6524_v16 = vcombine.high %v6514_v54, %v14344_v1  ;;  %v6525_v56 = vcombine.high %v6521_v53, %v14344_v1 }
 0x400   : > { %v6414_v10 = vrot.slane %v6406_v30, %v14461_v11  ;;  %6555 = vrot.lane.b32.xlu1 %v6522_v58, %s14349_s20  ;;  %v6421_v49 = vrot.slane %v6407_v12, %v14461_v11 }
 0x402   : > { %v6422_v46 = vcombine.low %v6398_v51, %v6414_v10  ;;  %v6423_v44 = vcombine.high %v6398_v51, %v6414_v10  ;;  %v6438_v41 = vcombine.low %v6405_v39, %v6421_v49 }
 0x404   : > { %5347 = vmatmul.mubr.f32.vlgmr.msra.gmra.mrb[0].mxu0 %v15697_v50  ;;  %6559 = vrot.lane.b32.xlu1 %v6505_v3, %s14347_s18  ;;  %v15768_v21 = vrot.slane %v6422_v46, %v14465_v29  ;;  %v6437_v2 = vrot.slane %v6423_v44, %v14465_v29  ;;  %v6446_v7 = vrot.slane %v6438_v41, %v14465_v29 }
 0x405   : > { %5358 = vmatpush1.msra.mxu0 %v15734_v20  ;;  %5421 = vmatprep.mubr.f32.mxu0 %v14344_v1 }
 0x406   : > { %5431 = vmatprep.subr.mxu0 %v15700_v6  ;;  %v6454_v15 = vcombine.high %v15768_v21, %v14344_v1  ;;  %v6455_v59 = vcombine.high %v6437_v2, %v14344_v1  ;;  %v6456_v25 = vcombine.high %v6446_v7, %v14344_v1 }
 0x408   : > { %6563 = vrot.lane.b32.xlu1 %v6523_v34, %s14348_s19  ;;  %6527 = vrot.lane.b32.xlu0 %v6454_v15, %s14349_s20 }
 0x40c   : > { %5424 = vmatmul.mubr.f32.vlgmr.msra.gmra.mrb[0].mxu0 %v15716_v45  ;;  %6567 = vrot.lane.b32.xlu1 %v6514_v54, %s14345_s16 }
 0x40d   : > { %5433 = vmatpush1.msra.mxu0 %v15726_v4  ;;  %6531 = vrot.lane.b32.xlu0 %v6437_v2, %s14347_s18 }
 0x40e   : > { %5509 = vmatprep.subr.mxu0 %v5273_v27  ;;  %5496 = vmatprep.mubr.f32.mxu0 %v14344_v1  ;;  %v6439_v27 = vcombine.high %v6405_v39, %v6421_v49 }
 0x410   : > { %6571 = vrot.lane.b32.xlu1 %v6524_v16, %s14342_s14  ;;  %v6453_v45 = vrot.slane %v6439_v27, %v14465_v29 }
 0x411   : > { %6535 = vrot.lane.b32.xlu0 %v6455_v59, %s14348_s19 }
 0x414   : > { %5500 = vmatmul.mubr.f32.vlgmr.msra.gmra.mrb[0].mxu0 %v5262_v43  ;;  %6575 = vrot.lane.b32.xlu1 %v6521_v53, %s14346_s17  ;;  %v14356_v43 = vmov 0  }
 0x415   : > { %5513 = vmatpush1.msra.mxu0 %v5279_v28  ;;  %6539 = vrot.lane.b32.xlu0 %v6446_v7, %s14345_s16 }
 0x416   : > { %5585 = vmatprep.subr.mxu0 %v15700_v6  ;;  %5576 = vmatprep.mubr.f32.mxu0 %v14344_v1  ;;  %v6457_v6 = vcombine.high %v6453_v45, %v14344_v1 }
 0x417   : > { %14270 = vset.pattern.permute.xlu1 %v14356_v43  ;;  %14271 = vset.pattern.permute.xlu0 %v14356_v43 }
 0x418   : > { %6579 = vrot.lane.b32.xlu1 %v6525_v56, %s14343_s15 }
 0x419   : > { %6543 = vrot.lane.b32.xlu0 %v6456_v25, %s14342_s14  ;;  %v272_v25 = vld [vmem:[%s17384_s2 + $0x20] sm:$0xf] }
 0x41c   : > { %5578 = vmatmul.mubr.f32.vlgmr.msra.gmra.mrb[0].mxu0 %v15697_v50  ;;  %7074 = vperm.xlu1 %14270, %v282_v35  }
 0x41d   : > { %5587 = vmatpush1.msra.mxu0 %v15726_v4  ;;  %6547 = vrot.lane.b32.xlu0 %v6453_v45, %s14346_s17 }
 0x41e   : > { %5650 = vmatprep.mubr.f32.mxu0 %v14344_v1 }
 0x421   : > { %6551 = vrot.lane.b32.xlu0 %v6457_v6, %s14343_s15 }
 0x424   : > { %5652 = vmatmul.mubr.f32.vlgmr.msra.gmra.mrb[0].mxu0 %v15697_v50  ;;  %v271_v50 = vld [vmem:[%s17384_s2 + $0x1c] sm:$0xf] }
 0x425   : > { %5965 = vmatprep.mubr.f32.mxu0 %v14344_v1  ;;  %v5891_v18 = vsel %vm1166_vm5, %v271_v50, 0 }
 0x426   : > { %v15825_v40 = vand.u32 4294901760, %v5891_v18 }
 0x428   : > { %v5967_v8 = vsub.f32 %v5891_v18, %v15825_v40 }
 0x42a   : > { %v5968_v31 = vand.u32 4294901760, %v5967_v8 }
 0x42c   : > { %v5969_v46 = vsub.f32 %v5967_v8, %v5968_v31 }
 0x42e   : > { %v5970_v44 = vand.u32 4294901760, %v5969_v46 }
 0x444   : > { %v5854_v55 = vpop.permute.xlu1 %5853 }
 0x448   : > { %v5850_v4 = vpop.permute.xlu1 %5849 }
 0x449   : > { %v5883_v19 = vsel %vm907_vm6, %v15634_v13, %v5850_v4 }
 0x44a   : > { %v5884_v57 = vsel %vm909_vm7, %v5883_v19, %v5854_v55  ;;  %v6597_v55 = vsel %vm1166_vm5, %v272_v25, 0  ;;  %v285_v25 = vld [vmem:[%s17387_s5] sm:$0xff] }
 0x44c   : > { %v5858_v24 = vpop.permute.xlu1 %5857 }
 0x44d   : > { %v5885_v22 = vsel %vm911_vm8, %v5884_v57, %v5858_v24 }
 0x44e   : > { %v5822_v20 = vpop.permute.xlu0 %5821 }
 0x44f   : > { %v5876_v30 = vsel %vm907_vm6, %v15649_v61, %v5822_v20 }
 0x450   : > { %v5862_v14 = vpop.permute.xlu1 %5861 }
 0x451   : > { %v5886_v63 = vsel %vm913_vm9, %v5885_v22, %v5862_v14  ;;  %v6672_v14 = vand.u32 4294901760, %v6597_v55 }
 0x452   : > { %v5826_v32 = vpop.permute.xlu0 %5825 }
 0x453   : > { %v5877_v58 = vsel %vm909_vm7, %v5876_v30, %v5826_v32 }
 0x454   : > { %v5866_v28 = vpop.permute.xlu1 %5865 }
 0x455   : > { %v5887_v62 = vsel %vm915_vm10, %v5886_v63, %v5866_v28 }
 0x456   : > { %v5830_v17 = vpop.permute.xlu0 %5829 }
 0x457   : > { %v5878_v10 = vsel %vm911_vm8, %v5877_v58, %v5830_v17  ;;  %v6673_v17 = vsub.f32 %v6597_v55, %v6672_v14 }
 0x458   : > { %v5870_v48 = vpop.permute.xlu1 %5869 }
 0x459   : > { %v5888_v52 = vsel %vm917_vm11, %v5887_v62, %v5870_v48 }
 0x45a   : > { %v5834_v26 = vpop.permute.xlu0 %5833 }
 0x45b   : > { %v5879_v47 = vsel %vm913_vm9, %v5878_v10, %v5834_v26 }
 0x45c   : > { %v5874_v33 = vpop.permute.xlu1 %5873 }
 0x45d   : > { %v5889_v13 = vsel %vm919_vm12, %v5888_v52, %v5874_v33 }
 0x45e   : > { %v5838_v37 = vpop.permute.xlu0 %5837  ;;  %v5897_v38 = vsel %vm1170_vm13, %v5889_v13, 0 }
 0x45f   : > { %v5899_v42 = vand.u32 4294901760, %v5897_v38  ;;  %v5880_v23 = vsel %vm915_vm10, %v5879_v47, %v5838_v37 }
 0x461   : > { %v5978_v5 = vsub.f32 %v5897_v38, %v5899_v42  ;;  %5900 = vmatprep.subr.mxu0 %v5899_v42 }
 0x462   : > { %v5842_v51 = vpop.permute.xlu0 %5841 }
 0x463   : > { %v5979_v3 = vand.u32 4294901760, %v5978_v5  ;;  %v5881_v36 = vsel %vm917_vm11, %v5880_v23, %v5842_v51  ;;  %v13992_v23 = vld [vmem:[%s15884_s29] ss:$0 sm:$0xff] }
 0x465   : > { %v5980_v15 = vsub.f32 %v5978_v5, %v5979_v3 }
 0x466   : > { %v5846_v34 = vpop.permute.xlu0 %5845 }
 0x467   : > { %v5882_v12 = vsel %vm919_vm12, %v5881_v36, %v5846_v34  ;;  %v5981_v54 = vand.u32 4294901760, %v5980_v15 }
 0x468   : > { %v5894_v61 = vsel %vm1170_vm13, %v5882_v12, 0 }
 0x469   : > { %v5901_v0 = vand.u32 4294901760, %v5894_v61 }
 0x46b   : > { %v5984_v49 = vsub.f32 %v5894_v61, %v5901_v0  ;;  %5902 = vmatpush1.msra.mxu0 %v5901_v0 }
 0x46c   : > { %5971 = vmatmul.mubr.f32.vlgmr.msra.gmra.mrb[0].mxu0 %v5970_v44  ;;  %5982 = vmatprep.subr.mxu0 %v5981_v54 }
 0x46d   : > { %v5985_v2 = vand.u32 4294901760, %v5984_v49  ;;  %6051 = vmatprep.mubr.f32.mxu0 %v14344_v1 }
 0x46f   : > { %v5986_v39 = vsub.f32 %v5984_v49, %v5985_v2 }
 0x471   : > { %v5987_v60 = vand.u32 4294901760, %v5986_v39 }
 0x472   : > { %v6556_v16 = vpop.permute.xlu1 %6555 }
 0x473   : > { %5988 = vmatpush1.msra.mxu0 %v5987_v60  ;;  %v6589_v6 = vsel %vm907_vm6, %v15752_v9, %v6556_v16 }
 0x474   : > { %6053 = vmatmul.mubr.f32.vlgmr.msra.gmra.mrb[0].mxu0 %v15825_v40  ;;  %6061 = vmatprep.subr.mxu0 %v5978_v5 }
 0x475   : > { %6064 = vmatpush1.msra.mxu0 %v5984_v49  ;;  %6127 = vmatprep.mubr.f32.mxu0 %v14344_v1 }
 0x476   : > { %6137 = vmatprep.subr.mxu0 %v5899_v42  ;;  %v6560_v41 = vpop.permute.xlu1 %6559 }
 0x477   : > { %v6590_v35 = vsel %vm909_vm7, %v6589_v6, %v6560_v41 }
 0x47a   : > { %v6528_v59 = vpop.permute.xlu0 %6527  ;;  %v6564_v53 = vpop.permute.xlu1 %6563 }
 0x47b   : > { %v6591_v4 = vsel %vm911_vm8, %v6590_v35, %v6564_v53  ;;  %v6582_v48 = vsel %vm907_vm6, %v15768_v21, %v6528_v59 }
 0x47c   : > { %6130 = vmatmul.mubr.f32.vlgmr.msra.gmra.mrb[0].mxu0 %v5967_v8  ;;  %v6674_v8 = vand.u32 4294901760, %v6673_v17 }
 0x47d   : > { %6139 = vmatpush1.msra.mxu0 %v5901_v0  ;;  %6202 = vmatprep.mubr.f32.mxu0 %v14344_v1 }
 0x47e   : > { %6215 = vmatprep.subr.mxu0 %v5979_v3  ;;  %v6568_v7 = vpop.permute.xlu1 %6567  ;;  %v6675_v21 = vsub.f32 %v6673_v17, %v6674_v8 }
 0x47f   : > { %v6532_v56 = vpop.permute.xlu0 %6531  ;;  %v6592_v20 = vsel %vm913_vm9, %v6591_v4, %v6568_v7 }
 0x480   : > { %v6583_v22 = vsel %vm909_vm7, %v6582_v48, %v6532_v56  ;;  %v6676_v10 = vand.u32 4294901760, %v6675_v21 }
 0x482   : > { %v6572_v27 = vpop.permute.xlu1 %6571 }
 0x483   : > { %v6536_v45 = vpop.permute.xlu0 %6535  ;;  %v6593_v32 = vsel %vm915_vm10, %v6592_v20, %v6572_v27 }
 0x484   : > { %6206 = vmatmul.mubr.f32.vlgmr.msra.gmra.mrb[0].mxu0 %v5968_v31  ;;  %v6584_v62 = vsel %vm911_vm8, %v6583_v22, %v6536_v45 }
 0x485   : > { %6219 = vmatpush1.msra.mxu0 %v5985_v2  ;;  %6282 = vmatprep.mubr.f32.mxu0 %v14344_v1 }
 0x486   : > { %6291 = vmatprep.subr.mxu0 %v5899_v42  ;;  %v6576_v43 = vpop.permute.xlu1 %6575 }
 0x487   : > { %v6540_v24 = vpop.permute.xlu0 %6539  ;;  %v6594_v50 = vsel %vm917_vm11, %v6593_v32, %v6576_v43 }
 0x488   : > { %v6585_v52 = vsel %vm913_vm9, %v6584_v62, %v6540_v24 }
 0x48a   : > { %v6580_v9 = vpop.permute.xlu1 %6579 }
 0x48b   : > { %v6544_v28 = vpop.permute.xlu0 %6543  ;;  %v6595_v18 = vsel %vm919_vm12, %v6594_v50, %v6580_v9 }
 0x48c   : > { %v6603_v19 = vsel %vm1170_vm13, %v6595_v18, 0  ;;  %6284 = vmatmul.mubr.f32.vlgmr.msra.gmra.mrb[0].mxu0 %v15825_v40  ;;  %v6586_v13 = vsel %vm915_vm10, %v6585_v52, %v6544_v28 }
 0x48d   : > { %v6605_v57 = vand.u32 4294901760, %v6603_v19  ;;  %6293 = vmatpush1.msra.mxu0 %v5901_v0  ;;  %6356 = vmatprep.mubr.f32.mxu0 %v14344_v1 }
 0x48f   : > { %v6684_v26 = vsub.f32 %v6603_v19, %v6605_v57  ;;  %v6548_v63 = vpop.permute.xlu0 %6547  ;;  %6606 = vmatprep.subr.mxu0 %v6605_v57 }
 0x490   : > { %v6587_v37 = vsel %vm917_vm11, %v6586_v13, %v6548_v63 }
 0x491   : > { %v6685_v33 = vand.u32 4294901760, %v6684_v26 }
 0x493   : > { %v6552_v38 = vpop.permute.xlu0 %6551  ;;  %v6686_v42 = vsub.f32 %v6684_v26, %v6685_v33 }
 0x494   : > { %v6588_v31 = vsel %vm919_vm12, %v6587_v37, %v6552_v38  ;;  %6358 = vmatmul.mubr.f32.vlgmr.msra.gmra.mrb[0].mxu0 %v15825_v40  ;;  %v283_v40 = vld [vmem:[%s17386_s4] sm:$0xff] }
 0x495   : > { %v6600_v30 = vsel %vm1170_vm13, %v6588_v31, 0  ;;  %v6687_v58 = vand.u32 4294901760, %v6686_v42  ;;  %6671 = vmatprep.mubr.f32.mxu0 %v14344_v1  ;;  %v295_v36 = vmul.f32 %v13992_v23, %v283_v40 }
 0x496   : > { %v6607_v5 = vand.u32 4294901760, %v6600_v30 }
 0x497   : > { %v298_v34 = vsel %vm297_vm14, %v295_v36, 0.0 }
 0x498   : > { %v6690_v51 = vsub.f32 %v6600_v30, %v6607_v5  ;;  %6608 = vmatpush1.msra.mxu0 %v6607_v5  ;;  %299 = vadd.xlane.f32.xlu1 %v298_v34 }
 0x499   : > { %6688 = vmatprep.subr.mxu0 %v6687_v58 }
 0x49a   : > { %v6691_v47 = vand.u32 4294901760, %v6690_v51 }
 0x49b   : > { %v15891_v15 = vpop.permute.xlu1 %7074 }
 0x49c   : > { %6677 = vmatmul.mubr.f32.vlgmr.msra.gmra.mrb[0].mxu0 %v6676_v10  ;;  %v6692_v46 = vsub.f32 %v6690_v51, %v6691_v47 }
 0x49d   : > { %6757 = vmatprep.mubr.f32.mxu0 %v14344_v1 }
 0x49e   : > { %v6693_v3 = vand.u32 4294901760, %v6692_v46 }
 0x4a0   : > { %6694 = vmatpush1.msra.mxu0 %v6693_v3 }
 0x4a1   : > { %6767 = vmatprep.subr.mxu0 %v6684_v26 }
 0x4a4   : > { %6759 = vmatmul.mubr.f32.vlgmr.msra.gmra.mrb[0].mxu0 %v6672_v14 }
 0x4a5   : > { %6770 = vmatpush1.msra.mxu0 %v6690_v51  ;;  %6833 = vmatprep.mubr.f32.mxu0 %v14344_v1 }
 0x4a6   : > { %6843 = vmatprep.subr.mxu0 %v6605_v57 }
 0x4ac   : > { %6836 = vmatmul.mubr.f32.vlgmr.msra.gmra.mrb[0].mxu0 %v6673_v17 }
 0x4ad   : > { %6845 = vmatpush1.msra.mxu0 %v6607_v5  ;;  %6908 = vmatprep.mubr.f32.mxu0 %v14344_v1 }
 0x4ae   : > { %6921 = vmatprep.subr.mxu0 %v6685_v33 }
 0x4b4   : > { %6912 = vmatmul.mubr.f32.vlgmr.msra.gmra.mrb[0].mxu0 %v6674_v8 }
 0x4b5   : > { %6925 = vmatpush1.msra.mxu0 %v6691_v47  ;;  %6988 = vmatprep.mubr.f32.mxu0 %v14344_v1 }
 0x4b6   : > { %6997 = vmatprep.subr.mxu0 %v6605_v57 }
 0x4bc   : > { %6990 = vmatmul.mubr.f32.vlgmr.msra.gmra.mrb[0].mxu0 %v6672_v14 }
 0x4bd   : > { %6999 = vmatpush1.msra.mxu0 %v6607_v5  ;;  %7062 = vmatprep.mubr.f32.mxu0 %v14344_v1 }
 0x4c4   : > { %7064 = vmatmul.mubr.f32.vlgmr.msra.gmra.mrb[0].mxu0 %v6672_v14 }
 0x525   : > { %v300_v45 = vpop.xlane.xlu1 %299 }
 0x526   : > { %v304_v6 = vadd.f32 %v300_v45, %v285_v25 }
 0x597   : > { %v7065_v12 = vpop.f32.mrb[0].mxu0 }
 0x598   : > { %v7077_v61 = vadd.f32 %v15891_v15, %v7065_v12  ;;  %v7067_v44 = vpop.f32.mrb[1].mxu0 }
 0x599   : > { %v7078_v0 = vadd.f32 %v15891_v15, %v7067_v44 }
 0x59a   : > { %v7079_v54 = vsel %vm1170_vm13, %v7077_v61, 0.0 }
 0x59b   : > { %v7080_v49 = vsel %vm1170_vm13, %v7078_v0, 0.0 }
 0x59c   : > { %v7081_v2 = vadd.f32 %v7080_v49, %v7079_v54 }
 0x59e   : > { %7082 = vadd.xlane.f32.xlu0 %v7081_v2 }
 0x62b   : > { %v7083_v39 = vpop.xlane.xlu0 %7082 }
 0x62c   : > { %v7085_v60 = vmul.f32 0.00390625, %v7083_v39 }
 0x62e   : > { %v7086_v16 = vsub.f32 %v7077_v61, %v7085_v60  ;;  %v7087_v41 = vsub.f32 %v7078_v0, %v7085_v60 }
 0x630   : > { %v7088_v59 = vmul.f32 %v7086_v16, %v7086_v16  ;;  %v7089_v53 = vmul.f32 %v7087_v41, %v7087_v41 }
 0x632   : > { %v7090_v7 = vsel %vm1170_vm13, %v7088_v59, 0.0  ;;  %v7091_v56 = vsel %vm1170_vm13, %v7089_v53, 0.0 }
 0x633   : > { %v7092_v27 = vadd.f32 %v7091_v56, %v7090_v7 }
 0x635   : > { %7093 = vadd.xlane.f32.xlu0 %v7092_v27 }
 0x64b   : > { %7102 = vperm.xlu0 %14271, %v304_v6  }
 0x6c2   : > { %v7094_v55 = vpop.xlane.xlu0 %7093 }
 0x6c3   : > { %v7095_v35 = vmul.f32 0.00390625, %v7094_v55 }
 0x6c5   : > { %v7096_v43 = vadd.f32 1e-05, %v7095_v35 }
 0x6c7   : > { %14272 = vrsqrt.f32 %v7096_v43 }
 0x6ca   : > { %v7103_v24 = vpop.permute.xlu0 %7102 }
 0x6cb   : > { %v7113_v9 = vrot.slane %v7103_v24, 4 }
 0x6d1   : > { %v14273_v4 = vpop.eup %14272 }
 0x6d2   : > { %v7098_v20 = vmul.f32 %v14273_v4, %v7086_v16  ;;  %v7099_v14 = vmul.f32 %v14273_v4, %v7087_v41 }
 0x6d4   : > { %v7107_v32 = vrot.slane %v7098_v20, 4  ;;  %v7108_v50 = vrot.slane %v7099_v14, 4 }
 0x6d6   : > { %v7111_v28 = vmul.f32 %v7107_v32, %v7103_v24  ;;  %v7112_v18 = vmul.f32 %v7108_v50, %v7103_v24 }
 0x6d8   : > { %v7115_v19 = vadd.f32 %v7113_v9, %v7111_v28  ;;  %v7116_v17 = vadd.f32 %v7113_v9, %v7112_v18 }
 0x6da   : > { %v7117_v57 = vmax.f32 %v7115_v19, 0.0  ;;  %v7118_v48 = vmax.f32 %v7116_v17, 0.0 }
 0x6dc   : > { %7137 = vrot.lane.b32.xlu0 %v7118_v48, %s14346_s17  ;;  %7120 = vrot.lane.b32.xlu1 %v7117_v57, %s14343_s15  ;;  %v7149_v3 = vrot.slane %v7117_v57, 4  ;;  %v7157_v54 = vrot.slane %v7118_v48, 4 }
 0x6e0   : > { %7141 = vrot.lane.b32.xlu0 %v7118_v48, %s14345_s16  ;;  %7122 = vrot.lane.b32.xlu1 %v7117_v57, %s14346_s17 }
 0x6e4   : > { %7145 = vrot.lane.b32.xlu0 %v7118_v48, %s14347_s18  ;;  %7124 = vrot.lane.b32.xlu1 %v7117_v57, %s14342_s14 }
 0x6e8   : > { %7126 = vrot.lane.b32.xlu1 %v7117_v57, %s14345_s16 }
 0x6ec   : > { %7128 = vrot.lane.b32.xlu1 %v7117_v57, %s14348_s19 }
 0x6f0   : > { %7130 = vrot.lane.b32.xlu1 %v7117_v57, %s14347_s18 }
 0x6f4   : > { %7132 = vrot.lane.b32.xlu1 %v7117_v57, %s14349_s20 }
 0x6f8   : > { %7135 = vrot.lane.b32.xlu1 %v7118_v48, %s14343_s15 }
 0x6fc   : > { %7139 = vrot.lane.b32.xlu1 %v7118_v48, %s14342_s14 }
 0x700   : > { %7143 = vrot.lane.b32.xlu1 %v7118_v48, %s14348_s19 }
 0x704   : > { %7147 = vrot.lane.b32.xlu1 %v7118_v48, %s14349_s20 }
 0x74e   : > { %v7121_v22 = vpop.permute.xlu1 %7120  ;;  %v7138_v33 = vpop.permute.xlu0 %7137 }
 0x74f   : > { %v7150_v58 = vrot.slane %v7121_v22, 4  ;;  %v7159_v34 = vrot.slane %v7138_v33, 4 }
 0x751   : > { %v7249_v16 = vcombine.low %v7157_v54, %v7159_v34 }
 0x752   : > { %v7123_v26 = vpop.permute.xlu1 %7122  ;;  %v7142_v37 = vpop.permute.xlu0 %7141 }
 0x753   : > { %v7151_v5 = vrot.slane %v7123_v26, 4  ;;  %v7161_v41 = vrot.slane %v7142_v37, 4  ;;  %v7256_v43 = vrot.slane %v7249_v16, %v14461_v11 }
 0x755   : > { %v7181_v61 = vcombine.low %v7149_v3, %v7151_v5 }
 0x756   : > { %v7125_v63 = vpop.permute.xlu1 %7124  ;;  %v7146_v40 = vpop.permute.xlu0 %7145 }
 0x757   : > { %v7152_v31 = vrot.slane %v7125_v63, 4  ;;  %v7163_v49 = vrot.slane %v7146_v40, 4  ;;  %v7188_v59 = vrot.slane %v7181_v61, %v14461_v11 }
 0x759   : > { %v7189_v23 = vcombine.low %v7150_v58, %v7152_v31  ;;  %v7265_v27 = vcombine.low %v7161_v41, %v7163_v49 }
 0x75a   : > { %v7127_v62 = vpop.permute.xlu1 %7126 }
 0x75b   : > { %v7153_v51 = vrot.slane %v7127_v62, 4  ;;  %v7196_v39 = vrot.slane %v7189_v23, %v14461_v11  ;;  %v7272_v14 = vrot.slane %v7265_v27, %v14461_v11 }
 0x75d   : > { %v7213_v55 = vcombine.low %v7188_v59, %v7196_v39  ;;  %v7214_v35 = vcombine.high %v7188_v59, %v7196_v39 }
 0x75e   : > { %v7129_v8 = vpop.permute.xlu1 %7128 }
 0x75f   : > { %v7154_v21 = vrot.slane %v7129_v8, 4  ;;  %v7221_v28 = vrot.slane %v7213_v55, %v14465_v29  ;;  %v7228_v18 = vrot.slane %v7214_v35, %v14465_v29 }
 0x762   : > { %v7131_v52 = vpop.permute.xlu1 %7130 }
 0x763   : > { %v7155_v30 = vrot.slane %v7131_v52, 4 }
 0x765   : > { %v7197_v36 = vcombine.low %v7153_v51, %v7155_v30 }
 0x766   : > { %v7133_v13 = vpop.permute.xlu1 %7132 }
 0x767   : > { %v7156_v38 = vrot.slane %v7133_v13, 4  ;;  %v7204_v60 = vrot.slane %v7197_v36, %v14461_v11 }
 0x769   : > { %v7205_v10 = vcombine.low %v7154_v21, %v7156_v38 }
 0x76a   : > { %v7136_v42 = vpop.permute.xlu1 %7135 }
 0x76b   : > { %v7158_v12 = vrot.slane %v7136_v42, 4  ;;  %v7212_v44 = vrot.slane %v7205_v10, %v14461_v11 }
 0x76d   : > { %v7229_v53 = vcombine.low %v7204_v60, %v7212_v44  ;;  %v7230_v7 = vcombine.high %v7204_v60, %v7212_v44 }
 0x76e   : > { %v7140_v47 = vpop.permute.xlu1 %7139 }
 0x76f   : > { %v7160_v46 = vrot.slane %v7140_v47, 4  ;;  %v7237_v24 = vrot.slane %v7229_v53, %v14465_v29  ;;  %v7244_v20 = vrot.slane %v7230_v7, %v14465_v29 }
 0x771   : > { %v7257_v2 = vcombine.low %v7158_v12, %v7160_v46  ;;  %v7246_v57 = vcombine.high %v7221_v28, %v7237_v24  ;;  %v7245_v48 = vcombine.low %v7221_v28, %v7237_v24  ;;  %v7248_v22 = vcombine.high %v7228_v18, %v7244_v20 }
 0x772   : > { %v7144_v0 = vpop.permute.xlu1 %7143  ;;  %v7247_v26 = vcombine.low %v7228_v18, %v7244_v20 }
 0x773   : > { %v7264_v25 = vrot.slane %v7257_v2, %v14461_v11  ;;  %v7162_v45 = vrot.slane %v7144_v0, 4  ;;  %v7336_v42 = vrot.slane %v7246_v57, 7  ;;  %v7333_v31 = vrot.slane %v7245_v48, 7 }
 0x774   : > { %v7342_v21 = vrot.slane %v7248_v22, 7  ;;  %v7339_v30 = vrot.slane %v7247_v26, 7  ;;  %v7322_v49 = vrot.slane %v7246_v57, 1  ;;  %v7321_v2 = vrot.slane %v7245_v48, 1 }
 0x775   : > { %v7281_v32 = vcombine.low %v7256_v43, %v7264_v25  ;;  %v7282_v50 = vcombine.high %v7256_v43, %v7264_v25  ;;  %v7324_v16 = vrot.slane %v7248_v22, 1  ;;  %v7323_v41 = vrot.slane %v7247_v26, 1 }
 0x776   : > { %v7148_v56 = vpop.permute.xlu1 %7147  ;;  %v7362_v39 = vsel %vm524_vm0, %v7322_v49, %v7336_v42  ;;  %v7361_v60 = vsel %vm524_vm0, %v7321_v2, %v7333_v31 }
 0x777   : > { %v7164_v6 = vrot.slane %v7148_v56, 4  ;;  %v7289_v63 = vrot.slane %v7281_v32, %v14465_v29  ;;  %v7296_v62 = vrot.slane %v7282_v50, %v14465_v29  ;;  %v7364_v59 = vsel %vm524_vm0, %v7324_v16, %v7342_v21 }
 0x778   : > { %v7363_v53 = vsel %vm524_vm0, %v7323_v41, %v7339_v30 }
 0x779   : > { %v7273_v4 = vcombine.low %v7162_v45, %v7164_v6 }
 0x77b   : > { %v7280_v9 = vrot.slane %v7273_v4, %v14461_v11 }
 0x77d   : > { %v7297_v19 = vcombine.low %v7272_v14, %v7280_v9  ;;  %v7298_v17 = vcombine.high %v7272_v14, %v7280_v9 }
 0x77f   : > { %v7305_v8 = vrot.slane %v7297_v19, %v14465_v29  ;;  %v7312_v52 = vrot.slane %v7298_v17, %v14465_v29 }
 0x781   : > { %v7314_v33 = vcombine.high %v7289_v63, %v7305_v8  ;;  %v7313_v13 = vcombine.low %v7289_v63, %v7305_v8  ;;  %v7316_v37 = vcombine.high %v7296_v62, %v7312_v52  ;;  %v7315_v38 = vcombine.low %v7296_v62, %v7312_v52 }
 0x783   : > { %v7337_v58 = vrot.slane %v7314_v33, 7  ;;  %v7334_v5 = vrot.slane %v7313_v13, 7  ;;  %v7343_v51 = vrot.slane %v7316_v37, 7  ;;  %v7340_v10 = vrot.slane %v7315_v38, 7 }
 0x784   : > { %v7353_v47 = vrot.slane %v7313_v13, 5  ;;  %v7355_v46 = vrot.slane %v7315_v38, 5  ;;  %v7354_v3 = vrot.slane %v7314_v33, 5  ;;  %v7356_v40 = vrot.slane %v7316_v37, 5 }
 0x785   : > { %v7338_v23 = vsel %vm524_vm0, %v7336_v42, %v7337_v58  ;;  %v7335_v36 = vsel %vm524_vm0, %v7333_v31, %v7334_v5  ;;  %v7344_v34 = vsel %vm524_vm0, %v7342_v21, %v7343_v51  ;;  %v7341_v12 = vsel %vm524_vm0, %v7339_v30, %v7340_v10 }
 0x786   : > { %7385 = vrot.lane.b32.xlu1 %v7338_v23, %s14352_s26  ;;  %7379 = vrot.lane.b32.xlu0 %v7335_v36, %s14352_s26  ;;  %v15939_v61 = vsel %vm524_vm0, %v7334_v5, %v7353_v47  ;;  %v15942_v44 = vsel %vm524_vm0, %v7340_v10, %v7355_v46  ;;  %v15945_v0 = vsel %vm524_vm0, %v7337_v58, %v7354_v3 }
 0x787   : > { %v15948_v54 = vsel %vm524_vm0, %v7343_v51, %v7356_v40 }
 0x78a   : > { %7397 = vrot.lane.b32.xlu1 %v7344_v34, %s14352_s26  ;;  %7391 = vrot.lane.b32.xlu0 %v7341_v12, %s14352_s26 }
 0x78e   : > { %7421 = vrot.lane.b32.xlu1 %v7338_v23, %s17432_s11  ;;  %7415 = vrot.lane.b32.xlu0 %v7335_v36, %s17432_s11 }
 0x792   : > { %7433 = vrot.lane.b32.xlu1 %v7344_v34, %s17432_s11  ;;  %7427 = vrot.lane.b32.xlu0 %v7341_v12, %s17432_s11 }
 0x796   : > { %7383 = vrot.lane.b32.xlu1 %v7362_v39, %s14352_s26  ;;  %7377 = vrot.lane.b32.xlu0 %v7361_v60, %s14352_s26 }
 0x79a   : > { %7395 = vrot.lane.b32.xlu1 %v7364_v59, %s14352_s26  ;;  %7389 = vrot.lane.b32.xlu0 %v7363_v53, %s14352_s26 }
 0x79e   : > { %7419 = vrot.lane.b32.xlu1 %v7362_v39, %s17432_s11  ;;  %7413 = vrot.lane.b32.xlu0 %v7361_v60, %s17432_s11 }
 0x7a2   : > { %7431 = vrot.lane.b32.xlu1 %v7364_v59, %s17432_s11  ;;  %7425 = vrot.lane.b32.xlu0 %v7363_v53, %s17432_s11 }
 0x7a6   : > { %7457 = vrot.lane.b32.xlu1 %v7338_v23, %s17433_s12  ;;  %7451 = vrot.lane.b32.xlu0 %v7335_v36, %s17433_s12 }
 0x7aa   : > { %7469 = vrot.lane.b32.xlu1 %v7344_v34, %s17433_s12  ;;  %7463 = vrot.lane.b32.xlu0 %v7341_v12, %s17433_s12 }
 0x7ae   : > { %7455 = vrot.lane.b32.xlu1 %v7362_v39, %s17433_s12  ;;  %7449 = vrot.lane.b32.xlu0 %v7361_v60, %s17433_s12 }
 0x7b2   : > { %7467 = vrot.lane.b32.xlu1 %v7364_v59, %s17433_s12  ;;  %7461 = vrot.lane.b32.xlu0 %v7363_v53, %s17433_s12 }
 0x7f8   : > { %v7386_v7 = vpop.permute.xlu1 %7385  ;;  %v7380_v56 = vpop.permute.xlu0 %7379 }
 0x7fc   : > { %v7398_v27 = vpop.permute.xlu1 %7397  ;;  %v7392_v25 = vpop.permute.xlu0 %7391 }
 0x800   : > { %v7422_v45 = vpop.permute.xlu1 %7421  ;;  %v7416_v6 = vpop.permute.xlu0 %7415 }
 0x801   : > { %v7489_v28 = vsel %vm689_vm1, %v7386_v7, %v7422_v45  ;;  %v7486_v18 = vsel %vm689_vm1, %v7380_v56, %v7416_v6 }
 0x804   : > { %v7434_v55 = vpop.permute.xlu1 %7433  ;;  %v7428_v35 = vpop.permute.xlu0 %7427 }
 0x805   : > { %v7495_v22 = vsel %vm689_vm1, %v7398_v27, %v7434_v55  ;;  %v7492_v26 = vsel %vm689_vm1, %v7392_v25, %v7428_v35 }
 0x808   : > { %v7384_v43 = vpop.permute.xlu1 %7383  ;;  %v7378_v4 = vpop.permute.xlu0 %7377 }
 0x80c   : > { %v7396_v24 = vpop.permute.xlu1 %7395  ;;  %v7390_v20 = vpop.permute.xlu0 %7389 }
 0x810   : > { %v7420_v14 = vpop.permute.xlu1 %7419  ;;  %v7414_v32 = vpop.permute.xlu0 %7413 }
 0x811   : > { %v7488_v42 = vsel %vm689_vm1, %v7384_v43, %v7420_v14  ;;  %v7485_v31 = vsel %vm689_vm1, %v7378_v4, %v7414_v32 }
 0x814   : > { %v7432_v50 = vpop.permute.xlu1 %7431  ;;  %v7426_v9 = vpop.permute.xlu0 %7425 }
 0x815   : > { %v7494_v47 = vsel %vm689_vm1, %v7396_v24, %v7432_v50  ;;  %v7491_v60 = vsel %vm689_vm1, %v7390_v20, %v7426_v9 }
 0x818   : > { %v7458_v19 = vpop.permute.xlu1 %7457  ;;  %v7452_v17 = vpop.permute.xlu0 %7451 }
 0x819   : > { %v15979_v57 = vsel %vm702_vm2, %v7489_v28, %v7458_v19  ;;  %v15982_v48 = vsel %vm702_vm2, %v7486_v18, %v7452_v17 }
 0x81a   : > { %7729 = vrot.lane.b32.xlu1 %v15979_v57, %s14352_s26  ;;  %7725 = vrot.lane.b32.xlu0 %v15982_v48, %s14352_s26  ;;  %v17410_v12 = vrot.slane %v15982_v48, 1  ;;  %v17406_v49 = vrot.slane %v15979_v57, 1  ;;  %v17409_v59 = vrot.slane %v15982_v48, 2  ;;  %v17405_v7 = vrot.slane %v15979_v57, 2 }
 0x81c   : > { %v7470_v63 = vpop.permute.xlu1 %7469  ;;  %v7464_v62 = vpop.permute.xlu0 %7463 }
 0x81d   : > { %v15991_v8 = vsel %vm702_vm2, %v7495_v22, %v7470_v63  ;;  %v15994_v52 = vsel %vm702_vm2, %v7492_v26, %v7464_v62 }
 0x81e   : > { %v7593_v33 = vcombine.low %v15979_v57, %v15991_v8  ;;  %v7594_v13 = vcombine.high %v15979_v57, %v15991_v8  ;;  %v7577_v37 = vcombine.low %v15982_v48, %v15994_v52  ;;  %v7578_v38 = vcombine.high %v15982_v48, %v15994_v52  ;;  %7737 = vrot.lane.b32.xlu1 %v15991_v8, %s14352_s26 }
 0x81f   : > { %7733 = vrot.lane.b32.xlu0 %v15994_v52, %s14352_s26  ;;  %v17408_v4 = vrot.slane %v15994_v52, 1  ;;  %v17404_v24 = vrot.slane %v15991_v8, 1  ;;  %v17407_v20 = vrot.slane %v15994_v52, 2 }
 0x820   : > { %v16011_v21 = vrot.slane %v7593_v33, %v14461_v11  ;;  %v16014_v30 = vrot.slane %v7577_v37, %v14461_v11  ;;  %v7456_v58 = vpop.permute.xlu1 %7455  ;;  %v7450_v5 = vpop.permute.xlu0 %7449  ;;  %v16017_v51 = vrot.slane %v7578_v38, %v14461_v11  ;;  %v16020_v10 = vrot.slane %v7594_v13, %v14461_v11 }
 0x821   : > { %v16024_v46 = vsel %vm702_vm2, %v7488_v42, %v7456_v58  ;;  %v16027_v3 = vsel %vm702_vm2, %v7485_v31, %v7450_v5 }
 0x822   : > { %7727 = vrot.lane.b32.xlu1 %v16024_v46, %s14352_s26  ;;  %v7609_v40 = vcombine.low %v16014_v30, %v16011_v21  ;;  %v7610_v23 = vcombine.high %v16014_v30, %v16011_v21  ;;  %v7625_v36 = vcombine.low %v16017_v51, %v16020_v10  ;;  %v9611_v2 = vrot.slane %v16027_v3, 1 }
 0x823   : > { %7723 = vrot.lane.b32.xlu0 %v16027_v3, %s14352_s26  ;;  %v9616_v39 = vrot.slane %v16024_v46, 1  ;;  %v11733_v53 = vrot.slane %v16027_v3, 2  ;;  %v11738_v14 = vrot.slane %v16024_v46, 2 }
 0x824   : > { %v7468_v16 = vpop.permute.xlu1 %7467  ;;  %v7462_v41 = vpop.permute.xlu0 %7461  ;;  %v16058_v25 = vsel %vm2826_vm3, %v9611_v2, %v17410_v12  ;;  %v7633_v21 = vrot.slane %v7625_v36, %v14465_v29  ;;  %v17436_v36 = vcombine.high %v16017_v51, %v16020_v10 }
 0x825   : > { %v16050_v56 = vsel %vm702_vm2, %v7494_v47, %v7468_v16  ;;  %v16053_v27 = vsel %vm702_vm2, %v7491_v60, %v7462_v41  ;;  %v16063_v45 = vsel %vm2826_vm3, %v9616_v39, %v17406_v49  ;;  %v16098_v17 = vsel %vm4949_vm4, %v11733_v53, %v17409_v59 }
 0x826   : > { %v7525_v6 = vcombine.low %v16024_v46, %v16050_v56  ;;  %v7526_v55 = vcombine.high %v16024_v46, %v16050_v56  ;;  %v7509_v35 = vcombine.low %v16027_v3, %v16053_v27  ;;  %v7510_v43 = vcombine.high %v16027_v3, %v16053_v27  ;;  %7735 = vrot.lane.b32.xlu1 %v16050_v56, %s14352_s26 }
 0x827   : > { %7731 = vrot.lane.b32.xlu0 %v16053_v27, %s14352_s26  ;;  %v9621_v18 = vrot.slane %v16053_v27, 1  ;;  %v9626_v19 = vrot.slane %v16050_v56, 1  ;;  %v11743_v22 = vrot.slane %v16053_v27, 2  ;;  %v16126_v38 = vsel %vm4949_vm4, %v11738_v14, %v17405_v7 }
 0x828   : > { %v16082_v32 = vrot.slane %v7525_v6, %v14461_v11  ;;  %v16085_v50 = vrot.slane %v7509_v35, %v14461_v11  ;;  %v16088_v9 = vrot.slane %v7510_v43, %v14461_v11  ;;  %v16091_v28 = vrot.slane %v7526_v55, %v14461_v11 }
 0x829   : > { %v16116_v13 = vsel %vm2826_vm3, %v9621_v18, %v17408_v4  ;;  %v16121_v37 = vsel %vm2826_vm3, %v9626_v19, %v17404_v24  ;;  %v16131_v42 = vsel %vm4949_vm4, %v11743_v22, %v17407_v20  ;;  %v17403_v6 = vrot.slane %v15991_v8, 2 }
 0x82a   : > { %8907 = vrot.lane.b32.xlu1 %v15979_v57, %s17434_s10  ;;  %v7541_v26 = vcombine.low %v16085_v50, %v16082_v32  ;;  %v9639_v31 = vcombine.low %v16058_v25, %v16116_v13  ;;  %v9640_v58 = vcombine.high %v16058_v25, %v16116_v13  ;;  %v9655_v5 = vcombine.low %v16063_v45, %v16121_v37 }
 0x82b   : > { %8903 = vrot.lane.b32.xlu0 %v15982_v48, %s17434_s10  ;;  %v9656_v47 = vcombine.high %v16063_v45, %v16121_v37  ;;  %v11761_v41 = vcombine.low %v16098_v17, %v16131_v42  ;;  %v11762_v53 = vcombine.high %v16098_v17, %v16131_v42  ;;  %v11748_v55 = vrot.slane %v16050_v56, 2 }
 0x82c   : > { %v16146_v2 = vrot.slane %v9639_v31, %v14461_v11  ;;  %v16149_v39 = vrot.slane %v9640_v58, %v14461_v11  ;;  %v16152_v60 = vrot.slane %v9655_v5, %v14461_v11  ;;  %v17435_v30 = vcombine.high %v16085_v50, %v16082_v32 }
 0x82d   : > { %v16155_v16 = vrot.slane %v9656_v47, %v14461_v11  ;;  %v16176_v19 = vsel %vm4949_vm4, %v11748_v55, %v17403_v6  ;;  %v16181_v22 = vrot.slane %v11761_v41, %v14461_v11  ;;  %v16184_v31 = vrot.slane %v11762_v53, %v14461_v11 }
 0x82e   : > { %8915 = vrot.lane.b32.xlu1 %v15991_v8, %s17434_s10  ;;  %v11777_v58 = vcombine.low %v16126_v38, %v16176_v19  ;;  %v17437_v32 = vcombine.low %v16088_v9, %v16091_v28  ;;  %v17438_v51 = vcombine.high %v16088_v9, %v16091_v28 }
 0x82f   : > { %8911 = vrot.lane.b32.xlu0 %v15994_v52, %s17434_s10 }
 0x830   : > { %v16191_v5 = vrot.slane %v11777_v58, %v14461_v11  ;;  %v7565_v50 = vrot.slane %v17437_v32, %v14465_v29  ;;  %v7572_v10 = vrot.slane %v17438_v51, %v14465_v29  ;;  %v274_v51 = vld [vmem:[%s17384_s2 + $0x28] sm:$0xf] }
 0x832   : > { %8905 = vrot.lane.b32.xlu1 %v16024_v46, %s17434_s10  ;;  %v11778_v46 = vcombine.high %v16126_v38, %v16176_v19 }
 0x833   : > { %8901 = vrot.lane.b32.xlu0 %v16027_v3, %s17434_s10 }
 0x834   : > { %v16194_v47 = vrot.slane %v11778_v46, %v14461_v11 }
 0x88c   : > { %v7730_v18 = vpop.permute.xlu1 %7729  ;;  %v7726_v14 = vpop.permute.xlu0 %7725 }
 0x890   : > { %v7738_v43 = vpop.permute.xlu1 %7737 }
 0x891   : > { %v7831_v58 = vcombine.low %v7730_v18, %v7738_v43  ;;  %v7832_v35 = vcombine.high %v7730_v18, %v7738_v43  ;;  %v7734_v6 = vpop.permute.xlu0 %7733 }
 0x892   : > { %v7815_v46 = vcombine.low %v7726_v14, %v7734_v6  ;;  %v7816_v24 = vcombine.high %v7726_v14, %v7734_v6 }
 0x893   : > { %v7839_v7 = vrot.slane %v7831_v58, %v14461_v11  ;;  %v7846_v3 = vrot.slane %v7832_v35, %v14461_v11 }
 0x894   : > { %v7823_v41 = vrot.slane %v7815_v46, %v14461_v11  ;;  %v7830_v49 = vrot.slane %v7816_v24, %v14461_v11  ;;  %v7728_v53 = vpop.permute.xlu1 %7727 }
 0x895   : > { %v7724_v20 = vpop.permute.xlu0 %7723 }
 0x896   : > { %v7848_v4 = vcombine.high %v7823_v41, %v7839_v7  ;;  %v7863_v55 = vcombine.low %v7830_v49, %v7846_v3  ;;  %v7847_v14 = vcombine.low %v7823_v41, %v7839_v7  ;;  %v7864_v58 = vcombine.high %v7830_v49, %v7846_v3 }
 0x898   : > { %v7736_v59 = vpop.permute.xlu1 %7735  ;;  %v7862_v12 = vrot.slane %v7848_v4, %v14465_v29  ;;  %v7871_v46 = vrot.slane %v7863_v55, %v14465_v29 }
 0x899   : > { %v7763_v33 = vcombine.low %v7728_v53, %v7736_v59  ;;  %v7764_v43 = vcombine.high %v7728_v53, %v7736_v59  ;;  %v7732_v18 = vpop.permute.xlu0 %7731  ;;  %v7878_v59 = vrot.slane %v7864_v58, %v14465_v29  ;;  %v16219_v53 = vrot.slane %v7847_v14, %v14465_v29 }
 0x89a   : > { %v7747_v62 = vcombine.low %v7724_v20, %v7732_v18  ;;  %v7748_v6 = vcombine.high %v7724_v20, %v7732_v18  ;;  %7916 = vrot.lane.b32.xlu0 %v7862_v12, %s14347_s18  ;;  %v7880_v41 = vcombine.high %v7862_v12, %v14344_v1  ;;  %v7881_v18 = vcombine.high %v7871_v46, %v14344_v1 }
 0x89b   : > { %v7771_v35 = vrot.slane %v7763_v33, %v14461_v11  ;;  %v7778_v34 = vrot.slane %v7764_v43, %v14461_v11  ;;  %v7879_v49 = vcombine.high %v16219_v53, %v14344_v1  ;;  %v7882_v12 = vcombine.high %v7878_v59, %v14344_v1 }
 0x89c   : > { %v7755_v24 = vrot.slane %v7747_v62, %v14461_v11  ;;  %v7762_v63 = vrot.slane %v7748_v6, %v14461_v11  ;;  %v16248_v6 = vrot.slane %v7609_v40, %v14465_v29  ;;  %v7624_v40 = vrot.slane %v7610_v23, %v14465_v29 }
 0x89d   : > { %v7556_v23 = vrot.slane %v17435_v30, %v14465_v29 }
 0x89e   : > { %v7780_v4 = vcombine.high %v7755_v24, %v7771_v35  ;;  %7924 = vrot.lane.b32.xlu0 %v7871_v46, %s14345_s16  ;;  %v7795_v7 = vcombine.low %v7762_v63, %v7778_v34  ;;  %v7779_v62 = vcombine.low %v7755_v24, %v7771_v35  ;;  %v7796_v33 = vcombine.high %v7762_v63, %v7778_v34 }
 0x89f   : > { %v7641_v14 = vcombine.high %v16248_v6, %v14344_v1  ;;  %v7642_v24 = vcombine.high %v7624_v40, %v14344_v1 }
 0x8a0   : > { %v7794_v20 = vrot.slane %v7780_v4, %v14465_v29  ;;  %v7803_v3 = vrot.slane %v7795_v7, %v14465_v29  ;;  %v7810_v55 = vrot.slane %v7796_v33, %v14465_v29  ;;  %v16231_v43 = vrot.slane %v7779_v62, %v14465_v29  ;;  %v8908_v7 = vpop.permute.xlu1 %8907 }
 0x8a1   : > { %v7640_v4 = vrot.slane %v17436_v36, %v14465_v29  ;;  %v7576_v62 = vcombine.high %v7572_v10, %v14344_v1 }
 0x8a2   : > { %7932 = vrot.lane.b32.xlu0 %v7878_v59, %s14346_s17  ;;  %7888 = vrot.lane.b32.xlu1 %v7794_v20, %s14347_s18  ;;  %v7811_v34 = vcombine.high %v16231_v43, %v14344_v1  ;;  %v7812_v63 = vcombine.high %v7794_v20, %v14344_v1  ;;  %v7813_v35 = vcombine.high %v7803_v3, %v14344_v1 }
 0x8a3   : > { %v7814_v58 = vcombine.high %v7810_v55, %v14344_v1  ;;  %v7644_v59 = vcombine.high %v7640_v4, %v14344_v1  ;;  %v7575_v20 = vcombine.high %v7565_v50, %v14344_v1 }
 0x8a4   : > { %v8916_v33 = vpop.permute.xlu1 %8915 }
 0x8a5   : > { %v9009_v9 = vcombine.low %v8908_v7, %v8916_v33 }
 0x8a6   : > { %7912 = vrot.lane.b32.xlu0 %v7879_v49, %s14349_s20  ;;  %7896 = vrot.lane.b32.xlu1 %v7803_v3, %s14345_s16  ;;  %v8904_v49 = vpop.permute.xlu0 %8903 }
 0x8aa   : > { %7920 = vrot.lane.b32.xlu0 %v7880_v41, %s14348_s19  ;;  %7904 = vrot.lane.b32.xlu1 %v7810_v55, %s14346_s17  ;;  %v8912_v3 = vpop.permute.xlu0 %8911  ;;  %v9010_v41 = vcombine.high %v8908_v7, %v8916_v33  ;;  %v9017_v55 = vrot.slane %v9009_v9, %v14461_v11 }
 0x8ab   : > { %v8993_v28 = vcombine.low %v8904_v49, %v8912_v3 }
 0x8ae   : > { %7928 = vrot.lane.b32.xlu0 %v7881_v18, %s14342_s14  ;;  %7884 = vrot.lane.b32.xlu1 %v7811_v34, %s14349_s20  ;;  %v8994_v18 = vcombine.high %v8904_v49, %v8912_v3  ;;  %v9001_v34 = vrot.slane %v8993_v28, %v14461_v11  ;;  %v7954_v49 = vsel %vm1166_vm5, %v274_v51, 0 }
 0x8af   : > { %v16368_v3 = vand.u32 4294901760, %v7954_v49 }
 0x8b2   : > { %7936 = vrot.lane.b32.xlu0 %v7882_v12, %s14343_s15  ;;  %7892 = vrot.lane.b32.xlu1 %v7812_v63, %s14348_s19  ;;  %v9024_v12 = vrot.slane %v9010_v41, %v14461_v11  ;;  %v9008_v63 = vrot.slane %v8994_v18, %v14461_v11  ;;  %v16375_v18 = vsub.f32 %v7954_v49, %v16368_v3 }
 0x8b6   : > { %8909 = vrot.lane.b32.xlu0 %v16053_v27, %s17434_s10  ;;  %7900 = vrot.lane.b32.xlu1 %v7813_v35, %s14342_s14  ;;  %v16267_v27 = vrot.slane %v7541_v26, %v14465_v29  ;;  %v7574_v26 = vcombine.high %v7556_v23, %v14344_v1  ;;  %v9026_v35 = vcombine.high %v9001_v34, %v9017_v55 }
 0x8b8   : > { %v7573_v46 = vcombine.high %v16267_v27, %v14344_v1 }
 0x8ba   : > { %7674 = vrot.lane.b32.xlu0 %v7641_v14, %s14349_s20  ;;  %7908 = vrot.lane.b32.xlu1 %v7814_v58, %s14343_s15  ;;  %v9041_v14 = vcombine.low %v9008_v63, %v9024_v12  ;;  %v9040_v58 = vrot.slane %v9026_v35, %v14465_v29 }
 0x8be   : > { %7678 = vrot.lane.b32.xlu0 %v7624_v40, %s14347_s18  ;;  %8913 = vrot.lane.b32.xlu1 %v16050_v56, %s17434_s10  ;;  %v7643_v56 = vcombine.high %v7633_v21, %v14344_v1  ;;  %v9042_v40 = vcombine.high %v9008_v63, %v9024_v12 }
 0x8c2   : > { %7682 = vrot.lane.b32.xlu0 %v7642_v24, %s14348_s19  ;;  %7646 = vrot.lane.b32.xlu1 %v7573_v46, %s14349_s20  ;;  %v9049_v24 = vrot.slane %v9041_v14, %v14465_v29 }
 0x8c4   : > { %v9059_v30 = vcombine.high %v9049_v24, %v14344_v1 }
 0x8c6   : > { %7686 = vrot.lane.b32.xlu0 %v7633_v21, %s14345_s16  ;;  %7650 = vrot.lane.b32.xlu1 %v7556_v23, %s14347_s18  ;;  %v16358_v23 = vpop.permute.xlu0 %8901 }
 0x8ca   : > { %7690 = vrot.lane.b32.xlu0 %v7643_v56, %s14342_s14  ;;  %7654 = vrot.lane.b32.xlu1 %v7574_v26, %s14348_s19  ;;  %v8906_v26 = vpop.permute.xlu1 %8905 }
 0x8ce   : > { %7694 = vrot.lane.b32.xlu0 %v7640_v4, %s14346_s17  ;;  %7658 = vrot.lane.b32.xlu1 %v7565_v50, %s14345_s16 }
 0x8d2   : > { %7698 = vrot.lane.b32.xlu0 %v7644_v59, %s14343_s15  ;;  %7662 = vrot.lane.b32.xlu1 %v7575_v20, %s14342_s14 }
 0x8d6   : > { %7381 = vrot.lane.b32.xlu0 %v15939_v61, %s14352_s26  ;;  %7666 = vrot.lane.b32.xlu1 %v7572_v10, %s14346_s17 }
 0x8da   : > { %7393 = vrot.lane.b32.xlu0 %v15942_v44, %s14352_s26  ;;  %7670 = vrot.lane.b32.xlu1 %v7576_v62, %s14343_s15 }
 0x8de   : > { %7417 = vrot.lane.b32.xlu0 %v15939_v61, %s17432_s11  ;;  %7387 = vrot.lane.b32.xlu1 %v15945_v0, %s14352_s26 }
 0x8e2   : > { %7429 = vrot.lane.b32.xlu0 %v15942_v44, %s17432_s11  ;;  %7399 = vrot.lane.b32.xlu1 %v15948_v54, %s14352_s26 }
 0x8e6   : > { %7453 = vrot.lane.b32.xlu0 %v15939_v61, %s17433_s12  ;;  %7423 = vrot.lane.b32.xlu1 %v15945_v0, %s17432_s11  ;;  %v9025_v61 = vcombine.low %v9001_v34, %v9017_v55 }
 0x8e8   : > { %v16346_v46 = vrot.slane %v9025_v61, %v14465_v29 }
 0x8ea   : > { %7465 = vrot.lane.b32.xlu0 %v15942_v44, %s17433_s12  ;;  %7435 = vrot.lane.b32.xlu1 %v15948_v54, %s17432_s11  ;;  %v9056_v44 = vrot.slane %v9042_v40, %v14465_v29  ;;  %v9057_v21 = vcombine.high %v16346_v46, %v14344_v1 }
 0x8ee   : > { %9094 = vrot.lane.b32.xlu0 %v9040_v58, %s14347_s18  ;;  %7459 = vrot.lane.b32.xlu1 %v15945_v0, %s17433_s12  ;;  %v9058_v0 = vcombine.high %v9040_v58, %v14344_v1 }
 0x8f2   : > { %9102 = vrot.lane.b32.xlu0 %v9049_v24, %s14345_s16  ;;  %7471 = vrot.lane.b32.xlu1 %v15948_v54, %s17433_s12  ;;  %v9060_v54 = vcombine.high %v9056_v44, %v14344_v1  ;;  %v8031_v24 = vand.u32 4294901760, %v16375_v18 }
 0x8f6   : > { %9110 = vrot.lane.b32.xlu0 %v9056_v44, %s14346_s17 }
 0x8fa   : > { %9090 = vrot.lane.b32.xlu0 %v9057_v21, %s14349_s20 }
 0x8fe   : > { %9098 = vrot.lane.b32.xlu0 %v9058_v0, %s14348_s19 }
 0x902   : > { %9106 = vrot.lane.b32.xlu0 %v9059_v30, %s14342_s14 }
 0x906   : > { %9114 = vrot.lane.b32.xlu0 %v9060_v54, %s14343_s15  ;;  %v8032_v54 = vsub.f32 %v16375_v18, %v8031_v24 }
 0x908   : > { %v8033_v51 = vand.u32 4294901760, %v8032_v54 }
 0x90c   : > { %v7917_v56 = vpop.permute.xlu0 %7916 }
 0x910   : > { %v7925_v36 = vpop.permute.xlu0 %7924 }
 0x914   : > { %v7889_v4 = vpop.permute.xlu1 %7888  ;;  %v7933_v32 = vpop.permute.xlu0 %7932 }
 0x918   : > { %v7913_v50 = vpop.permute.xlu0 %7912  ;;  %v7897_v59 = vpop.permute.xlu1 %7896 }
 0x919   : > { %v7946_v20 = vsel %vm907_vm6, %v16219_v53, %v7913_v50 }
 0x91a   : > { %v7947_v10 = vsel %vm909_vm7, %v7946_v20, %v7917_v56 }
 0x91c   : > { %v7921_v7 = vpop.permute.xlu0 %7920  ;;  %v7905_v62 = vpop.permute.xlu1 %7904 }
 0x91d   : > { %v7948_v33 = vsel %vm911_vm8, %v7947_v10, %v7921_v7 }
 0x91e   : > { %v7949_v9 = vsel %vm913_vm9, %v7948_v33, %v7925_v36 }
 0x920   : > { %v7929_v28 = vpop.permute.xlu0 %7928  ;;  %v7885_v41 = vpop.permute.xlu1 %7884 }
 0x921   : > { %v7950_v53 = vsel %vm915_vm10, %v7949_v9, %v7929_v28  ;;  %v7939_v55 = vsel %vm907_vm6, %v16231_v43, %v7885_v41 }
 0x922   : > { %v7951_v34 = vsel %vm917_vm11, %v7950_v53, %v7933_v32  ;;  %v7940_v63 = vsel %vm909_vm7, %v7939_v55, %v7889_v4 }
 0x924   : > { %v7937_v12 = vpop.permute.xlu0 %7936  ;;  %v7893_v35 = vpop.permute.xlu1 %7892 }
 0x925   : > { %v7952_v14 = vsel %vm919_vm12, %v7951_v34, %v7937_v12  ;;  %v7941_v58 = vsel %vm911_vm8, %v7940_v63, %v7893_v35 }
 0x926   : > { %v7960_v61 = vsel %vm1170_vm13, %v7952_v14, 0  ;;  %v7942_v21 = vsel %vm913_vm9, %v7941_v58, %v7897_v59 }
 0x927   : > { %v16382_v40 = vand.u32 4294901760, %v7960_v61 }
 0x928   : > { %v8910_v43 = vpop.permute.xlu0 %8909  ;;  %v7901_v0 = vpop.permute.xlu1 %7900 }
 0x929   : > { %v16386_v44 = vsub.f32 %v7960_v61, %v16382_v40  ;;  %7963 = vmatprep.subr.mxu1 %v16382_v40  ;;  %v7943_v30 = vsel %vm915_vm10, %v7942_v21, %v7901_v0  ;;  %v8925_v7 = vcombine.low %v16358_v23, %v8910_v43  ;;  %v8926_v28 = vcombine.high %v16358_v23, %v8910_v43 }
 0x92a   : > { %v7944_v4 = vsel %vm917_vm11, %v7943_v30, %v7905_v62 }
 0x92b   : > { %v8042_v56 = vand.u32 4294901760, %v16386_v44  ;;  %v8933_v55 = vrot.slane %v8925_v7, %v14461_v11  ;;  %v8940_v14 = vrot.slane %v8926_v28, %v14461_v11 }
 0x92c   : > { %v7675_v36 = vpop.permute.xlu0 %7674  ;;  %v7909_v32 = vpop.permute.xlu1 %7908 }
 0x92d   : > { %v8043_v50 = vsub.f32 %v16386_v44, %v8042_v56  ;;  %v7945_v59 = vsel %vm919_vm12, %v7944_v4, %v7909_v32 }
 0x92e   : > { %v7957_v20 = vsel %vm1170_vm13, %v7945_v59, 0 }
 0x92f   : > { %v8044_v10 = vand.u32 4294901760, %v8043_v50  ;;  %v16402_v49 = vand.u32 4294901760, %v7957_v20 }
 0x930   : > { %v7679_v33 = vpop.permute.xlu0 %7678  ;;  %v8914_v9 = vpop.permute.xlu1 %8913 }
 0x931   : > { %v16406_v62 = vsub.f32 %v7957_v20, %v16402_v49  ;;  %v8941_v41 = vcombine.low %v8906_v26, %v8914_v9  ;;  %v8942_v53 = vcombine.high %v8906_v26, %v8914_v9  ;;  %7965 = vmatpush1.msra.mxu1 %v16402_v49  ;;  %v7708_v20 = vsel %vm907_vm6, %v16248_v6, %v7675_v36 }
 0x932   : > { %8034 = vmatmul.mubr.f32.vlgmr.msra.gmra.mrb[0].mxu1 %v8033_v51  ;;  %8045 = vmatprep.subr.mxu1 %v8044_v10  ;;  %v7709_v9 = vsel %vm909_vm7, %v7708_v20, %v7679_v33 }
 0x933   : > { %v8048_v34 = vand.u32 4294901760, %v16406_v62  ;;  %v8949_v12 = vrot.slane %v8941_v41, %v14461_v11  ;;  %v8956_v63 = vrot.slane %v8942_v53, %v14461_v11  ;;  %8114 = vmatprep.mubr.f32.mxu1 %v14344_v1 }
 0x934   : > { %v7683_v35 = vpop.permute.xlu0 %7682  ;;  %v7647_v23 = vpop.permute.xlu1 %7646 }
 0x935   : > { %v8958_v58 = vcombine.high %v8933_v55, %v8949_v12  ;;  %v8049_v26 = vsub.f32 %v16406_v62, %v8048_v34  ;;  %v8973_v61 = vcombine.low %v8940_v14, %v8956_v63  ;;  %v8957_v54 = vcombine.low %v8933_v55, %v8949_v12 }
 0x936   : > { %v8974_v4 = vcombine.high %v8940_v14, %v8956_v63  ;;  %v7710_v41 = vsel %vm911_vm8, %v7709_v9, %v7683_v35  ;;  %v7701_v35 = vsel %vm907_vm6, %v16267_v27, %v7647_v23 }
 0x937   : > { %v8972_v21 = vrot.slane %v8958_v58, %v14465_v29  ;;  %v8050_v30 = vand.u32 4294901760, %v8049_v26  ;;  %v8981_v50 = vrot.slane %v8973_v61, %v14465_v29  ;;  %v16431_v7 = vrot.slane %v8957_v54, %v14465_v29 }
 0x938   : > { %v7687_v43 = vpop.permute.xlu0 %7686  ;;  %v7651_v0 = vpop.permute.xlu1 %7650  ;;  %v8988_v10 = vrot.slane %v8974_v4, %v14465_v29 }
 0x939   : > { %9066 = vrot.lane.b32.xlu1 %v8972_v21, %s14347_s18  ;;  %8051 = vmatpush1.msra.mxu1 %v8050_v30  ;;  %v7711_v53 = vsel %vm913_vm9, %v7710_v41, %v7687_v43  ;;  %v8989_v36 = vcombine.high %v16431_v7, %v14344_v1  ;;  %v8990_v58 = vcombine.high %v8972_v21, %v14344_v1 }
 0x93a   : > { %8116 = vmatmul.mubr.f32.vlgmr.msra.gmra.mrb[0].mxu1 %v16368_v3  ;;  %8124 = vmatprep.subr.mxu1 %v16386_v44  ;;  %v7702_v26 = vsel %vm909_vm7, %v7701_v35, %v7651_v0  ;;  %v273_v44 = vld [vmem:[%s17384_s2 + $0x24] sm:$0xf]  ;;  %v8991_v0 = vcombine.high %v8981_v50, %v14344_v1 }
 0x93b   : > { %8127 = vmatpush1.msra.mxu1 %v16406_v62  ;;  %8190 = vmatprep.mubr.f32.mxu1 %v14344_v1  ;;  %v8428_v54 = vsel %vm1166_vm5, %v273_v44, 0  ;;  %v8992_v62 = vcombine.high %v8988_v10, %v14344_v1 }
 0x93c   : > { %v7691_v32 = vpop.permute.xlu0 %7690  ;;  %v7655_v59 = vpop.permute.xlu1 %7654  ;;  %8200 = vmatprep.subr.mxu1 %v16382_v40 }
 0x93d   : > { %9074 = vrot.lane.b32.xlu1 %v8981_v50, %s14345_s16  ;;  %v7712_v55 = vsel %vm915_vm10, %v7711_v53, %v7691_v32 }
 0x940   : > { %v7695_v51 = vpop.permute.xlu0 %7694  ;;  %v7659_v28 = vpop.permute.xlu1 %7658 }
 0x941   : > { %9082 = vrot.lane.b32.xlu1 %v8988_v10, %s14346_s17  ;;  %v7713_v12 = vsel %vm917_vm11, %v7712_v55, %v7695_v51 }
 0x942   : > { %8193 = vmatmul.mubr.f32.vlgmr.msra.gmra.mrb[0].mxu1 %v16375_v18  ;;  %v16473_v18 = vand.u32 4294901760, %v8428_v54 }
 0x943   : > { %8202 = vmatpush1.msra.mxu1 %v16402_v49  ;;  %8265 = vmatprep.mubr.f32.mxu1 %v14344_v1 }
 0x944   : > { %v7699_v6 = vpop.permute.xlu0 %7698  ;;  %v7663_v33 = vpop.permute.xlu1 %7662  ;;  %8278 = vmatprep.subr.mxu1 %v8042_v56  ;;  %v7703_v56 = vsel %vm911_vm8, %v7702_v26, %v7655_v59 }
 0x945   : > { %v7714_v63 = vsel %vm919_vm12, %v7713_v12, %v7699_v6  ;;  %9062 = vrot.lane.b32.xlu1 %v8989_v36, %s14349_s20  ;;  %v7704_v30 = vsel %vm913_vm9, %v7703_v56, %v7659_v28  ;;  %v17440_v56 = vrot.slane %v15982_v48, 2 }
 0x946   : > { %v8434_v61 = vsel %vm1170_vm13, %v7714_v63, 0  ;;  %v7705_v27 = vsel %vm915_vm10, %v7704_v30, %v7663_v33 }
 0x947   : > { %v16460_v23 = vand.u32 4294901760, %v8434_v61 }
 0x948   : > { %v7382_v14 = vpop.permute.xlu0 %7381  ;;  %v7667_v43 = vpop.permute.xlu1 %7666 }
 0x949   : > { %9070 = vrot.lane.b32.xlu1 %v8990_v58, %s14348_s19  ;;  %v7706_v4 = vsel %vm917_vm11, %v7705_v27, %v7667_v43  ;;  %v17439_v43 = vrot.slane %v15982_v48, 1 }
 0x94a   : > { %8269 = vmatmul.mubr.f32.vlgmr.msra.gmra.mrb[0].mxu1 %v8031_v24  ;;  %v16476_v24 = vsub.f32 %v8434_v61, %v16460_v23 }
 0x94b   : > { %8282 = vmatpush1.msra.mxu1 %v8048_v34  ;;  %8345 = vmatprep.mubr.f32.mxu1 %v14344_v1 }
 0x94c   : > { %v7394_v21 = vpop.permute.xlu0 %7393  ;;  %v7671_v32 = vpop.permute.xlu1 %7670  ;;  %8354 = vmatprep.subr.mxu1 %v16382_v40  ;;  %v16484_v40 = vsub.f32 %v8428_v54, %v16473_v18  ;;  %v8516_v28 = vand.u32 4294901760, %v16476_v24 }
 0x94d   : > { %v7707_v59 = vsel %vm919_vm12, %v7706_v4, %v7671_v32  ;;  %9078 = vrot.lane.b32.xlu1 %v8991_v0, %s14342_s14  ;;  %v17441_v32 = vrot.slane %v15994_v52, 1 }
 0x94e   : > { %v8431_v50 = vsel %vm1170_vm13, %v7707_v59, 0  ;;  %v8505_v53 = vand.u32 4294901760, %v16484_v40  ;;  %v8517_v36 = vsub.f32 %v16476_v24, %v8516_v28 }
 0x94f   : > { %v16481_v51 = vand.u32 4294901760, %v8431_v50 }
 0x950   : > { %v7418_v20 = vpop.permute.xlu0 %7417  ;;  %v7388_v34 = vpop.permute.xlu1 %7387  ;;  %v8506_v58 = vsub.f32 %v16484_v40, %v8505_v53 }
 0x951   : > { %9086 = vrot.lane.b32.xlu1 %v8992_v62, %s14343_s15  ;;  %v16492_v10 = vsub.f32 %v8431_v50, %v16481_v51  ;;  %v7487_v55 = vsel %vm689_vm1, %v7382_v14, %v7418_v20  ;;  %v8518_v14 = vand.u32 4294901760, %v8517_v36  ;;  %v17442_v20 = vrot.slane %v15994_v52, 2 }
 0x952   : > { %8347 = vmatmul.mubr.f32.vlgmr.msra.gmra.mrb[0].mxu1 %v16368_v3  ;;  %v8507_v50 = vand.u32 4294901760, %v8506_v58 }
 0x953   : > { %8356 = vmatpush1.msra.mxu1 %v16402_v49  ;;  %8419 = vmatprep.mubr.f32.mxu1 %v14344_v1  ;;  %v8522_v35 = vand.u32 4294901760, %v16492_v10 }
 0x954   : > { %v7430_v9 = vpop.permute.xlu0 %7429  ;;  %v7400_v41 = vpop.permute.xlu1 %7399  ;;  %8437 = vmatprep.subr.mxu1 %v16460_v23 }
 0x955   : > { %v7493_v26 = vsel %vm689_vm1, %v7394_v21, %v7430_v9  ;;  %v8523_v48 = vsub.f32 %v16492_v10, %v8522_v35 }
 0x958   : > { %v7454_v6 = vpop.permute.xlu0 %7453  ;;  %v7424_v12 = vpop.permute.xlu1 %7423 }
 0x959   : > { %v7499_v49 = vsel %vm702_vm2, %v7487_v55, %v7454_v6  ;;  %v7490_v54 = vsel %vm689_vm1, %v7388_v34, %v7424_v12 }
 0x95a   : > { %v9614_v33 = vrot.slane %v7499_v49, 1  ;;  %v11736_v63 = vrot.slane %v7499_v49, 2  ;;  %8421 = vmatmul.mubr.f32.vlgmr.msra.gmra.mrb[0].mxu1 %v16368_v3 }
 0x95b   : > { %8439 = vmatpush1.msra.mxu1 %v16481_v51  ;;  %8502 = vmatprep.mubr.f32.mxu1 %v14344_v1 }
 0x95c   : > { %v7466_v61 = vpop.permute.xlu0 %7465  ;;  %v16509_v44 = vsel %vm2826_vm3, %v17439_v43, %v9614_v33  ;;  %v16514_v30 = vsel %vm4949_vm4, %v17440_v56, %v11736_v63  ;;  %v7436_v27 = vpop.permute.xlu1 %7435  ;;  %8519 = vmatprep.subr.mxu1 %v8518_v14  ;;  %v8524_v33 = vand.u32 4294901760, %v8523_v48  ;;  %v17443_v14 = vrot.slane %v15979_v57, 1 }
 0x95d   : > { %v7505_v0 = vsel %vm702_vm2, %v7493_v26, %v7466_v61  ;;  %10323 = vrot.lane.b32.xlu0 %v16509_v44, %s14352_s26  ;;  %v7496_v58 = vsel %vm689_vm1, %v7400_v41, %v7436_v27  ;;  %v17444_v43 = vrot.slane %v15979_v57, 2  ;;  %v17446_v57 = vrot.slane %v15991_v8, 2 }
 0x95e   : > { %v9624_v3 = vrot.slane %v7505_v0, 1  ;;  %v11746_v21 = vrot.slane %v7505_v0, 2 }
 0x960   : > { %v16525_v4 = vpop.permute.xlu0 %9094  ;;  %v16530_v59 = vsel %vm2826_vm3, %v17441_v32, %v9624_v3  ;;  %v16535_v62 = vsel %vm4949_vm4, %v17442_v20, %v11746_v21  ;;  %v7460_v9 = vpop.permute.xlu1 %7459  ;;  %v17445_v21 = vrot.slane %v15991_v8, 1 }
 0x961   : > { %10331 = vrot.lane.b32.xlu0 %v16530_v59, %s14352_s26  ;;  %v9707_v34 = vcombine.low %v16509_v44, %v16530_v59  ;;  %v9708_v55 = vcombine.high %v16509_v44, %v16530_v59  ;;  %v11829_v6 = vcombine.low %v16514_v30, %v16535_v62  ;;  %v11830_v36 = vcombine.high %v16514_v30, %v16535_v62 }
 0x962   : > { %v7502_v52 = vsel %vm702_vm2, %v7490_v54, %v7460_v9  ;;  %8508 = vmatmul.mubr.f32.vlgmr.msra.gmra.mrb[0].mxu1 %v8507_v50 }
 0x963   : > { %v9619_v12 = vrot.slane %v7502_v52, 1  ;;  %v11741_v49 = vrot.slane %v7502_v52, 2  ;;  %8525 = vmatpush1.msra.mxu1 %v8524_v33  ;;  %8588 = vmatprep.mubr.f32.mxu1 %v14344_v1  ;;  %v9715_v8 = vrot.slane %v9707_v34, %v14461_v11  ;;  %v16608_v34 = vrot.slane %v11829_v6, %v14461_v11 }
 0x964   : > { %v16548_v63 = vpop.permute.xlu0 %9102  ;;  %v7472_v26 = vpop.permute.xlu1 %7471  ;;  %8598 = vmatprep.subr.mxu1 %v16476_v24 }
 0x965   : > { %v16554_v61 = vsel %vm2826_vm3, %v17443_v14, %v9619_v12  ;;  %10321 = vrot.lane.b32.xlu0 %v16058_v25, %s14352_s26  ;;  %v16561_v56 = vsel %vm4949_vm4, %v17444_v43, %v11741_v49  ;;  %v7508_v0 = vsel %vm702_vm2, %v7496_v58, %v7472_v26  ;;  %v16603_v26 = vrot.slane %v9708_v55, %v14461_v11 }
 0x966   : > { %10327 = vrot.lane.b32.xlu1 %v16554_v61, %s14352_s26  ;;  %v9629_v41 = vrot.slane %v7508_v0, 1  ;;  %v11751_v27 = vrot.slane %v7508_v0, 2  ;;  %v16614_v0 = vrot.slane %v11830_v36, %v14461_v11  ;;  %v17447_v36 = vcombine.low %v16146_v2, %v16152_v60 }
 0x968   : > { %v9111_v3 = vpop.permute.xlu0 %9110  ;;  %v16571_v48 = vsel %vm2826_vm3, %v17445_v21, %v9629_v41  ;;  %v16578_v54 = vsel %vm4949_vm4, %v17446_v57, %v11751_v27 }
 0x969   : > { %10329 = vrot.lane.b32.xlu0 %v16116_v13, %s14352_s26  ;;  %v9723_v32 = vcombine.low %v16554_v61, %v16571_v48  ;;  %v9724_v50 = vcombine.high %v16554_v61, %v16571_v48  ;;  %v11845_v20 = vcombine.low %v16561_v56, %v16578_v54  ;;  %v11846_v9 = vcombine.high %v16561_v56, %v16578_v54 }
 0x96a   : > { %10335 = vrot.lane.b32.xlu1 %v16571_v48, %s14352_s26  ;;  %8590 = vmatmul.mubr.f32.vlgmr.msra.gmra.mrb[0].mxu1 %v16473_v18 }
 0x96b   : > { %v9731_v52 = vrot.slane %v9723_v32, %v14461_v11  ;;  %v16593_v12 = vrot.slane %v9724_v50, %v14461_v11  ;;  %v16597_v33 = vrot.slane %v11845_v20, %v14461_v11  ;;  %v16600_v58 = vrot.slane %v11846_v9, %v14461_v11  ;;  %8601 = vmatpush1.msra.mxu1 %v16492_v10 }
 0x96c   : > { %v9091_v49 = vpop.permute.xlu0 %9090  ;;  %8664 = vmatprep.mubr.f32.mxu1 %v14344_v1  ;;  %8674 = vmatprep.subr.mxu1 %v16460_v23  ;;  %v16631_v32 = vrot.slane %v17447_v36, %v14465_v29 }
 0x96d   : > { %v9739_v14 = vcombine.low %v9715_v8, %v9731_v52  ;;  %v9740_v43 = vcombine.high %v9715_v8, %v9731_v52  ;;  %v9755_v55 = vcombine.low %v16603_v26, %v16593_v12  ;;  %v9756_v41 = vcombine.high %v16603_v26, %v16593_v12 }
 0x96e   : > { %10325 = vrot.lane.b32.xlu1 %v16063_v45, %s14352_s26  ;;  %v11861_v6 = vcombine.low %v16608_v34, %v16597_v33  ;;  %v11862_v27 = vcombine.high %v16608_v34, %v16597_v33  ;;  %v11877_v50 = vcombine.low %v16614_v0, %v16600_v58  ;;  %v11878_v20 = vcombine.high %v16614_v0, %v16600_v58 }
 0x96f   : > { %v16625_v57 = vrot.slane %v9739_v14, %v14465_v29  ;;  %v9124_v9 = vsel %vm907_vm6, %v16346_v46, %v9091_v49  ;;  %v9703_v52 = vcombine.high %v16631_v32, %v14344_v1  ;;  %v9754_v49 = vrot.slane %v9740_v43, %v14465_v29 }
 0x970   : > { %v9099_v21 = vpop.permute.xlu0 %9098  ;;  %v9125_v12 = vsel %vm909_vm7, %v9124_v9, %v16525_v4  ;;  %v17448_v4 = vcombine.high %v16146_v2, %v16152_v60  ;;  %v11885_v34 = vrot.slane %v11877_v50, %v14465_v29  ;;  %v11892_v50 = vrot.slane %v11878_v20, %v14465_v29 }
 0x971   : > { %v9771_v8 = vcombine.high %v16625_v57, %v14344_v1  ;;  %v9126_v46 = vsel %vm911_vm8, %v9125_v12, %v9099_v21  ;;  %v9772_v24 = vcombine.high %v9754_v49, %v14344_v1  ;;  %v17450_v21 = vcombine.high %v16149_v39, %v16155_v16 }
 0x972   : > { %10333 = vrot.lane.b32.xlu1 %v16121_v37, %s14352_s26  ;;  %8667 = vmatmul.mubr.f32.vlgmr.msra.gmra.mrb[0].mxu1 %v16484_v40  ;;  %v9686_v14 = vrot.slane %v17448_v4, %v14465_v29  ;;  %v9127_v36 = vsel %vm913_vm9, %v9126_v46, %v16548_v63  ;;  %v9763_v40 = vrot.slane %v9755_v55, %v14465_v29 }
 0x973   : > { %9804 = vrot.lane.b32.xlu0 %v9771_v8, %s14349_s20  ;;  %8676 = vmatpush1.msra.mxu1 %v16481_v51  ;;  %v9770_v55 = vrot.slane %v9756_v41, %v14465_v29  ;;  %v9702_v8 = vrot.slane %v17450_v21, %v14465_v29 }
 0x974   : > { %v9107_v26 = vpop.permute.xlu0 %9106  ;;  %8739 = vmatprep.mubr.f32.mxu1 %v14344_v1  ;;  %8752 = vmatprep.subr.mxu1 %v8516_v28  ;;  %v9704_v43 = vcombine.high %v9686_v14, %v14344_v1 }
 0x975   : > { %v9128_v9 = vsel %vm915_vm10, %v9127_v36, %v9107_v26 }
 0x976   : > { %9776 = vrot.lane.b32.xlu1 %v9703_v52, %s14349_s20  ;;  %v9129_v2 = vsel %vm917_vm11, %v9128_v9, %v9111_v3  ;;  %v9774_v52 = vcombine.high %v9770_v55, %v14344_v1 }
 0x977   : > { %9808 = vrot.lane.b32.xlu0 %v9754_v49, %s14347_s18 }
 0x978   : > { %v9115_v28 = vpop.permute.xlu0 %9114 }
 0x979   : > { %v9130_v60 = vsel %vm919_vm12, %v9129_v2, %v9115_v28 }
 0x97a   : > { %9780 = vrot.lane.b32.xlu1 %v9686_v14, %s14347_s18  ;;  %8743 = vmatmul.mubr.f32.vlgmr.msra.gmra.mrb[0].mxu1 %v8505_v53  ;;  %v17449_v53 = vcombine.low %v16149_v39, %v16155_v16  ;;  %v9138_v10 = vsel %vm1170_vm13, %v9130_v60, 0 }
 0x97b   : > { %9812 = vrot.lane.b32.xlu0 %v9772_v24, %s14348_s19  ;;  %8756 = vmatpush1.msra.mxu1 %v8522_v35  ;;  %v9773_v35 = vcombine.high %v9763_v40, %v14344_v1  ;;  %v16686_v3 = vand.u32 4294901760, %v9138_v10 }
 0x97c   : > { %8819 = vmatprep.mubr.f32.mxu1 %v14344_v1  ;;  %8828 = vmatprep.subr.mxu1 %v16460_v23  ;;  %v9695_v63 = vrot.slane %v17449_v53, %v14465_v29 }
 0x97e   : > { %9784 = vrot.lane.b32.xlu1 %v9704_v43, %s14348_s19  ;;  %v9705_v23 = vcombine.high %v9695_v63, %v14344_v1 }
 0x97f   : > { %9816 = vrot.lane.b32.xlu0 %v9763_v40, %s14345_s16 }
 0x982   : > { %9788 = vrot.lane.b32.xlu1 %v9695_v63, %s14345_s16  ;;  %8821 = vmatmul.mubr.f32.vlgmr.msra.gmra.mrb[0].mxu1 %v16473_v18 }
 0x983   : > { %9820 = vrot.lane.b32.xlu0 %v9773_v35, %s14342_s14  ;;  %8830 = vmatpush1.msra.mxu1 %v16481_v51  ;;  %v9706_v51 = vcombine.high %v9702_v8, %v14344_v1 }
 0x984   : > { %8893 = vmatprep.mubr.f32.mxu1 %v14344_v1  ;;  %9141 = vmatprep.subr.mxu1 %v16686_v3 }
 0x986   : > { %9792 = vrot.lane.b32.xlu1 %v9705_v23, %s14342_s14 }
 0x987   : > { %9824 = vrot.lane.b32.xlu0 %v9770_v55, %s14346_s17 }
 0x98a   : > { %9796 = vrot.lane.b32.xlu1 %v9702_v8, %s14346_s17  ;;  %8895 = vmatmul.mubr.f32.vlgmr.msra.gmra.mrb[0].mxu1 %v16473_v18  ;;  %v275_v18 = vld [vmem:[%s17384_s2 + $0x2c] sm:$0xf] }
 0x98b   : > { %9828 = vrot.lane.b32.xlu0 %v9774_v52, %s14343_s15  ;;  %9206 = vmatprep.mubr.f32.mxu1 %v14344_v1 }
 0x98e   : > { %9800 = vrot.lane.b32.xlu1 %v9706_v51, %s14343_s15 }
 0x98f   : > { %11029 = vrot.lane.b32.xlu0 %v16509_v44, %s17434_s10  ;;  %v9132_v44 = vsel %vm1166_vm5, %v275_v18, 0 }
 0x992   : > { %11033 = vrot.lane.b32.xlu1 %v16554_v61, %s17434_s10  ;;  %v16728_v61 = vand.u32 4294901760, %v9132_v44 }
 0x993   : > { %11037 = vrot.lane.b32.xlu0 %v16530_v59, %s17434_s10 }
 0x996   : > { %11041 = vrot.lane.b32.xlu1 %v16571_v48, %s17434_s10  ;;  %v9219_v48 = vsub.f32 %v9138_v10, %v16686_v3 }
 0x997   : > { %11027 = vrot.lane.b32.xlu0 %v16058_v25, %s17434_s10 }
 0x998   : > { %v9220_v4 = vand.u32 4294901760, %v9219_v48 }
 0x99a   : > { %11031 = vrot.lane.b32.xlu1 %v16063_v45, %s17434_s10  ;;  %v9221_v24 = vsub.f32 %v9219_v48, %v9220_v4 }
 0x99b   : > { %11035 = vrot.lane.b32.xlu0 %v16116_v13, %s17434_s10  ;;  %v9208_v13 = vsub.f32 %v9132_v44, %v16728_v61 }
 0x99c   : > { %v9222_v40 = vand.u32 4294901760, %v9221_v24 }
 0x99d   : > { %v9209_v26 = vand.u32 4294901760, %v9208_v13 }
 0x99e   : > { %11039 = vrot.lane.b32.xlu1 %v16121_v37, %s17434_s10 }
 0x99f   : > { %v9210_v36 = vsub.f32 %v9208_v13, %v9209_v26 }
 0x9a1   : > { %v9211_v2 = vand.u32 4294901760, %v9210_v36 }
 0x9ab   : > { %v9067_v39 = vpop.permute.xlu1 %9066 }
 0x9af   : > { %v9075_v16 = vpop.permute.xlu1 %9074 }
 0x9b3   : > { %v9083_v59 = vpop.permute.xlu1 %9082 }
 0x9b7   : > { %v9063_v25 = vpop.permute.xlu1 %9062 }
 0x9b8   : > { %v9117_v45 = vsel %vm907_vm6, %v16431_v7, %v9063_v25 }
 0x9b9   : > { %v9118_v37 = vsel %vm909_vm7, %v9117_v45, %v9067_v39 }
 0x9bb   : > { %v9071_v41 = vpop.permute.xlu1 %9070 }
 0x9bc   : > { %v9119_v12 = vsel %vm911_vm8, %v9118_v37, %v9071_v41 }
 0x9bd   : > { %v9120_v46 = vsel %vm913_vm9, %v9119_v12, %v9075_v16 }
 0x9bf   : > { %v9079_v49 = vpop.permute.xlu1 %9078 }
 0x9c0   : > { %v9121_v14 = vsel %vm915_vm10, %v9120_v46, %v9079_v49 }
 0x9c1   : > { %v9122_v9 = vsel %vm917_vm11, %v9121_v14, %v9083_v59 }
 0x9c3   : > { %v9087_v7 = vpop.permute.xlu1 %9086 }
 0x9c4   : > { %v9123_v28 = vsel %vm919_vm12, %v9122_v9, %v9087_v7 }
 0x9c5   : > { %v9135_v43 = vsel %vm1170_vm13, %v9123_v28, 0 }
 0x9c6   : > { %v9142_v60 = vand.u32 4294901760, %v9135_v43 }
 0x9c8   : > { %v9225_v53 = vsub.f32 %v9135_v43, %v9142_v60  ;;  %9143 = vmatpush1.msra.mxu1 %v9142_v60 }
 0x9c9   : > { %9212 = vmatmul.mubr.f32.vlgmr.msra.gmra.mrb[0].mxu1 %v9211_v2  ;;  %9223 = vmatprep.subr.mxu1 %v9222_v40 }
 0x9ca   : > { %v9226_v63 = vand.u32 4294901760, %v9225_v53  ;;  %9292 = vmatprep.mubr.f32.mxu1 %v14344_v1 }
 0x9cc   : > { %v9227_v10 = vsub.f32 %v9225_v53, %v9226_v63 }
 0x9ce   : > { %v9228_v23 = vand.u32 4294901760, %v9227_v10 }
 0x9cf   : > { %v10324_v35 = vpop.permute.xlu0 %10323 }
 0x9d0   : > { %9229 = vmatpush1.msra.mxu1 %v9228_v23 }
 0x9d1   : > { %9294 = vmatmul.mubr.f32.vlgmr.msra.gmra.mrb[0].mxu1 %v16728_v61  ;;  %9302 = vmatprep.subr.mxu1 %v9219_v48 }
 0x9d2   : > { %9305 = vmatpush1.msra.mxu1 %v9225_v53  ;;  %9368 = vmatprep.mubr.f32.mxu1 %v14344_v1 }
 0x9d3   : > { %v10332_v55 = vpop.permute.xlu0 %10331  ;;  %9378 = vmatprep.subr.mxu1 %v16686_v3 }
 0x9d4   : > { %v10413_v52 = vcombine.low %v10324_v35, %v10332_v55  ;;  %v10414_v39 = vcombine.high %v10324_v35, %v10332_v55 }
 0x9d6   : > { %v10421_v44 = vrot.slane %v10413_v52, %v14461_v11  ;;  %v10428_v37 = vrot.slane %v10414_v39, %v14461_v11 }
 0x9d7   : > { %v10322_v8 = vpop.permute.xlu0 %10321 }
 0x9d8   : > { %v10328_v21 = vpop.permute.xlu1 %10327 }
 0x9d9   : > { %9371 = vmatmul.mubr.f32.vlgmr.msra.gmra.mrb[0].mxu1 %v9208_v13 }
 0x9da   : > { %9380 = vmatpush1.msra.mxu1 %v9142_v60  ;;  %9443 = vmatprep.mubr.f32.mxu1 %v14344_v1 }
 0x9db   : > { %9456 = vmatprep.subr.mxu1 %v9220_v4  ;;  %v10330_v45 = vpop.permute.xlu0 %10329 }
 0x9dc   : > { %v10336_v51 = vpop.permute.xlu1 %10335  ;;  %v10345_v41 = vcombine.low %v10322_v8, %v10330_v45  ;;  %v10346_v4 = vcombine.high %v10322_v8, %v10330_v45 }
 0x9dd   : > { %v10429_v16 = vcombine.low %v10328_v21, %v10336_v51  ;;  %v10430_v18 = vcombine.high %v10328_v21, %v10336_v51  ;;  %v276_v21 = vld [vmem:[%s17384_s2 + $0x30] sm:$0xf] }
 0x9de   : > { %v10353_v7 = vrot.slane %v10345_v41, %v14461_v11 }
 0x9df   : > { %v10437_v59 = vrot.slane %v10429_v16, %v14461_v11  ;;  %v10444_v25 = vrot.slane %v10430_v18, %v14461_v11 }
 0x9e0   : > { %v10326_v48 = vpop.permute.xlu1 %10325 }
 0x9e1   : > { %v10446_v13 = vcombine.high %v10421_v44, %v10437_v59  ;;  %9447 = vmatmul.mubr.f32.vlgmr.msra.gmra.mrb[0].mxu1 %v9209_v26  ;;  %v10461_v12 = vcombine.low %v10428_v37, %v10444_v25  ;;  %v10445_v9 = vcombine.low %v10421_v44, %v10437_v59  ;;  %v10462_v28 = vcombine.high %v10428_v37, %v10444_v25 }
 0x9e2   : > { %9460 = vmatpush1.msra.mxu1 %v9226_v63  ;;  %9523 = vmatprep.mubr.f32.mxu1 %v14344_v1 }
 0x9e3   : > { %v10460_v46 = vrot.slane %v10446_v13, %v14465_v29  ;;  %9532 = vmatprep.subr.mxu1 %v16686_v3  ;;  %v10469_v2 = vrot.slane %v10461_v12, %v14465_v29  ;;  %v10360_v3 = vrot.slane %v10346_v4, %v14461_v11  ;;  %v10476_v35 = vrot.slane %v10462_v28, %v14465_v29 }
 0x9e4   : > { %v10334_v49 = vpop.permute.xlu1 %10333  ;;  %v16764_v55 = vrot.slane %v10445_v9, %v14465_v29 }
 0x9e5   : > { %v10361_v14 = vcombine.low %v10326_v48, %v10334_v49  ;;  %v10362_v36 = vcombine.high %v10326_v48, %v10334_v49  ;;  %10514 = vrot.lane.b32.xlu0 %v10460_v46, %s14347_s18  ;;  %v9805_v24 = vpop.permute.xlu0 %9804  ;;  %v10478_v45 = vcombine.high %v10460_v46, %v14344_v1 }
 0x9e6   : > { %v10477_v16 = vcombine.high %v16764_v55, %v14344_v1  ;;  %v9838_v4 = vsel %vm907_vm6, %v16625_v57, %v9805_v24 }
 0x9e7   : > { %v10369_v26 = vrot.slane %v10361_v14, %v14461_v11  ;;  %v10376_v43 = vrot.slane %v10362_v36, %v14461_v11 }
 0x9e8   : > { %v9777_v40 = vpop.permute.xlu1 %9776 }
 0x9e9   : > { %v10378_v53 = vcombine.high %v10353_v7, %v10369_v26  ;;  %10522 = vrot.lane.b32.xlu0 %v10469_v2, %s14345_s16  ;;  %9525 = vmatmul.mubr.f32.vlgmr.msra.gmra.mrb[0].mxu1 %v16728_v61  ;;  %v9809_v63 = vpop.permute.xlu0 %9808  ;;  %v10393_v10 = vcombine.low %v10360_v3, %v10376_v43  ;;  %v10377_v51 = vcombine.low %v10353_v7, %v10369_v26 }
 0x9ea   : > { %9534 = vmatpush1.msra.mxu1 %v9142_v60  ;;  %9597 = vmatprep.mubr.f32.mxu1 %v14344_v1  ;;  %v9846_v60 = vsel %vm1166_vm5, %v276_v21, 0  ;;  %v10394_v39 = vcombine.high %v10360_v3, %v10376_v43  ;;  %v9839_v14 = vsel %vm909_vm7, %v9838_v4, %v9809_v63  ;;  %v9831_v7 = vsel %vm907_vm6, %v16631_v32, %v9777_v40 }
 0x9eb   : > { %v10392_v23 = vrot.slane %v10378_v53, %v14465_v29  ;;  %v10401_v18 = vrot.slane %v10393_v10, %v14465_v29  ;;  %v16779_v25 = vand.u32 4294901760, %v9846_v60  ;;  %v16784_v37 = vrot.slane %v10377_v51, %v14465_v29 }
 0x9ec   : > { %v9781_v8 = vpop.permute.xlu1 %9780  ;;  %v10408_v48 = vrot.slane %v10394_v39, %v14465_v29  ;;  %v10480_v26 = vcombine.high %v10476_v35, %v14344_v1 }
 0x9ed   : > { %10530 = vrot.lane.b32.xlu0 %v10476_v35, %s14346_s17  ;;  %10486 = vrot.lane.b32.xlu1 %v10392_v23, %s14347_s18  ;;  %v9813_v52 = vpop.permute.xlu0 %9812  ;;  %v16790_v12 = vsub.f32 %v9846_v60, %v16779_v25  ;;  %v10409_v46 = vcombine.high %v16784_v37, %v14344_v1  ;;  %v10410_v43 = vcombine.high %v10392_v23, %v14344_v1 }
 0x9ee   : > { %v9840_v28 = vsel %vm911_vm8, %v9839_v14, %v9813_v52  ;;  %v9832_v57 = vsel %vm909_vm7, %v9831_v7, %v9781_v8  ;;  %v10411_v21 = vcombine.high %v10401_v18, %v14344_v1 }
 0x9ef   : > { %v9923_v9 = vand.u32 4294901760, %v16790_v12 }
 0x9f0   : > { %v9785_v44 = vpop.permute.xlu1 %9784 }
 0x9f1   : > { %10510 = vrot.lane.b32.xlu0 %v10477_v16, %s14349_s20  ;;  %10494 = vrot.lane.b32.xlu1 %v10401_v18, %s14345_s16  ;;  %v9817_v59 = vpop.permute.xlu0 %9816  ;;  %v9833_v3 = vsel %vm911_vm8, %v9832_v57, %v9785_v44  ;;  %v9924_v10 = vsub.f32 %v16790_v12, %v9923_v9  ;;  %v10412_v18 = vcombine.high %v10408_v48, %v14344_v1 }
 0x9f2   : > { %9599 = vmatmul.mubr.f32.vlgmr.msra.gmra.mrb[0].mxu1 %v16728_v61  ;;  %v10479_v61 = vcombine.high %v10469_v2, %v14344_v1  ;;  %v9841_v24 = vsel %vm913_vm9, %v9840_v28, %v9817_v59 }
 0x9f3   : > { %9920 = vmatprep.mubr.f32.mxu1 %v14344_v1  ;;  %v9925_v59 = vand.u32 4294901760, %v9924_v10 }
 0x9f4   : > { %v9789_v13 = vpop.permute.xlu1 %9788 }
 0x9f5   : > { %10518 = vrot.lane.b32.xlu0 %v10478_v45, %s14348_s19  ;;  %10502 = vrot.lane.b32.xlu1 %v10408_v48, %s14346_s17  ;;  %v9821_v41 = vpop.permute.xlu0 %9820  ;;  %v9834_v32 = vsel %vm913_vm9, %v9833_v3, %v9789_v13 }
 0x9f6   : > { %v9842_v53 = vsel %vm915_vm10, %v9841_v24, %v9821_v41 }
 0x9f8   : > { %v9793_v49 = vpop.permute.xlu1 %9792 }
 0x9f9   : > { %10526 = vrot.lane.b32.xlu0 %v10479_v61, %s14342_s14  ;;  %10482 = vrot.lane.b32.xlu1 %v10409_v46, %s14349_s20  ;;  %v9825_v36 = vpop.permute.xlu0 %9824  ;;  %v9835_v35 = vsel %vm915_vm10, %v9834_v32, %v9793_v49 }
 0x9fa   : > { %v9843_v40 = vsel %vm917_vm11, %v9842_v53, %v9825_v36 }
 0x9fc   : > { %v9797_v2 = vpop.permute.xlu1 %9796 }
 0x9fd   : > { %10534 = vrot.lane.b32.xlu0 %v10480_v26, %s14343_s15  ;;  %10490 = vrot.lane.b32.xlu1 %v10410_v43, %s14348_s19  ;;  %v9829_v63 = vpop.permute.xlu0 %9828  ;;  %v9836_v8 = vsel %vm917_vm11, %v9835_v35, %v9797_v2 }
 0x9fe   : > { %v9844_v23 = vsel %vm919_vm12, %v9843_v40, %v9829_v63 }
 0x9ff   : > { %v9852_v52 = vsel %vm1170_vm13, %v9844_v23, 0 }
 0xa00   : > { %v9801_v60 = vpop.permute.xlu1 %9800  ;;  %v16822_v51 = vand.u32 4294901760, %v9852_v52 }
 0xa01   : > { %v9837_v39 = vsel %vm919_vm12, %v9836_v8, %v9801_v60  ;;  %10498 = vrot.lane.b32.xlu1 %v10411_v21, %s14342_s14  ;;  %v11030_v44 = vpop.permute.xlu0 %11029 }
 0xa02   : > { %v9849_v16 = vsel %vm1170_vm13, %v9837_v39, 0  ;;  %v9933_v45 = vsub.f32 %v9852_v52, %v16822_v51  ;;  %9855 = vmatprep.subr.mxu1 %v16822_v51 }
 0xa03   : > { %v16828_v13 = vand.u32 4294901760, %v9849_v16 }
 0xa04   : > { %v11034_v41 = vpop.permute.xlu1 %11033  ;;  %v9934_v46 = vand.u32 4294901760, %v9933_v45 }
 0xa05   : > { %v16833_v61 = vsub.f32 %v9849_v16, %v16828_v13  ;;  %10506 = vrot.lane.b32.xlu1 %v10412_v18, %s14343_s15  ;;  %9857 = vmatpush1.msra.mxu1 %v16828_v13  ;;  %v11038_v49 = vpop.permute.xlu0 %11037 }
 0xa06   : > { %9926 = vmatmul.mubr.f32.vlgmr.msra.gmra.mrb[0].mxu1 %v9925_v59  ;;  %v11119_v14 = vcombine.low %v11030_v44, %v11038_v49  ;;  %v9935_v36 = vsub.f32 %v9933_v45, %v9934_v46  ;;  %v11120_v26 = vcombine.high %v11030_v44, %v11038_v49 }
 0xa07   : > { %v9940_v4 = vand.u32 4294901760, %v16833_v61  ;;  %10006 = vmatprep.mubr.f32.mxu1 %v14344_v1 }
 0xa08   : > { %v11042_v7 = vpop.permute.xlu1 %11041  ;;  %v9936_v57 = vand.u32 4294901760, %v9935_v36  ;;  %v11127_v2 = vrot.slane %v11119_v14, %v14461_v11  ;;  %v11134_v10 = vrot.slane %v11120_v26, %v14461_v11 }
 0xa09   : > { %v11135_v28 = vcombine.low %v11034_v41, %v11042_v7  ;;  %v11136_v48 = vcombine.high %v11034_v41, %v11042_v7  ;;  %v11028_v43 = vpop.permute.xlu0 %11027  ;;  %v9941_v24 = vsub.f32 %v16833_v61, %v9940_v4 }
 0xa0a   : > { %9937 = vmatprep.subr.mxu1 %v9936_v57 }
 0xa0b   : > { %v11143_v3 = vrot.slane %v11135_v28, %v14461_v11  ;;  %v11150_v53 = vrot.slane %v11136_v48, %v14461_v11  ;;  %v9942_v40 = vand.u32 4294901760, %v9941_v24 }
 0xa0c   : > { %v11032_v32 = vpop.permute.xlu1 %11031 }
 0xa0d   : > { %v11152_v63 = vcombine.high %v11127_v2, %v11143_v3  ;;  %9943 = vmatpush1.msra.mxu1 %v9942_v40  ;;  %v11036_v35 = vpop.permute.xlu0 %11035  ;;  %v11167_v21 = vcombine.low %v11134_v10, %v11150_v53  ;;  %v11151_v18 = vcombine.low %v11127_v2, %v11143_v3  ;;  %v11168_v41 = vcombine.high %v11134_v10, %v11150_v53 }
 0xa0e   : > { %10008 = vmatmul.mubr.f32.vlgmr.msra.gmra.mrb[0].mxu1 %v16779_v25  ;;  %10016 = vmatprep.subr.mxu1 %v9933_v45  ;;  %v11051_v23 = vcombine.low %v11028_v43, %v11036_v35  ;;  %v11052_v60 = vcombine.high %v11028_v43, %v11036_v35  ;;  %v17451_v40 = vcombine.low %v16181_v22, %v16191_v5 }
 0xa0f   : > { %10019 = vmatpush1.msra.mxu1 %v16833_v61  ;;  %v11166_v52 = vrot.slane %v11152_v63, %v14465_v29  ;;  %10082 = vmatprep.mubr.f32.mxu1 %v14344_v1  ;;  %v11175_v61 = vrot.slane %v11167_v21, %v14465_v29  ;;  %v16859_v28 = vrot.slane %v11151_v18, %v14465_v29 }
 0xa10   : > { %v11040_v8 = vpop.permute.xlu1 %11039  ;;  %10092 = vmatprep.subr.mxu1 %v16822_v51  ;;  %v11059_v44 = vrot.slane %v11051_v23, %v14461_v11  ;;  %v11066_v49 = vrot.slane %v11052_v60, %v14461_v11  ;;  %v11182_v48 = vrot.slane %v11168_v41, %v14465_v29  ;;  %v11876_v63 = vrot.slane %v11862_v27, %v14465_v29 }
 0xa11   : > { %v11067_v39 = vcombine.low %v11032_v32, %v11040_v8  ;;  %v11068_v16 = vcombine.high %v11032_v32, %v11040_v8  ;;  %11220 = vrot.lane.b32.xlu0 %v11166_v52, %s14347_s18  ;;  %v11183_v24 = vcombine.high %v16859_v28, %v14344_v1  ;;  %v11184_v3 = vcombine.high %v11166_v52, %v14344_v1 }
 0xa12   : > { %v11185_v32 = vcombine.high %v11175_v61, %v14344_v1  ;;  %v11894_v35 = vcombine.high %v11876_v63, %v14344_v1  ;;  %v17452_v23 = vcombine.high %v16181_v22, %v16191_v5  ;;  %v11895_v21 = vcombine.high %v11885_v34, %v14344_v1 }
 0xa13   : > { %v11075_v59 = vrot.slane %v11067_v39, %v14461_v11  ;;  %v11082_v45 = vrot.slane %v11068_v16, %v14461_v11  ;;  %v17453_v22 = vcombine.low %v16184_v31, %v16194_v47  ;;  %v11896_v52 = vcombine.high %v11892_v50, %v14344_v1 }
 0xa14   : > { %v11808_v33 = vrot.slane %v17452_v23, %v14465_v29  ;;  %v17454_v39 = vcombine.high %v16184_v31, %v16194_v47 }
 0xa15   : > { %v11084_v14 = vcombine.high %v11059_v44, %v11075_v59  ;;  %11228 = vrot.lane.b32.xlu0 %v11175_v61, %s14345_s16  ;;  %v11099_v36 = vcombine.low %v11066_v49, %v11082_v45  ;;  %v11083_v26 = vcombine.low %v11059_v44, %v11075_v59  ;;  %v11100_v43 = vcombine.high %v11066_v49, %v11082_v45 }
 0xa16   : > { %10085 = vmatmul.mubr.f32.vlgmr.msra.gmra.mrb[0].mxu1 %v16790_v12  ;;  %v11826_v27 = vcombine.high %v11808_v33, %v14344_v1  ;;  %v11817_v5 = vrot.slane %v17453_v22, %v14465_v29  ;;  %v11824_v16 = vrot.slane %v17454_v39, %v14465_v29 }
 0xa17   : > { %v11098_v7 = vrot.slane %v11084_v14, %v14465_v29  ;;  %10094 = vmatpush1.msra.mxu1 %v16828_v13  ;;  %10157 = vmatprep.mubr.f32.mxu1 %v14344_v1  ;;  %v11107_v57 = vrot.slane %v11099_v36, %v14465_v29  ;;  %v16872_v2 = vrot.slane %v11083_v26, %v14465_v29 }
 0xa18   : > { %10170 = vmatprep.subr.mxu1 %v9934_v46  ;;  %v11114_v46 = vrot.slane %v11100_v43, %v14465_v29  ;;  %v11827_v8 = vcombine.high %v11817_v5, %v14344_v1  ;;  %v11828_v0 = vcombine.high %v11824_v16, %v14344_v1 }
 0xa19   : > { %11192 = vrot.lane.b32.xlu1 %v11098_v7, %s14347_s18  ;;  %11236 = vrot.lane.b32.xlu0 %v11182_v48, %s14346_s17  ;;  %v11115_v53 = vcombine.high %v16872_v2, %v14344_v1  ;;  %v11116_v12 = vcombine.high %v11098_v7, %v14344_v1 }
 0xa1d   : > { %11200 = vrot.lane.b32.xlu1 %v11107_v57, %s14345_s16  ;;  %11216 = vrot.lane.b32.xlu0 %v11183_v24, %s14349_s20 }
 0xa1e   : > { %10161 = vmatmul.mubr.f32.vlgmr.msra.gmra.mrb[0].mxu1 %v9923_v9  ;;  %v11186_v9 = vcombine.high %v11182_v48, %v14344_v1 }
 0xa1f   : > { %10174 = vmatpush1.msra.mxu1 %v9940_v4  ;;  %10237 = vmatprep.mubr.f32.mxu1 %v14344_v1  ;;  %v11118_v4 = vcombine.high %v11114_v46, %v14344_v1 }
 0xa20   : > { %10246 = vmatprep.subr.mxu1 %v16822_v51  ;;  %v11117_v51 = vcombine.high %v11107_v57, %v14344_v1 }
 0xa21   : > { %11208 = vrot.lane.b32.xlu1 %v11114_v46, %s14346_s17  ;;  %11224 = vrot.lane.b32.xlu0 %v11184_v3, %s14348_s19 }
 0xa25   : > { %11188 = vrot.lane.b32.xlu1 %v11115_v53, %s14349_s20  ;;  %11232 = vrot.lane.b32.xlu0 %v11185_v32, %s14342_s14 }
 0xa26   : > { %10239 = vmatmul.mubr.f32.vlgmr.msra.gmra.mrb[0].mxu1 %v16779_v25 }
 0xa27   : > { %10248 = vmatpush1.msra.mxu1 %v16828_v13  ;;  %10311 = vmatprep.mubr.f32.mxu1 %v14344_v1  ;;  %v16912_v13 = vrot.slane %v11861_v6, %v14465_v29  ;;  %v16927_v6 = vrot.slane %v17451_v40, %v14465_v29 }
 0xa29   : > { %11196 = vrot.lane.b32.xlu1 %v11116_v12, %s14348_s19  ;;  %11240 = vrot.lane.b32.xlu0 %v11186_v9, %s14343_s15  ;;  %v11825_v10 = vcombine.high %v16927_v6, %v14344_v1 }
 0xa2d   : > { %11204 = vrot.lane.b32.xlu1 %v11117_v51, %s14342_s14  ;;  %12445 = vrot.lane.b32.xlu0 %v16514_v30, %s14352_s26 }
 0xa2e   : > { %10313 = vmatmul.mubr.f32.vlgmr.msra.gmra.mrb[0].mxu1 %v16779_v25  ;;  %v11893_v25 = vcombine.high %v16912_v13, %v14344_v1 }
 0xa2f   : > { %10626 = vmatprep.mubr.f32.mxu1 %v14344_v1 }
 0xa31   : > { %11212 = vrot.lane.b32.xlu1 %v11118_v4, %s14343_s15  ;;  %12453 = vrot.lane.b32.xlu0 %v16535_v62, %s14352_s26 }
 0xa35   : > { %12449 = vrot.lane.b32.xlu1 %v16561_v56, %s14352_s26  ;;  %12443 = vrot.lane.b32.xlu0 %v16098_v17, %s14352_s26 }
 0xa39   : > { %12457 = vrot.lane.b32.xlu1 %v16578_v54, %s14352_s26  ;;  %12451 = vrot.lane.b32.xlu0 %v16131_v42, %s14352_s26 }
 0xa3d   : > { %12447 = vrot.lane.b32.xlu1 %v16126_v38, %s14352_s26  ;;  %11926 = vrot.lane.b32.xlu0 %v11893_v25, %s14349_s20 }
 0xa41   : > { %12455 = vrot.lane.b32.xlu1 %v16176_v19, %s14352_s26  ;;  %11930 = vrot.lane.b32.xlu0 %v11876_v63, %s14347_s18  ;;  %s253_s26 = sand.u32 1, %s14332_s22  }
 0xa42   : > { %s13989_s9 = sshll.u32 %s253_s26, 3 }
 0xa43   : > { %s255_s28 = scalar_lea.vmem [#allocation2], %s13989_s9 }
 0xa44   : > { %s13917_s11 = sshll.u32 %s255_s28, 4  ;;  %s17342_s11 = int_to_ptr.vmem [resolvable:$true] %s13917_s11 }
 0xa45   : > { %11898 = vrot.lane.b32.xlu1 %v11825_v10, %s14349_s20  ;;  %11934 = vrot.lane.b32.xlu0 %v11894_v35, %s14348_s19 }
 0xa49   : > { %11902 = vrot.lane.b32.xlu1 %v11808_v33, %s14347_s18  ;;  %11938 = vrot.lane.b32.xlu0 %v11885_v34, %s14345_s16 }
 0xa4d   : > { %11906 = vrot.lane.b32.xlu1 %v11826_v27, %s14348_s19  ;;  %11942 = vrot.lane.b32.xlu0 %v11895_v21, %s14342_s14 }
 0xa51   : > { %11910 = vrot.lane.b32.xlu1 %v11817_v5, %s14345_s16  ;;  %11946 = vrot.lane.b32.xlu0 %v11892_v50, %s14346_s17 }
 0xa55   : > { %11914 = vrot.lane.b32.xlu1 %v11827_v8, %s14342_s14  ;;  %11950 = vrot.lane.b32.xlu0 %v11896_v52, %s14343_s15 }
 0xa57   : > { %v10515_v60 = vpop.permute.xlu0 %10514 }
 0xa59   : > { %11918 = vrot.lane.b32.xlu1 %v11824_v16, %s14346_s17  ;;  %13151 = vrot.lane.b32.xlu0 %v16514_v30, %s17434_s10  ;;  %v277_v30 = vld [vmem:[%s17384_s2 + $0x34] sm:$0xf]  ;;  %v278_v16 = vld [vmem:[%s17384_s2 + $0x38] sm:$0xf] }
 0xa5b   : > { %v10523_v58 = vpop.permute.xlu0 %10522 }
 0xa5d   : > { %11922 = vrot.lane.b32.xlu1 %v11828_v0, %s14343_s15  ;;  %13159 = vrot.lane.b32.xlu0 %v16535_v62, %s17434_s10  ;;  %v10552_v62 = vsel %vm1166_vm5, %v277_v30, 0 }
 0xa5e   : > { %v16998_v41 = vand.u32 4294901760, %v10552_v62 }
 0xa5f   : > { %v10487_v20 = vpop.permute.xlu1 %10486  ;;  %v10531_v44 = vpop.permute.xlu0 %10530 }
 0xa60   : > { %v10628_v14 = vsub.f32 %v10552_v62, %v16998_v41 }
 0xa61   : > { %13155 = vrot.lane.b32.xlu1 %v16561_v56, %s17434_s10  ;;  %13149 = vrot.lane.b32.xlu0 %v16098_v17, %s17434_s10 }
 0xa63   : > { %v10495_v31 = vpop.permute.xlu1 %10494  ;;  %v10511_v47 = vpop.permute.xlu0 %10510 }
 0xa64   : > { %v10544_v59 = vsel %vm907_vm6, %v16764_v55, %v10511_v47 }
 0xa65   : > { %13163 = vrot.lane.b32.xlu1 %v16578_v54, %s17434_s10  ;;  %13157 = vrot.lane.b32.xlu0 %v16131_v42, %s17434_s10  ;;  %v10545_v17 = vsel %vm909_vm7, %v10544_v59, %v10515_v60 }
 0xa67   : > { %v10503_v56 = vpop.permute.xlu1 %10502  ;;  %v10519_v45 = vpop.permute.xlu0 %10518 }
 0xa68   : > { %v10546_v18 = vsel %vm911_vm8, %v10545_v17, %v10519_v45 }
 0xa69   : > { %13153 = vrot.lane.b32.xlu1 %v16126_v38, %s17434_s10  ;;  %v10547_v61 = vsel %vm913_vm9, %v10546_v18, %v10523_v58 }
 0xa6b   : > { %v10483_v55 = vpop.permute.xlu1 %10482  ;;  %v10527_v54 = vpop.permute.xlu0 %10526 }
 0xa6c   : > { %v10537_v42 = vsel %vm907_vm6, %v16784_v37, %v10483_v55  ;;  %v10548_v49 = vsel %vm915_vm10, %v10547_v61, %v10527_v54  ;;  %v10629_v37 = vand.u32 4294901760, %v10628_v14 }
 0xa6d   : > { %13161 = vrot.lane.b32.xlu1 %v16176_v19, %s17434_s10  ;;  %v10538_v36 = vsel %vm909_vm7, %v10537_v42, %v10487_v20  ;;  %v10549_v38 = vsel %vm917_vm11, %v10548_v49, %v10531_v44  ;;  %v11258_v44 = vsel %vm1166_vm5, %v278_v16, 0  ;;  %s14003_s10 = sshll.u32 %s14414_s25, 7  ;;  %s14357_s25 = smov [#allocation2]  }
 0xa6e   : > { %v10630_v32 = vsub.f32 %v10628_v14, %v10629_v37  ;;  %v17034_v62 = vand.u32 4294901760, %v11258_v44 }
 0xa6f   : > { %v10491_v7 = vpop.permute.xlu1 %10490  ;;  %v10535_v48 = vpop.permute.xlu0 %10534 }
 0xa70   : > { %v10539_v26 = vsel %vm911_vm8, %v10538_v36, %v10491_v7  ;;  %v10550_v43 = vsel %vm919_vm12, %v10549_v38, %v10535_v48  ;;  %v10631_v63 = vand.u32 4294901760, %v10630_v32 }
 0xa71   : > { %v10558_v57 = vsel %vm1170_vm13, %v10550_v43, 0  ;;  %v10540_v46 = vsel %vm913_vm9, %v10539_v26, %v10495_v31 }
 0xa72   : > { %v10560_v24 = vand.u32 4294901760, %v10558_v57 }
 0xa73   : > { %v10499_v3 = vpop.permute.xlu1 %10498 }
 0xa74   : > { %v10639_v19 = vsub.f32 %v10558_v57, %v10560_v24  ;;  %v10541_v53 = vsel %vm915_vm10, %v10540_v46, %v10499_v3  ;;  %10561 = vmatprep.subr.mxu1 %v10560_v24 }
 0xa75   : > { %v10542_v9 = vsel %vm917_vm11, %v10541_v53, %v10503_v56 }
 0xa76   : > { %v10640_v12 = vand.u32 4294901760, %v10639_v19 }
 0xa77   : > { %v10507_v51 = vpop.permute.xlu1 %10506 }
 0xa78   : > { %v10543_v4 = vsel %vm919_vm12, %v10542_v9, %v10507_v51  ;;  %v10641_v25 = vsub.f32 %v10639_v19, %v10640_v12 }
 0xa79   : > { %v10555_v40 = vsel %vm1170_vm13, %v10543_v4, 0 }
 0xa7a   : > { %v10562_v10 = vand.u32 4294901760, %v10555_v40  ;;  %v10642_v35 = vand.u32 4294901760, %v10641_v25 }
 0xa7c   : > { %v10645_v23 = vsub.f32 %v10555_v40, %v10562_v10  ;;  %10563 = vmatpush1.msra.mxu1 %v10562_v10 }
 0xa7d   : > { %10632 = vmatmul.mubr.f32.vlgmr.msra.gmra.mrb[0].mxu1 %v10631_v63  ;;  %10643 = vmatprep.subr.mxu1 %v10642_v35 }
 0xa7e   : > { %v10646_v33 = vand.u32 4294901760, %v10645_v23  ;;  %10712 = vmatprep.mubr.f32.mxu1 %v14344_v1 }
 0xa80   : > { %v10647_v34 = vsub.f32 %v10645_v23, %v10646_v33 }
 0xa82   : > { %v10648_v27 = vand.u32 4294901760, %v10647_v34 }
 0xa83   : > { %v11221_v21 = vpop.permute.xlu0 %11220 }
 0xa84   : > { %10649 = vmatpush1.msra.mxu1 %v10648_v27 }
 0xa85   : > { %10714 = vmatmul.mubr.f32.vlgmr.msra.gmra.mrb[0].mxu1 %v16998_v41  ;;  %10722 = vmatprep.subr.mxu1 %v10639_v19 }
 0xa86   : > { %10725 = vmatpush1.msra.mxu1 %v10645_v23  ;;  %10788 = vmatprep.mubr.f32.mxu1 %v14344_v1 }
 0xa87   : > { %10798 = vmatprep.subr.mxu1 %v10560_v24  ;;  %v11229_v22 = vpop.permute.xlu0 %11228 }
 0xa8b   : > { %v11193_v5 = vpop.permute.xlu1 %11192  ;;  %v11237_v50 = vpop.permute.xlu0 %11236 }
 0xa8d   : > { %10791 = vmatmul.mubr.f32.vlgmr.msra.gmra.mrb[0].mxu1 %v10628_v14 }
 0xa8e   : > { %10800 = vmatpush1.msra.mxu1 %v10562_v10  ;;  %10863 = vmatprep.mubr.f32.mxu1 %v14344_v1 }
 0xa8f   : > { %10876 = vmatprep.subr.mxu1 %v10640_v12  ;;  %v11201_v8 = vpop.permute.xlu1 %11200  ;;  %v11217_v52 = vpop.permute.xlu0 %11216 }
 0xa90   : > { %v11250_v60 = vsel %vm907_vm6, %v16859_v28, %v11217_v52 }
 0xa91   : > { %v11251_v58 = vsel %vm909_vm7, %v11250_v60, %v11221_v21 }
 0xa93   : > { %v11209_v39 = vpop.permute.xlu1 %11208  ;;  %v11225_v0 = vpop.permute.xlu0 %11224 }
 0xa94   : > { %v11252_v20 = vsel %vm911_vm8, %v11251_v58, %v11225_v0 }
 0xa95   : > { %10867 = vmatmul.mubr.f32.vlgmr.msra.gmra.mrb[0].mxu1 %v10629_v37  ;;  %v11253_v47 = vsel %vm913_vm9, %v11252_v20, %v11229_v22 }
 0xa96   : > { %10880 = vmatpush1.msra.mxu1 %v10646_v33  ;;  %10943 = vmatprep.mubr.f32.mxu1 %v14344_v1 }
 0xa97   : > { %10952 = vmatprep.subr.mxu1 %v10560_v24  ;;  %v11189_v31 = vpop.permute.xlu1 %11188  ;;  %v11233_v30 = vpop.permute.xlu0 %11232 }
 0xa98   : > { %v11243_v28 = vsel %vm907_vm6, %v16872_v2, %v11189_v31  ;;  %v11254_v59 = vsel %vm915_vm10, %v11253_v47, %v11233_v30  ;;  %v17042_v2 = vsub.f32 %v11258_v44, %v17034_v62 }
 0xa99   : > { %v11244_v56 = vsel %vm909_vm7, %v11243_v28, %v11193_v5  ;;  %v11255_v18 = vsel %vm917_vm11, %v11254_v59, %v11237_v50 }
 0xa9a   : > { %v11335_v48 = vand.u32 4294901760, %v17042_v2 }
 0xa9b   : > { %v11197_v17 = vpop.permute.xlu1 %11196  ;;  %v11241_v55 = vpop.permute.xlu0 %11240 }
 0xa9c   : > { %v11245_v45 = vsel %vm911_vm8, %v11244_v56, %v11197_v17  ;;  %v11256_v61 = vsel %vm919_vm12, %v11255_v18, %v11241_v55  ;;  %v11336_v19 = vsub.f32 %v17042_v2, %v11335_v48 }
 0xa9d   : > { %10945 = vmatmul.mubr.f32.vlgmr.msra.gmra.mrb[0].mxu1 %v16998_v41  ;;  %v11264_v54 = vsel %vm1170_vm13, %v11256_v61, 0  ;;  %v11246_v49 = vsel %vm913_vm9, %v11245_v45, %v11201_v8 }
 0xa9e   : > { %10954 = vmatpush1.msra.mxu1 %v10562_v10  ;;  %11017 = vmatprep.mubr.f32.mxu1 %v14344_v1  ;;  %v17046_v42 = vand.u32 4294901760, %v11264_v54 }
 0xa9f   : > { %v11205_v14 = vpop.permute.xlu1 %11204  ;;  %v12446_v7 = vpop.permute.xlu0 %12445 }
 0xaa0   : > { %v11247_v36 = vsel %vm915_vm10, %v11246_v49, %v11205_v14  ;;  %v17051_v38 = vsub.f32 %v11264_v54, %v17046_v42  ;;  %11267 = vmatprep.subr.mxu1 %v17046_v42 }
 0xaa1   : > { %v11248_v26 = vsel %vm917_vm11, %v11247_v36, %v11209_v39 }
 0xaa2   : > { %v11346_v57 = vand.u32 4294901760, %v17051_v38 }
 0xaa3   : > { %v11213_v43 = vpop.permute.xlu1 %11212  ;;  %v12454_v24 = vpop.permute.xlu0 %12453 }
 0xaa4   : > { %v11249_v37 = vsel %vm919_vm12, %v11248_v26, %v11213_v43  ;;  %v11347_v3 = vsub.f32 %v17051_v38, %v11346_v57  ;;  %v12535_v25 = vcombine.low %v12446_v7, %v12454_v24  ;;  %v12536_v63 = vcombine.high %v12446_v7, %v12454_v24 }
 0xaa5   : > { %v11261_v46 = vsel %vm1170_vm13, %v11249_v37, 0  ;;  %11019 = vmatmul.mubr.f32.vlgmr.msra.gmra.mrb[0].mxu1 %v16998_v41  ;;  %v11337_v41 = vand.u32 4294901760, %v11336_v19 }
 0xaa6   : > { %v17066_v53 = vand.u32 4294901760, %v11261_v46  ;;  %11332 = vmatprep.mubr.f32.mxu1 %v14344_v1  ;;  %v11348_v12 = vand.u32 4294901760, %v11347_v3  ;;  %v12543_v34 = vrot.slane %v12535_v25, %v14461_v11  ;;  %v12550_v50 = vrot.slane %v12536_v63, %v14461_v11 }
 0xaa7   : > { %v12450_v32 = vpop.permute.xlu1 %12449  ;;  %v12444_v51 = vpop.permute.xlu0 %12443 }
 0xaa8   : > { %v17070_v9 = vsub.f32 %v11261_v46, %v17066_v53  ;;  %11269 = vmatpush1.msra.mxu1 %v17066_v53 }
 0xaa9   : > { %11349 = vmatprep.subr.mxu1 %v11348_v12 }
 0xaaa   : > { %v11352_v4 = vand.u32 4294901760, %v17070_v9 }
 0xaab   : > { %v12458_v40 = vpop.permute.xlu1 %12457  ;;  %v12452_v23 = vpop.permute.xlu0 %12451 }
 0xaac   : > { %v12551_v10 = vcombine.low %v12450_v32, %v12458_v40  ;;  %v12552_v35 = vcombine.high %v12450_v32, %v12458_v40  ;;  %v11353_v33 = vsub.f32 %v17070_v9, %v11352_v4  ;;  %v12467_v60 = vcombine.low %v12444_v51, %v12452_v23 }
 0xaad   : > { %11338 = vmatmul.mubr.f32.vlgmr.msra.gmra.mrb[0].mxu1 %v11337_v41  ;;  %v12468_v0 = vcombine.high %v12444_v51, %v12452_v23 }
 0xaae   : > { %v12559_v27 = vrot.slane %v12551_v10, %v14461_v11  ;;  %v12566_v21 = vrot.slane %v12552_v35, %v14461_v11  ;;  %v11354_v22 = vand.u32 4294901760, %v11353_v33  ;;  %11418 = vmatprep.mubr.f32.mxu1 %v14344_v1  ;;  %v12475_v30 = vrot.slane %v12467_v60, %v14461_v11 }
 0xaaf   : > { %v12448_v5 = vpop.permute.xlu1 %12447  ;;  %v11927_v52 = vpop.permute.xlu0 %11926  ;;  %v12482_v18 = vrot.slane %v12468_v0, %v14461_v11 }
 0xab0   : > { %v12568_v8 = vcombine.high %v12543_v34, %v12559_v27  ;;  %11355 = vmatpush1.msra.mxu1 %v11354_v22  ;;  %v12583_v39 = vcombine.low %v12550_v50, %v12566_v21  ;;  %v12567_v28 = vcombine.low %v12543_v34, %v12559_v27  ;;  %v12584_v47 = vcombine.high %v12550_v50, %v12566_v21 }
 0xab1   : > { %11428 = vmatprep.subr.mxu1 %v17051_v38  ;;  %v11960_v41 = vsel %vm907_vm6, %v16912_v13, %v11927_v52  ;;  %v279_v38 = vld [vmem:[%s17384_s2 + $0x3c] sm:$0xf] }
 0xab2   : > { %v12582_v16 = vrot.slane %v12568_v8, %v14465_v29  ;;  %v12591_v17 = vrot.slane %v12583_v39, %v14465_v29  ;;  %v17096_v54 = vrot.slane %v12567_v28, %v14465_v29  ;;  %v12598_v14 = vrot.slane %v12584_v47, %v14465_v29 }
 0xab3   : > { %v12456_v58 = vpop.permute.xlu1 %12455  ;;  %v11931_v31 = vpop.permute.xlu0 %11930  ;;  %v11968_v23 = vsel %vm1166_vm5, %v279_v38, 0 }
 0xab4   : > { %v12483_v20 = vcombine.low %v12448_v5, %v12456_v58  ;;  %v12484_v44 = vcombine.high %v12448_v5, %v12456_v58  ;;  %12636 = vrot.lane.b32.xlu0 %v12582_v16, %s14347_s18  ;;  %v12599_v43 = vcombine.high %v17096_v54, %v14344_v1  ;;  %v12600_v12 = vcombine.high %v12582_v16, %v14344_v1 }
 0xab5   : > { %11420 = vmatmul.mubr.f32.vlgmr.msra.gmra.mrb[0].mxu1 %v17034_v62  ;;  %v12601_v13 = vcombine.high %v12591_v17, %v14344_v1  ;;  %v12602_v22 = vcombine.high %v12598_v14, %v14344_v1 }
 0xab6   : > { %v12491_v59 = vrot.slane %v12483_v20, %v14461_v11  ;;  %v12498_v56 = vrot.slane %v12484_v44, %v14461_v11  ;;  %11431 = vmatpush1.msra.mxu1 %v17070_v9  ;;  %11494 = vmatprep.mubr.f32.mxu1 %v14344_v1 }
 0xab7   : > { %11504 = vmatprep.subr.mxu1 %v17046_v42  ;;  %v11899_v45 = vpop.permute.xlu1 %11898  ;;  %v11935_v61 = vpop.permute.xlu0 %11934 }
 0xab8   : > { %v12500_v55 = vcombine.high %v12475_v30, %v12491_v59  ;;  %12644 = vrot.lane.b32.xlu0 %v12591_v17, %s14345_s16  ;;  %v12515_v49 = vcombine.low %v12482_v18, %v12498_v56  ;;  %v12499_v37 = vcombine.low %v12475_v30, %v12491_v59  ;;  %v12516_v24 = vcombine.high %v12482_v18, %v12498_v56 }
 0xab9   : > { %v11953_v27 = vsel %vm907_vm6, %v16927_v6, %v11899_v45 }
 0xaba   : > { %v12514_v36 = vrot.slane %v12500_v55, %v14465_v29  ;;  %v12523_v46 = vrot.slane %v12515_v49, %v14465_v29  ;;  %v17113_v32 = vrot.slane %v12499_v37, %v14465_v29  ;;  %v12530_v51 = vrot.slane %v12516_v24, %v14465_v29 }
 0xabb   : > { %v11903_v7 = vpop.permute.xlu1 %11902  ;;  %v11939_v26 = vpop.permute.xlu0 %11938 }
 0xabc   : > { %12652 = vrot.lane.b32.xlu0 %v12598_v14, %s14346_s17  ;;  %12608 = vrot.lane.b32.xlu1 %v12514_v36, %s14347_s18  ;;  %v12531_v35 = vcombine.high %v17113_v32, %v14344_v1  ;;  %v11954_v5 = vsel %vm909_vm7, %v11953_v27, %v11903_v7  ;;  %v12533_v0 = vcombine.high %v12523_v46, %v14344_v1 }
 0xabd   : > { %11497 = vmatmul.mubr.f32.vlgmr.msra.gmra.mrb[0].mxu1 %v17042_v2  ;;  %v12534_v17 = vcombine.high %v12530_v51, %v14344_v1 }
 0xabe   : > { %11506 = vmatpush1.msra.mxu1 %v17066_v53  ;;  %11569 = vmatprep.mubr.f32.mxu1 %v14344_v1 }
 0xabf   : > { %11582 = vmatprep.subr.mxu1 %v11346_v57  ;;  %v11907_v3 = vpop.permute.xlu1 %11906  ;;  %v11943_v19 = vpop.permute.xlu0 %11942  ;;  %v11961_v57 = vsel %vm909_vm7, %v11960_v41, %v11931_v31 }
 0xac0   : > { %12632 = vrot.lane.b32.xlu0 %v12599_v43, %s14349_s20  ;;  %12616 = vrot.lane.b32.xlu1 %v12523_v46, %s14345_s16  ;;  %v11962_v63 = vsel %vm911_vm8, %v11961_v57, %v11935_v61  ;;  %v11955_v52 = vsel %vm911_vm8, %v11954_v5, %v11907_v3 }
 0xac1   : > { %v11963_v10 = vsel %vm913_vm9, %v11962_v63, %v11939_v26 }
 0xac2   : > { %v11964_v33 = vsel %vm915_vm10, %v11963_v10, %v11943_v19 }
 0xac3   : > { %v11911_v25 = vpop.permute.xlu1 %11910  ;;  %v11947_v40 = vpop.permute.xlu0 %11946 }
 0xac4   : > { %12640 = vrot.lane.b32.xlu0 %v12600_v12, %s14348_s19  ;;  %12624 = vrot.lane.b32.xlu1 %v12530_v51, %s14346_s17  ;;  %v11956_v6 = vsel %vm913_vm9, %v11955_v52, %v11911_v25 }
 0xac5   : > { %11573 = vmatmul.mubr.f32.vlgmr.msra.gmra.mrb[0].mxu1 %v11335_v48  ;;  %v11965_v48 = vsel %vm917_vm11, %v11964_v33, %v11947_v40 }
 0xac6   : > { %11586 = vmatpush1.msra.mxu1 %v11352_v4  ;;  %11649 = vmatprep.mubr.f32.mxu1 %v14344_v1  ;;  %v17142_v4 = vand.u32 4294901760, %v11968_v23 }
 0xac7   : > { %11658 = vmatprep.subr.mxu1 %v17046_v42  ;;  %v11915_v2 = vpop.permute.xlu1 %11914  ;;  %v11951_v34 = vpop.permute.xlu0 %11950  ;;  %v12532_v42 = vcombine.high %v12514_v36, %v14344_v1 }
 0xac8   : > { %12648 = vrot.lane.b32.xlu0 %v12601_v13, %s14342_s14  ;;  %12604 = vrot.lane.b32.xlu1 %v12531_v35, %s14349_s20  ;;  %v11966_v9 = vsel %vm919_vm12, %v11965_v48, %v11951_v34  ;;  %v17161_v16 = vsub.f32 %v11968_v23, %v17142_v4  ;;  %v11957_v58 = vsel %vm915_vm10, %v11956_v6, %v11915_v2 }
 0xac9   : > { %v11974_v21 = vsel %vm1170_vm13, %v11966_v9, 0 }
 0xaca   : > { %v17150_v50 = vand.u32 4294901760, %v11974_v21  ;;  %v12045_v59 = vand.u32 4294901760, %v17161_v16 }
 0xacb   : > { %v11919_v8 = vpop.permute.xlu1 %11918  ;;  %v13152_v60 = vpop.permute.xlu0 %13151 }
 0xacc   : > { %12656 = vrot.lane.b32.xlu0 %v12602_v22, %s14343_s15  ;;  %12612 = vrot.lane.b32.xlu1 %v12532_v42, %s14348_s19  ;;  %v17157_v39 = vsub.f32 %v11974_v21, %v17150_v50  ;;  %v11958_v20 = vsel %vm917_vm11, %v11957_v58, %v11919_v8  ;;  %v12046_v49 = vsub.f32 %v17161_v16, %v12045_v59 }
 0xacd   : > { %11651 = vmatmul.mubr.f32.vlgmr.msra.gmra.mrb[0].mxu1 %v17034_v62 }
 0xace   : > { %11660 = vmatpush1.msra.mxu1 %v17066_v53  ;;  %11723 = vmatprep.mubr.f32.mxu1 %v14344_v1  ;;  %v12056_v31 = vand.u32 4294901760, %v17157_v39  ;;  %v12047_v24 = vand.u32 4294901760, %v12046_v49 }
 0xacf   : > { %11977 = vmatprep.subr.mxu1 %v17150_v50  ;;  %v11923_v44 = vpop.permute.xlu1 %11922  ;;  %v13160_v47 = vpop.permute.xlu0 %13159 }
 0xad0   : > { %v11959_v28 = vsel %vm919_vm12, %v11958_v20, %v11923_v44  ;;  %12620 = vrot.lane.b32.xlu1 %v12533_v0, %s14342_s14  ;;  %v12057_v53 = vsub.f32 %v17157_v39, %v12056_v31  ;;  %v13241_v36 = vcombine.low %v13152_v60, %v13160_v47  ;;  %v13242_v26 = vcombine.high %v13152_v60, %v13160_v47 }
 0xad1   : > { %v11971_v30 = vsel %vm1170_vm13, %v11959_v28, 0 }
 0xad2   : > { %v17177_v56 = vand.u32 4294901760, %v11971_v30  ;;  %v12058_v61 = vand.u32 4294901760, %v12057_v53  ;;  %v13249_v46 = vrot.slane %v13241_v36, %v14461_v11  ;;  %v13256_v25 = vrot.slane %v13242_v26, %v14461_v11 }
 0xad3   : > { %v13156_v45 = vpop.permute.xlu1 %13155  ;;  %v13150_v55 = vpop.permute.xlu0 %13149 }
 0xad4   : > { %v17181_v18 = vsub.f32 %v11971_v30, %v17177_v56  ;;  %12628 = vrot.lane.b32.xlu1 %v12534_v17, %s14343_s15 }
 0xad5   : > { %11725 = vmatmul.mubr.f32.vlgmr.msra.gmra.mrb[0].mxu1 %v17034_v62 }
 0xad6   : > { %v12062_v14 = vand.u32 4294901760, %v17181_v18  ;;  %11979 = vmatpush1.msra.mxu1 %v17177_v56  ;;  %12042 = vmatprep.mubr.f32.mxu1 %v14344_v1 }
 0xad7   : > { %12059 = vmatprep.subr.mxu1 %v12058_v61  ;;  %v13164_v7 = vpop.permute.xlu1 %13163  ;;  %v13158_v12 = vpop.permute.xlu0 %13157 }
 0xad8   : > { %v13257_v43 = vcombine.low %v13156_v45, %v13164_v7  ;;  %v13258_v37 = vcombine.high %v13156_v45, %v13164_v7  ;;  %v12063_v62 = vsub.f32 %v17181_v18, %v12062_v14  ;;  %v13173_v57 = vcombine.low %v13150_v55, %v13158_v12 }
 0xad9   : > { %v13174_v13 = vcombine.high %v13150_v55, %v13158_v12 }
 0xada   : > { %v13265_v3 = vrot.slane %v13257_v43, %v14461_v11  ;;  %v13272_v19 = vrot.slane %v13258_v37, %v14461_v11  ;;  %v12064_v51 = vand.u32 4294901760, %v12063_v62  ;;  %v13181_v2 = vrot.slane %v13173_v57, %v14461_v11 }
 0xadb   : > { %v13154_v41 = vpop.permute.xlu1 %13153  ;;  %v13188_v21 = vrot.slane %v13174_v13, %v14461_v11 }
 0xadc   : > { %v13274_v38 = vcombine.high %v13249_v46, %v13265_v3  ;;  %v13289_v40 = vcombine.low %v13256_v25, %v13272_v19  ;;  %v13273_v33 = vcombine.low %v13249_v46, %v13265_v3  ;;  %v13290_v48 = vcombine.high %v13256_v25, %v13272_v19 }
 0xadd   : > { %12048 = vmatmul.mubr.f32.vlgmr.msra.gmra.mrb[0].mxu1 %v12047_v24 }
 0xade   : > { %12065 = vmatpush1.msra.mxu1 %v12064_v51  ;;  %v13288_v63 = vrot.slane %v13274_v38, %v14465_v29  ;;  %12128 = vmatprep.mubr.f32.mxu1 %v14344_v1  ;;  %v13297_v27 = vrot.slane %v13289_v40, %v14465_v29  ;;  %v17209_v42 = vrot.slane %v13273_v33, %v14465_v29 }
 0xadf   : > { %12138 = vmatprep.subr.mxu1 %v17157_v39  ;;  %v13162_v10 = vpop.permute.xlu1 %13161  ;;  %v13304_v8 = vrot.slane %v13290_v48, %v14465_v29 }
 0xae0   : > { %v13189_v35 = vcombine.low %v13154_v41, %v13162_v10  ;;  %v13190_v23 = vcombine.high %v13154_v41, %v13162_v10  ;;  %13342 = vrot.lane.b32.xlu0 %v13288_v63, %s14347_s18  ;;  %v13305_v6 = vcombine.high %v17209_v42, %v14344_v1  ;;  %v13306_v20 = vcombine.high %v13288_v63, %v14344_v1 }
 0xae1   : > { %v13307_v28 = vcombine.high %v13297_v27, %v14344_v1 }
 0xae2   : > { %v13197_v34 = vrot.slane %v13189_v35, %v14461_v11  ;;  %v13204_v9 = vrot.slane %v13190_v23, %v14461_v11 }
 0xae4   : > { %v13206_v22 = vcombine.high %v13181_v2, %v13197_v34  ;;  %13350 = vrot.lane.b32.xlu0 %v13297_v27, %s14345_s16  ;;  %v13221_v5 = vcombine.low %v13188_v21, %v13204_v9  ;;  %v13205_v11 = vcombine.low %v13181_v2, %v13197_v34  ;;  %v13222_v60 = vcombine.high %v13188_v21, %v13204_v9 }
 0xae5   : > { %12130 = vmatmul.mubr.f32.vlgmr.msra.gmra.mrb[0].mxu1 %v17142_v4 }
 0xae6   : > { %12141 = vmatpush1.msra.mxu1 %v17181_v18  ;;  %v13220_v52 = vrot.slane %v13206_v22, %v14465_v29  ;;  %12204 = vmatprep.mubr.f32.mxu1 %v14344_v1  ;;  %v13229_v58 = vrot.slane %v13221_v5, %v14465_v29  ;;  %v17226_v0 = vrot.slane %v13205_v11, %v14465_v29 }
 0xae7   : > { %12214 = vmatprep.subr.mxu1 %v17150_v50  ;;  %v13236_v44 = vrot.slane %v13222_v60, %v14465_v29  ;;  %v13308_v29 = vcombine.high %v13304_v8, %v14344_v1 }
 0xae8   : > { %13358 = vrot.lane.b32.xlu0 %v13304_v8, %s14346_s17  ;;  %13314 = vrot.lane.b32.xlu1 %v13220_v52, %s14347_s18  ;;  %v13237_v47 = vcombine.high %v17226_v0, %v14344_v1  ;;  %v13238_v39 = vcombine.high %v13220_v52, %v14344_v1 }
 0xaec   : > { %13338 = vrot.lane.b32.xlu0 %v13305_v6, %s14349_s20  ;;  %13322 = vrot.lane.b32.xlu1 %v13229_v58, %s14345_s16  ;;  %s17340_s16 = scalar_lea.hbm %s17388_s6, %s14003_s10 }
 0xaed   : > { %12207 = vmatmul.mubr.f32.vlgmr.msra.gmra.mrb[0].mxu1 %v17161_v16  ;;  %v13240_v16 = vcombine.high %v13236_v44, %v14344_v1 }
 0xaee   : > { %12216 = vmatpush1.msra.mxu1 %v17177_v56  ;;  %12279 = vmatprep.mubr.f32.mxu1 %v14344_v1 }
 0xaef   : > { %12292 = vmatprep.subr.mxu1 %v12056_v31  ;;  %v13239_v31 = vcombine.high %v13229_v58, %v14344_v1 }
 0xaf0   : > { %13346 = vrot.lane.b32.xlu0 %v13306_v20, %s14348_s19  ;;  %13330 = vrot.lane.b32.xlu1 %v13236_v44, %s14346_s17  ;;  %s14278_s17 = scalar_lea.vmem %s17342_s11, 128 }
 0xaf1   : > { %p14279_p11 = scmp.ne.s32.totalorder %s17342_s11, %s14278_s17 }
 0xaf3   : > { %p14280_p12 = pnand %p14279_p11, %p14431_p5 }
 0xaf4   : > { %13354 = vrot.lane.b32.xlu0 %v13307_v28, %s14342_s14  ;;  %13310 = vrot.lane.b32.xlu1 %v13237_v47, %s14349_s20 }
 0xaf5   : > { %12283 = vmatmul.mubr.f32.vlgmr.msra.gmra.mrb[0].mxu1 %v12045_v59  ;;  %p14281_p13 = pneg %p14280_p12 }
 0xaf6   : > { %12296 = vmatpush1.msra.mxu1 %v12062_v14  ;;  %12359 = vmatprep.mubr.f32.mxu1 %v14344_v1 }
 0xaf7   : > { %12368 = vmatprep.subr.mxu1 %v17150_v50 }
 0xaf8   : > { %13362 = vrot.lane.b32.xlu0 %v13308_v29, %s14343_s15  ;;  %13318 = vrot.lane.b32.xlu1 %v13238_v39, %s14348_s19  ;;  %v281_v39 = vld [vmem:[%s17384_s2 + $0x44] sm:$0xf] }
 0xafc   : > { %13326 = vrot.lane.b32.xlu1 %v13239_v31, %s14342_s14 }
 0xafd   : > { %12361 = vmatmul.mubr.f32.vlgmr.msra.gmra.mrb[0].mxu1 %v17142_v4 }
 0xafe   : > { %12370 = vmatpush1.msra.mxu1 %v17177_v56  ;;  %12433 = vmatprep.mubr.f32.mxu1 %v14344_v1  ;;  %v280_v56 = vld [vmem:[%s17384_s2 + $0x40] sm:$0xf] }
 0xaff   : > { %v12674_v55 = vsel %vm1166_vm5, %v280_v56, 0 }
 0xb00   : > { %13334 = vrot.lane.b32.xlu1 %v13240_v16, %s14343_s15  ;;  %v17268_v36 = vand.u32 4294901760, %v12674_v55  ;;  %v13380_v16 = vsel %vm1166_vm5, %v281_v39, 0  ;;  %s13903_s15 = scalar_lea.sflag [#allocation3], %s253_s26 }
 0xb05   : > { %12435 = vmatmul.mubr.f32.vlgmr.msra.gmra.mrb[0].mxu1 %v17142_v4 }
 0xb06   : > { %12748 = vmatprep.mubr.f32.mxu1 %v14344_v1 }
 0xb26   : > { %v12637_v50 = vpop.permute.xlu0 %12636 }
 0xb2a   : > { %v12645_v30 = vpop.permute.xlu0 %12644 }
 0xb2e   : > { %v12609_v53 = vpop.permute.xlu1 %12608  ;;  %v12653_v59 = vpop.permute.xlu0 %12652 }
 0xb32   : > { %v12617_v17 = vpop.permute.xlu1 %12616  ;;  %v12633_v45 = vpop.permute.xlu0 %12632 }
 0xb33   : > { %v12666_v18 = vsel %vm907_vm6, %v17096_v54, %v12633_v45  ;;  %v12750_v54 = vsub.f32 %v12674_v55, %v17268_v36 }
 0xb34   : > { %v12667_v4 = vsel %vm909_vm7, %v12666_v18, %v12637_v50 }
 0xb35   : > { %v12751_v25 = vand.u32 4294901760, %v12750_v54 }
 0xb36   : > { %v12625_v61 = vpop.permute.xlu1 %12624  ;;  %v12641_v49 = vpop.permute.xlu0 %12640 }
 0xb37   : > { %v12668_v14 = vsel %vm911_vm8, %v12667_v4, %v12641_v49  ;;  %v12752_v10 = vsub.f32 %v12750_v54, %v12751_v25 }
 0xb38   : > { %v12669_v26 = vsel %vm913_vm9, %v12668_v14, %v12645_v30 }
 0xb39   : > { %v12753_v34 = vand.u32 4294901760, %v12752_v10  ;;  %v14276_v10 = vld [vmem:[%s15884_s29] ss:$0 sm:$0xff] }
 0xb3a   : > { %v12605_v7 = vpop.permute.xlu1 %12604  ;;  %v12649_v43 = vpop.permute.xlu0 %12648 }
 0xb3b   : > { %v12659_v37 = vsel %vm907_vm6, %v17113_v32, %v12605_v7  ;;  %v12670_v62 = vsel %vm915_vm10, %v12669_v26, %v12649_v43 }
 0xb3c   : > { %v12660_v24 = vsel %vm909_vm7, %v12659_v37, %v12609_v53  ;;  %v12671_v3 = vsel %vm917_vm11, %v12670_v62, %v12653_v59 }
 0xb3e   : > { %v12613_v46 = vpop.permute.xlu1 %12612  ;;  %v12657_v19 = vpop.permute.xlu0 %12656 }
 0xb3f   : > { %v12661_v12 = vsel %vm911_vm8, %v12660_v24, %v12613_v46  ;;  %v12672_v51 = vsel %vm919_vm12, %v12671_v3, %v12657_v19 }
 0xb40   : > { %v12680_v41 = vsel %vm1170_vm13, %v12672_v51, 0  ;;  %v12662_v32 = vsel %vm913_vm9, %v12661_v12, %v12617_v17  ;;  %v13455_v17 = vand.u32 4294901760, %v13380_v16 }
 0xb41   : > { %v12682_v38 = vand.u32 4294901760, %v12680_v41 }
 0xb42   : > { %v12621_v57 = vpop.permute.xlu1 %12620  ;;  %v13456_v14 = vsub.f32 %v13380_v16, %v13455_v17 }
 0xb43   : > { %v12761_v40 = vsub.f32 %v12680_v41, %v12682_v38  ;;  %v12663_v63 = vsel %vm915_vm10, %v12662_v32, %v12621_v57  ;;  %12683 = vmatprep.subr.mxu1 %v12682_v38 }
 0xb44   : > { %v12664_v35 = vsel %vm917_vm11, %v12663_v63, %v12625_v61  ;;  %v13457_v62 = vand.u32 4294901760, %v13456_v14 }
 0xb45   : > { %v12762_v13 = vand.u32 4294901760, %v12761_v40 }
 0xb46   : > { %v12629_v23 = vpop.permute.xlu1 %12628  ;;  %v13458_v51 = vsub.f32 %v13456_v14, %v13457_v62 }
 0xb47   : > { %v12665_v33 = vsel %vm919_vm12, %v12664_v35, %v12629_v23  ;;  %v12763_v2 = vsub.f32 %v12761_v40, %v12762_v13  ;;  %v13855_v23 = vrot.slane %v15891_v15, 4 }
 0xb48   : > { %v12677_v48 = vsel %vm1170_vm13, %v12665_v33, 0  ;;  %v13459_v32 = vand.u32 4294901760, %v13458_v51 }
 0xb49   : > { %v12684_v9 = vand.u32 4294901760, %v12677_v48  ;;  %v12764_v27 = vand.u32 4294901760, %v12763_v2 }
 0xb4b   : > { %v12767_v21 = vsub.f32 %v12677_v48, %v12684_v9  ;;  %12685 = vmatpush1.msra.mxu1 %v12684_v9 }
 0xb4c   : > { %12754 = vmatmul.mubr.f32.vlgmr.msra.gmra.mrb[0].mxu1 %v12753_v34  ;;  %12765 = vmatprep.subr.mxu1 %v12764_v27 }
 0xb4d   : > { %v12768_v22 = vand.u32 4294901760, %v12767_v21  ;;  %12834 = vmatprep.mubr.f32.mxu1 %v14344_v1 }
 0xb4f   : > { %v12769_v5 = vsub.f32 %v12767_v21, %v12768_v22 }
 0xb51   : > { %v12770_v8 = vand.u32 4294901760, %v12769_v5 }
 0xb52   : > { %v13343_v52 = vpop.permute.xlu0 %13342 }
 0xb53   : > { %12771 = vmatpush1.msra.mxu1 %v12770_v8 }
 0xb54   : > { %12836 = vmatmul.mubr.f32.vlgmr.msra.gmra.mrb[0].mxu1 %v17268_v36  ;;  %12844 = vmatprep.subr.mxu1 %v12761_v40 }
 0xb55   : > { %12847 = vmatpush1.msra.mxu1 %v12767_v21  ;;  %12910 = vmatprep.mubr.f32.mxu1 %v14344_v1 }
 0xb56   : > { %12920 = vmatprep.subr.mxu1 %v12682_v38  ;;  %v13351_v11 = vpop.permute.xlu0 %13350 }
 0xb5a   : > { %v13315_v60 = vpop.permute.xlu1 %13314  ;;  %v13359_v6 = vpop.permute.xlu0 %13358 }
 0xb5c   : > { %12913 = vmatmul.mubr.f32.vlgmr.msra.gmra.mrb[0].mxu1 %v12750_v54 }
 0xb5d   : > { %12922 = vmatpush1.msra.mxu1 %v12684_v9  ;;  %12985 = vmatprep.mubr.f32.mxu1 %v14344_v1 }
 0xb5e   : > { %12998 = vmatprep.subr.mxu1 %v12762_v13  ;;  %v13323_v58 = vpop.permute.xlu1 %13322  ;;  %v13339_v20 = vpop.permute.xlu0 %13338 }
 0xb5f   : > { %v13372_v44 = vsel %vm907_vm6, %v17209_v42, %v13339_v20 }
 0xb60   : > { %v13373_v47 = vsel %vm909_vm7, %v13372_v44, %v13343_v52 }
 0xb62   : > { %v13331_v28 = vpop.permute.xlu1 %13330  ;;  %v13347_v29 = vpop.permute.xlu0 %13346 }
 0xb63   : > { %v13374_v31 = vsel %vm911_vm8, %v13373_v47, %v13347_v29 }
 0xb64   : > { %12989 = vmatmul.mubr.f32.vlgmr.msra.gmra.mrb[0].mxu1 %v12751_v25  ;;  %v13375_v42 = vsel %vm913_vm9, %v13374_v31, %v13351_v11 }
 0xb65   : > { %13002 = vmatpush1.msra.mxu1 %v12768_v22  ;;  %13065 = vmatprep.mubr.f32.mxu1 %v14344_v1 }
 0xb66   : > { %13074 = vmatprep.subr.mxu1 %v12682_v38  ;;  %v13311_v50 = vpop.permute.xlu1 %13310  ;;  %v13355_v30 = vpop.permute.xlu0 %13354 }
 0xb67   : > { %v13365_v53 = vsel %vm907_vm6, %v17226_v0, %v13311_v50  ;;  %v13376_v59 = vsel %vm915_vm10, %v13375_v42, %v13355_v30 }
 0xb68   : > { %v13366_v45 = vsel %vm909_vm7, %v13365_v53, %v13315_v60  ;;  %v13377_v18 = vsel %vm917_vm11, %v13376_v59, %v13359_v6 }
 0xb6a   : > { %v13319_v56 = vpop.permute.xlu1 %13318  ;;  %v13363_v55 = vpop.permute.xlu0 %13362 }
 0xb6b   : > { %v13367_v61 = vsel %vm911_vm8, %v13366_v45, %v13319_v56  ;;  %v13378_v4 = vsel %vm919_vm12, %v13377_v18, %v13363_v55  ;;  %v14277_v55 = vld [vmem:[%s14449_s13] sm:$0xff]  ;;  %s14282_s13 = sshll.u32 %s14357_s25, 4  ;;  %s14283_s13 = int_to_ptr.vmem [resolvable:$false] %s14282_s13 }
 0xb6c   : > { %v13386_v49 = vsel %vm1170_vm13, %v13378_v4, 0  ;;  %13067 = vmatmul.mubr.f32.vlgmr.msra.gmra.mrb[0].mxu1 %v17268_v36  ;;  %v13368_v0 = vsel %vm913_vm9, %v13367_v61, %v13323_v58  ;;  %v286_v58 = vld [vmem:[%s17387_s5 + $0x8] sm:$0xff]  ;;  %s14284_s18 = scalar_lea.vmem %s14283_s13, 256  ;;  %p14285_p0 = scmp.lt.s32.totalorder %s17342_s11, %s14283_s13 }
 0xb6d   : > { %v13388_v7 = vand.u32 4294901760, %v13386_v49  ;;  %13076 = vmatpush1.msra.mxu1 %v12684_v9  ;;  %13139 = vmatprep.mubr.f32.mxu1 %v14344_v1  ;;  %p14286_p1 = scmp.lt.s32.totalorder %s14284_s18, %s14278_s17 }
 0xb6e   : > { %v13327_v26 = vpop.permute.xlu1 %13326 }
 0xb6f   : > { %v13467_v43 = vsub.f32 %v13386_v49, %v13388_v7  ;;  %v13369_v37 = vsel %vm915_vm10, %v13368_v0, %v13327_v26  ;;  %13389 = vmatprep.subr.mxu1 %v13388_v7  ;;  %p14287_p2 = por %p14286_p1, %p14285_p0 }
 0xb70   : > { %v13370_v24 = vsel %vm917_vm11, %v13369_v37, %v13331_v28 }
 0xb71   : > { %v13468_v54 = vand.u32 4294901760, %v13467_v43  ;;  %p14288_p3 = pnand %p14287_p2, %p14281_p13 }
 0xb72   : > { %v13335_v46 = vpop.permute.xlu1 %13334 }
 0xb73   : > { %v13371_v3 = vsel %vm919_vm12, %v13370_v24, %v13335_v46  ;;  %v13469_v19 = vsub.f32 %v13467_v43, %v13468_v54 }
 0xb74   : > { %v13383_v12 = vsel %vm1170_vm13, %v13371_v3, 0  ;;  %13141 = vmatmul.mubr.f32.vlgmr.msra.gmra.mrb[0].mxu1 %v17268_v36  ;;  %v284_v36 = vld [vmem:[%s17386_s4 + $0x8] sm:$0xff] }
 0xb75   : > { %v13390_v41 = vand.u32 4294901760, %v13383_v12  ;;  %v13470_v25 = vand.u32 4294901760, %v13469_v19  ;;  %13454 = vmatprep.mubr.f32.mxu1 %v14344_v1  ;;  %v296_v13 = vmul.f32 %v14276_v10, %v284_v36 }
 0xb77   : > { %v13473_v38 = vsub.f32 %v13383_v12, %v13390_v41  ;;  %13391 = vmatpush1.msra.mxu1 %v13390_v41  ;;  %v301_v35 = vsel %vm297_vm14, %v296_v13, 0.0 }
 0xb78   : > { %13471 = vmatprep.subr.mxu1 %v13470_v25  ;;  %302 = vadd.xlane.f32.xlu1 %v301_v35 }
 0xb79   : > { %v13474_v57 = vand.u32 4294901760, %v13473_v38 }
 0xb7b   : > { %v13475_v40 = vsub.f32 %v13473_v38, %v13474_v57 }
 0xb7c   : > { %13460 = vmatmul.mubr.f32.vlgmr.msra.gmra.mrb[0].mxu1 %v13459_v32 }
 0xb7d   : > { %v13476_v63 = vand.u32 4294901760, %v13475_v40  ;;  %13540 = vmatprep.mubr.f32.mxu1 %v14344_v1 }
 0xb7f   : > { %13477 = vmatpush1.msra.mxu1 %v13476_v63 }
 0xb80   : > { %13550 = vmatprep.subr.mxu1 %v13467_v43 }
 0xb84   : > { %13542 = vmatmul.mubr.f32.vlgmr.msra.gmra.mrb[0].mxu1 %v13455_v17 }
 0xb85   : > { %13553 = vmatpush1.msra.mxu1 %v13473_v38  ;;  %13616 = vmatprep.mubr.f32.mxu1 %v14344_v1 }
 0xb86   : > { %13626 = vmatprep.subr.mxu1 %v13388_v7 }
 0xb8c   : > { %13619 = vmatmul.mubr.f32.vlgmr.msra.gmra.mrb[0].mxu1 %v13456_v14 }
 0xb8d   : > { %13628 = vmatpush1.msra.mxu1 %v13390_v41  ;;  %13691 = vmatprep.mubr.f32.mxu1 %v14344_v1 }
 0xb8e   : > { %13704 = vmatprep.subr.mxu1 %v13468_v54 }
 0xb94   : > { %13695 = vmatmul.mubr.f32.vlgmr.msra.gmra.mrb[0].mxu1 %v13457_v62 }
 0xb95   : > { %13708 = vmatpush1.msra.mxu1 %v13474_v57  ;;  %13771 = vmatprep.mubr.f32.mxu1 %v14344_v1 }
 0xb96   : > { %13780 = vmatprep.subr.mxu1 %v13388_v7 }
 0xb9c   : > { %13773 = vmatmul.mubr.f32.vlgmr.msra.gmra.mrb[0].mxu1 %v13455_v17 }
 0xb9d   : > { %13782 = vmatpush1.msra.mxu1 %v13390_v41  ;;  %13845 = vmatprep.mubr.f32.mxu1 %v14344_v1 }
 0xba4   : > { %13847 = vmatmul.mubr.f32.vlgmr.msra.gmra.mrb[0].mxu1 %v13455_v17 }
 0xc05   : > { %v303_v20 = vpop.xlane.xlu1 %302 }
 0xc06   : > { %v305_v44 = vadd.f32 %v303_v20, %v286_v58 }
 0xc77   : > { %v13848_v33 = vpop.f32.mrb[0].mxu1 }
 0xc78   : > { %v13857_v2 = vadd.f32 %v13855_v23, %v13848_v33  ;;  %v13850_v48 = vpop.f32.mrb[1].mxu1 }
 0xc79   : > { %v13858_v34 = vadd.f32 %v13855_v23, %v13850_v48 }
 0xc7a   : > { %v13859_v9 = vsel %vm1170_vm13, %v13857_v2, 0.0 }
 0xc7b   : > { %v13860_v1 = vsel %vm1170_vm13, %v13858_v34, 0.0 }
 0xc7c   : > { %v13861_v27 = vadd.f32 %v13860_v1, %v13859_v9 }
 0xc7e   : > { %13862 = vadd.xlane.f32.xlu0 %v13861_v27 }
 0xd0b   : > { %v13863_v21 = vpop.xlane.xlu0 %13862 }
 0xd0c   : > { %v13864_v22 = vmul.f32 0.00390625, %v13863_v21 }
 0xd0e   : > { %v13865_v5 = vsub.f32 %v13857_v2, %v13864_v22  ;;  %v13866_v8 = vsub.f32 %v13858_v34, %v13864_v22 }
 0xd10   : > { %v13867_v52 = vmul.f32 %v13865_v5, %v13865_v5  ;;  %v13868_v11 = vmul.f32 %v13866_v8, %v13866_v8 }
 0xd12   : > { %v13869_v60 = vsel %vm1170_vm13, %v13867_v52, 0.0  ;;  %v13870_v15 = vsel %vm1170_vm13, %v13868_v11, 0.0 }
 0xd13   : > { %v13871_v6 = vadd.f32 %v13870_v15, %v13869_v60 }
 0xd15   : > { %13872 = vadd.xlane.f32.xlu0 %v13871_v6 }
 0xd2b   : > { %13881 = vperm.xlu0 %14271, %v305_v44  }
 0xda2   : > { %v13873_v28 = vpop.xlane.xlu0 %13872 }
 0xda3   : > { %v13874_v47 = vmul.f32 0.00390625, %v13873_v28 }
 0xda5   : > { %v13875_v29 = vadd.f32 1e-05, %v13874_v47 }
 0xda7   : > { %14274 = vrsqrt.f32 %v13875_v29 }
 0xdaa   : > { %v13882_v50 = vpop.permute.xlu0 %13881 }
 0xdab   : > { %v13892_v17 = vrot.slane %v13882_v50, 4 }
 0xdb1   : > { %v14275_v39 = vpop.eup %14274 }
 0xdb2   : > { %v13877_v31 = vmul.f32 %v14275_v39, %v13865_v5  ;;  %v13878_v16 = vmul.f32 %v14275_v39, %v13866_v8 }
 0xdb4   : > { %v13886_v42 = vrot.slane %v13877_v31, 4  ;;  %v13887_v30 = vrot.slane %v13878_v16, 4 }
 0xdb6   : > { %v13890_v53 = vmul.f32 %v13886_v42, %v13882_v50  ;;  %v13891_v59 = vmul.f32 %v13887_v30, %v13882_v50 }
 0xdb8   : > { %v13894_v45 = vadd.f32 %v13892_v17, %v13890_v53  ;;  %v13895_v56 = vadd.f32 %v13892_v17, %v13891_v59 }
 0xdba   : > { %v13898_v18 = vcombine.high %v13894_v45, %v13895_v56 }
 0xdbc   : > { %v13900_v61 = vadd.f32 %v14277_v55, %v13898_v18 }
 0xdbe   : > { %13901 = vst [vmem:[%s255_s28] sm:$0xff] %v13900_v61 }
 0xdbf   : > { %14291 = shalt.err (!%p14288_p3)
}
 0xdc0   : > { %s14292_s19 = scalar_lea.hbm %s17340_s16, 128  ;;  %s14296_s26 = scalar_lea.hbm %s17388_s6, 256 }
 0xdc1   : > { %p14293_p4 = scmp.ne.s32.totalorder %s17340_s16, %s14292_s19  ;;  %p14297_p9 = scmp.lt.u32.totalorder %s17340_s16, %s17388_s6 }
 0xdc2   : > { %p14298_p10 = scmp.lt.u32.totalorder %s14296_s26, %s14292_s19  ;;  %p14300_p12 = scmp.lt.u32.totalorder %s14292_s19, %s17340_s16 }
 0xdc3   : > { %p14294_p7 = pnand %p14293_p4, %p14431_p5 }
 0xdc4   : > { %p14299_p11 = por %p14298_p10, %p14297_p9 }
 0xdc5   : > { %p14295_p8 = pneg %p14294_p7 }
 0xdc6   : > { %p14301_p13 = por %p14300_p12, %p14299_p11 }
 0xdc8   : > { %p14302_p0 = pnand %p14301_p13, %p14295_p8 }
 0xdca   : > { %14305 = shalt.err (!%p14302_p0)
}
 0xdcb   : > { %14216 = dma.vmem_to_hbm [thread:$0]  (%p14431_p5), %s17342_s11, 128, %s17340_s16, %s13903_s15  }
 0xdcc PF: > { %p14222_p1 = scmp.ge.s32.totalorder %s14340_s24, 2  ;;  %s13929_s28 = sand.u32 1, %s14328_s21  }
 0xdcd   : > { %s13930_s12 = scalar_lea.sflag [#allocation3], %s13929_s28 }
 0xdce   : > { %p14219_p2 = pnand %p14222_p1, %p14435_p6 }
 0xdd0   : > { %14323 = dma.done.wait (!%p14219_p2), %s13930_s12, 128  }
 0xdd1   : > { %14325 = vsyncadd (!%p14219_p2), %s13930_s12, 4294967168  ;;  %p16_p3 = scmp.ge.s32.totalorder %s14418_s27, 4   ;;  %s17455_s21 = smov %s14332_s22 }
 0xdd2   : > { %s17456_s22 = smov %s14336_s23  ;;  %s17457_s23 = smov %s14429_s30 }
 0xdd3   : > { %s17458_s24 = smov %s14418_s27  ;;  %18 = sbr.rel (!%p16_p3) target bundleno = 3 (0x3), region = 82 }
 0xdda   :  { %13935 = vsyncpa [#allocation3], 1 }
 0xddb   :  { %13937 = vsyncpa [#allocation3 + $0x1], 1 }

</bundles_post_ra>
